<compile_context>
chip_gen: v6e
topology: v6e:2x2x1
jax: 0.10.0
libtpu: 0.0.40
codegen_flags: <defaults>
</compile_context>

<pallas_src>
import functools

import jax
import jax.numpy as jnp
from jax.experimental import pallas as pl
from jax.experimental.pallas import tpu as pltpu


def _simple_rb_kernel(x_ref, w1_ref, w2_ref, s1_ref, b1_ref, s2_ref, b2_ref, mask_ref,
                      out_ref, xf_scr, patch_scr, *, D, H, W, pad):
    # x_ref    : (1, C, S)        input block, (channels, flat-spatial); also the residual
    # w*_ref   : (C, 27*C)        conv weights; column = tap*C + cin, tap = kd*9 + kh*3 + kw
    # s*/b*    : (C, 1)           folded BatchNorm scale / bias
    # mask_ref : (27, S)          0/1 validity mask per tap ("same" zero-padding semantics)
    # out_ref  : (1, C, S)
    # xf_scr   : (C, pad+S+pad)   halo-padded flat activation scratch (lane-aligned halo)
    # patch_scr: (27*C, S)        im2col patch matrix scratch
    C = x_ref.shape[1]
    S = D * H * W
    HW = H * W

    # Zero only the (aligned, pad-wide) halo edges; the interior is overwritten below.
    xf_scr[:, :pad] = jnp.zeros((C, pad), jnp.float32)
    xf_scr[:, pad + S:] = jnp.zeros((C, pad), jnp.float32)

    deltas = [dd * HW + dh * W + dw
              for dd in (-1, 0, 1) for dh in (-1, 0, 1) for dw in (-1, 0, 1)]

    def conv_bn(w_ref, s_ref, b_ref):
        # Gather the 27 shifted lane-windows, mask out-of-bounds taps, then one big-K dot.
        for t, delta in enumerate(deltas):
            start = pad + delta
            win = xf_scr[:, start:start + S]                        # (C, S) shifted window
            patch_scr[t * C:(t + 1) * C, :] = win * mask_ref[t:t + 1, :]
        y = jnp.dot(w_ref[...], patch_scr[...],
                    preferred_element_type=jnp.float32)             # (C,27C)@(27C,S)=(C,S)
        return y * s_ref[...] + b_ref[...]

    x = x_ref[0].astype(jnp.float32)                                # (C, S)

    # conv1 -> BN1 -> ReLU
    xf_scr[:, pad:pad + S] = x                                      # lane-aligned interior write
    y1 = jnp.maximum(conv_bn(w1_ref, s1_ref, b1_ref), 0.0)

    # conv2 -> BN2 (reuse the same scratch for the intermediate activation)
    xf_scr[:, pad:pad + S] = y1
    y2 = conv_bn(w2_ref, s2_ref, b2_ref)

    # residual add + ReLU; full lane-dense store
    out_ref[0] = jnp.maximum(x + y2, 0.0).astype(out_ref.dtype)


def simple_rb_pallas(x_ncdhw, w1, w2, s1, b1, s2, b2):
    """x_ncdhw: (N, C, D, H, W) float32 (PyTorch layout). Returns same layout."""
    N, C, D, H, W = x_ncdhw.shape
    S = D * H * W
    assert S % 128 == 0, "flattened spatial dim must be a multiple of 128 lanes"
    pad = pl.cdiv(H * W + W + 1, 128) * 128   # >= largest tap offset, lane-aligned

    # (N, C, D, H, W) -> (N, C, S): pure reshape, no transpose / padded HBM copy.
    x = x_ncdhw.reshape(N, C, S)

    # weights (Cout, Cin, 3,3,3) -> (Cout, 27*Cin) with column = (kd*9+kh*3+kw)*Cin + cin
    w1m = jnp.transpose(w1, (0, 2, 3, 4, 1)).reshape(C, 27 * C)
    w2m = jnp.transpose(w2, (0, 2, 3, 4, 1)).reshape(C, 27 * C)
    s1r, b1r = s1.reshape(C, 1), b1.reshape(C, 1)
    s2r, b2r = s2.reshape(C, 1), b2.reshape(C, 1)

    # per-tap validity masks implementing "same" zero padding on the flattened spatial axis
    d_idx = jnp.arange(D)[:, None, None]
    h_idx = jnp.arange(H)[None, :, None]
    w_idx = jnp.arange(W)[None, None, :]
    rows = []
    for dd in (-1, 0, 1):
        for dh in (-1, 0, 1):
            for dw in (-1, 0, 1):
                valid = ((d_idx + dd >= 0) & (d_idx + dd < D) &
                         (h_idx + dh >= 0) & (h_idx + dh < H) &
                         (w_idx + dw >= 0) & (w_idx + dw < W))
                rows.append(valid.reshape(S))
    masks = jnp.stack(rows, axis=0).astype(jnp.float32)             # (27, S)

    kernel = functools.partial(_simple_rb_kernel, D=D, H=H, W=W, pad=pad)

    flops = N * 2 * (2 * S * (27 * C) * C)                          # 2 convs, big-K matmuls
    bytes_accessed = (2 * N * C * S + 2 * 27 * C * C + 27 * S + 4 * C) * 4

    out = pl.pallas_call(
        kernel,
        out_shape=jax.ShapeDtypeStruct((N, C, S), x.dtype),
        grid_spec=pltpu.PrefetchScalarGridSpec(
            num_scalar_prefetch=0,
            grid=(N,),
            in_specs=[
                pl.BlockSpec((1, C, S), lambda n: (n, 0, 0)),       # x (residual + conv input)
                pl.BlockSpec((C, 27 * C), lambda n: (0, 0)),        # w1
                pl.BlockSpec((C, 27 * C), lambda n: (0, 0)),        # w2
                pl.BlockSpec((C, 1), lambda n: (0, 0)),             # s1
                pl.BlockSpec((C, 1), lambda n: (0, 0)),             # b1
                pl.BlockSpec((C, 1), lambda n: (0, 0)),             # s2
                pl.BlockSpec((C, 1), lambda n: (0, 0)),             # b2
                pl.BlockSpec((27, S), lambda n: (0, 0)),            # tap masks
            ],
            out_specs=pl.BlockSpec((1, C, S), lambda n: (n, 0, 0)),
            scratch_shapes=[
                pltpu.VMEM((C, pad + S + pad), jnp.float32),        # halo-padded activations
                pltpu.VMEM((27 * C, S), jnp.float32),               # im2col patch matrix
            ],
        ),
        compiler_params=pltpu.CompilerParams(
            dimension_semantics=("parallel",),
        ),
        cost_estimate=pl.CostEstimate(flops=flops, transcendentals=0,
                                      bytes_accessed=bytes_accessed),
    )(x, w1m, w2m, s1r, b1r, s2r, b2r, masks)

    return out.reshape(N, C, D, H, W)


def _ref_forward_ndhwc(x, w1, w2, s1, b1, s2, b2):
    """Plain-JAX reference (eval-mode BN folded into scale/bias)."""
    def conv(y, w):
        return jax.lax.conv_general_dilated(
            y, jnp.transpose(w, (2, 3, 4, 1, 0)),
            window_strides=(1, 1, 1), padding="SAME",
            dimension_numbers=("NDHWC", "DHWIO", "NDHWC"))
    y = jnp.maximum(conv(x, w1) * s1 + b1, 0.0)
    y = conv(y, w2) * s2 + b2
    return jnp.maximum(x + y, 0.0)


if __name__ == "__main__":
    # small shapes consistent with a 3D residual block: N=2, C=4, D=H=W=8
    N, C, D, H, W = 2, 4, 8, 8, 8
    eps = 1e-5

    key = jax.random.PRNGKey(0)
    keys = jax.random.split(key, 11)

    x = jax.random.normal(keys[0], (N, C, D, H, W), jnp.float32)

    # Conv3d weights (Cout, Cin, kD, kH, kW), bias=False
    w1 = jax.random.normal(keys[1], (C, C, 3, 3, 3), jnp.float32) * 0.1
    w2 = jax.random.normal(keys[2], (C, C, 3, 3, 3), jnp.float32) * 0.1

    # BatchNorm3d parameters + running stats (eval mode), folded to scale/bias
    def fold_bn(kg, kb, km, kv):
        gamma = 1.0 + 0.1 * jax.random.normal(kg, (C,), jnp.float32)
        beta = 0.1 * jax.random.normal(kb, (C,), jnp.float32)
        mean = 0.1 * jax.random.normal(km, (C,), jnp.float32)
        var = jax.random.uniform(kv, (C,), jnp.float32, 0.5, 1.5)
        scale = gamma / jnp.sqrt(var + eps)
        bias = beta - mean * scale
        return scale, bias

    s1, b1 = fold_bn(keys[3], keys[4], keys[5], keys[6])
    s2, b2 = fold_bn(keys[7], keys[8], keys[9], keys[10])

    out = simple_rb_pallas(x, w1, w2, s1, b1, s2, b2)
    out = jax.block_until_ready(out)

    # correctness check against plain-JAX reference
    x_ndhwc = jnp.transpose(x, (0, 2, 3, 4, 1))
    ref = _ref_forward_ndhwc(x_ndhwc, w1, w2, s1, b1, s2, b2)
    ref = jnp.transpose(ref, (0, 4, 1, 2, 3))
    assert out.shape == (N, C, D, H, W)
    assert jnp.allclose(out, ref, atol=1e-4, rtol=1e-4), "mismatch vs reference"

    print("KERNEL_OK")
</pallas_src>

<mosaic_0001>
module attributes {stable_mosaic.version = 11 : i64} {
  func.func @_simple_rb_kernel(%arg0: i32, %arg1: memref<1x4x512xf32, #tpu.memory_space<vmem>>, %arg2: memref<4x108xf32, #tpu.memory_space<vmem>>, %arg3: memref<4x108xf32, #tpu.memory_space<vmem>>, %arg4: memref<4x1xf32, #tpu.memory_space<vmem>>, %arg5: memref<4x1xf32, #tpu.memory_space<vmem>>, %arg6: memref<4x1xf32, #tpu.memory_space<vmem>>, %arg7: memref<4x1xf32, #tpu.memory_space<vmem>>, %arg8: memref<27x512xf32, #tpu.memory_space<vmem>>, %arg9: memref<1x4x512xf32, #tpu.memory_space<vmem>>, %arg10: memref<4x768xf32, #tpu.memory_space<vmem>>, %arg11: memref<108x512xf32, #tpu.memory_space<vmem>>) attributes {dimension_semantics = [#tpu.dimension_semantics<parallel>], iteration_bounds = array<i64: 2>, scalar_prefetch = 0 : i64, scratch_operands = 2 : i64, tpu.core_type = #tpu.core_type<tc>, window_params = [{transform_indices = @transform_0, window_bounds = array<i64: 1, 4, 512>}, {pipeline_mode = #tpu.pipeline_mode<synchronous>, transform_indices = @transform_1, window_bounds = array<i64: 4, 108>}, {pipeline_mode = #tpu.pipeline_mode<synchronous>, transform_indices = @transform_2, window_bounds = array<i64: 4, 108>}, {pipeline_mode = #tpu.pipeline_mode<synchronous>, transform_indices = @transform_3, window_bounds = array<i64: 4, 1>}, {pipeline_mode = #tpu.pipeline_mode<synchronous>, transform_indices = @transform_4, window_bounds = array<i64: 4, 1>}, {pipeline_mode = #tpu.pipeline_mode<synchronous>, transform_indices = @transform_5, window_bounds = array<i64: 4, 1>}, {pipeline_mode = #tpu.pipeline_mode<synchronous>, transform_indices = @transform_6, window_bounds = array<i64: 4, 1>}, {pipeline_mode = #tpu.pipeline_mode<synchronous>, transform_indices = @transform_7, window_bounds = array<i64: 27, 512>}, {transform_indices = @transform_8, window_bounds = array<i64: 1, 4, 512>}]} {
    %cst = arith.constant 0.000000e+00 : f32
    %0 = vector.broadcast %cst : f32 to vector<4x128xf32>
    %c0 = arith.constant 0 : index
    %c0_0 = arith.constant 0 : index
    %1 = vector.load %arg10[%c0, %c0_0] : memref<4x768xf32, #tpu.memory_space<vmem>>, vector<4x128xf32>
    tpu.vector_store %arg10[%c0, %c0_0], %0 {strides = array<i32>} : memref<4x768xf32, #tpu.memory_space<vmem>>, vector<4x128xf32>,
    %cst_1 = arith.constant 0.000000e+00 : f32
    %2 = vector.broadcast %cst_1 : f32 to vector<4x128xf32>
    %c0_2 = arith.constant 0 : index
    %c640 = arith.constant 640 : index
    %3 = vector.load %arg10[%c0_2, %c640] : memref<4x768xf32, #tpu.memory_space<vmem>>, vector<4x128xf32>
    tpu.vector_store %arg10[%c0_2, %c640], %2 {strides = array<i32>} : memref<4x768xf32, #tpu.memory_space<vmem>>, vector<4x128xf32>,
    %c0_3 = arith.constant 0 : index
    %c0_4 = arith.constant 0 : index
    %c0_5 = arith.constant 0 : index
    %4 = vector.load %arg1[%c0_3, %c0_4, %c0_5] : memref<1x4x512xf32, #tpu.memory_space<vmem>>, vector<1x4x512xf32>
    %5 = vector.shape_cast %4 : vector<1x4x512xf32> to vector<4x512xf32>
    %c0_6 = arith.constant 0 : index
    %c128 = arith.constant 128 : index
    %6 = vector.load %arg10[%c0_6, %c128] : memref<4x768xf32, #tpu.memory_space<vmem>>, vector<4x512xf32>
    tpu.vector_store %arg10[%c0_6, %c128], %5 {strides = array<i32>} : memref<4x768xf32, #tpu.memory_space<vmem>>, vector<4x512xf32>,
    %c0_7 = arith.constant 0 : index
    %c55 = arith.constant 55 : index
    %7 = vector.load %arg10[%c0_7, %c55] : memref<4x768xf32, #tpu.memory_space<vmem>>, vector<4x512xf32>
    %c0_8 = arith.constant 0 : index
    %c0_9 = arith.constant 0 : index
    %8 = vector.load %arg8[%c0_8, %c0_9] : memref<27x512xf32, #tpu.memory_space<vmem>>, vector<1x512xf32>
    %9 = vector.broadcast %8 : vector<1x512xf32> to vector<4x512xf32>
    %10 = arith.mulf %7, %9 : vector<4x512xf32>
    %c0_10 = arith.constant 0 : index
    %c0_11 = arith.constant 0 : index
    %11 = vector.load %arg11[%c0_10, %c0_11] : memref<108x512xf32, #tpu.memory_space<vmem>>, vector<4x512xf32>
    tpu.vector_store %arg11[%c0_10, %c0_11], %10 {strides = array<i32>} : memref<108x512xf32, #tpu.memory_space<vmem>>, vector<4x512xf32>,
    %c0_12 = arith.constant 0 : index
    %c56 = arith.constant 56 : index
    %12 = vector.load %arg10[%c0_12, %c56] : memref<4x768xf32, #tpu.memory_space<vmem>>, vector<4x512xf32>
    %c1 = arith.constant 1 : index
    %c0_13 = arith.constant 0 : index
    %13 = vector.load %arg8[%c1, %c0_13] : memref<27x512xf32, #tpu.memory_space<vmem>>, vector<1x512xf32>
    %14 = vector.broadcast %13 : vector<1x512xf32> to vector<4x512xf32>
    %15 = arith.mulf %12, %14 : vector<4x512xf32>
    %c4 = arith.constant 4 : index
    %c0_14 = arith.constant 0 : index
    %16 = vector.load %arg11[%c4, %c0_14] : memref<108x512xf32, #tpu.memory_space<vmem>>, vector<4x512xf32>
    tpu.vector_store %arg11[%c4, %c0_14], %15 {strides = array<i32>} : memref<108x512xf32, #tpu.memory_space<vmem>>, vector<4x512xf32>,
    %c0_15 = arith.constant 0 : index
    %c57 = arith.constant 57 : index
    %17 = vector.load %arg10[%c0_15, %c57] : memref<4x768xf32, #tpu.memory_space<vmem>>, vector<4x512xf32>
    %c2 = arith.constant 2 : index
    %c0_16 = arith.constant 0 : index
    %18 = vector.load %arg8[%c2, %c0_16] : memref<27x512xf32, #tpu.memory_space<vmem>>, vector<1x512xf32>
    %19 = vector.broadcast %18 : vector<1x512xf32> to vector<4x512xf32>
    %20 = arith.mulf %17, %19 : vector<4x512xf32>
    %c8 = arith.constant 8 : index
    %c0_17 = arith.constant 0 : index
    %21 = vector.load %arg11[%c8, %c0_17] : memref<108x512xf32, #tpu.memory_space<vmem>>, vector<4x512xf32>
    tpu.vector_store %arg11[%c8, %c0_17], %20 {strides = array<i32>} : memref<108x512xf32, #tpu.memory_space<vmem>>, vector<4x512xf32>,
    %c0_18 = arith.constant 0 : index
    %c63 = arith.constant 63 : index
    %22 = vector.load %arg10[%c0_18, %c63] : memref<4x768xf32, #tpu.memory_space<vmem>>, vector<4x512xf32>
    %c3 = arith.constant 3 : index
    %c0_19 = arith.constant 0 : index
    %23 = vector.load %arg8[%c3, %c0_19] : memref<27x512xf32, #tpu.memory_space<vmem>>, vector<1x512xf32>
    %24 = vector.broadcast %23 : vector<1x512xf32> to vector<4x512xf32>
    %25 = arith.mulf %22, %24 : vector<4x512xf32>
    %c12 = arith.constant 12 : index
    %c0_20 = arith.constant 0 : index
    %26 = vector.load %arg11[%c12, %c0_20] : memref<108x512xf32, #tpu.memory_space<vmem>>, vector<4x512xf32>
    tpu.vector_store %arg11[%c12, %c0_20], %25 {strides = array<i32>} : memref<108x512xf32, #tpu.memory_space<vmem>>, vector<4x512xf32>,
    %c0_21 = arith.constant 0 : index
    %c64 = arith.constant 64 : index
    %27 = vector.load %arg10[%c0_21, %c64] : memref<4x768xf32, #tpu.memory_space<vmem>>, vector<4x512xf32>
    %c4_22 = arith.constant 4 : index
    %c0_23 = arith.constant 0 : index
    %28 = vector.load %arg8[%c4_22, %c0_23] : memref<27x512xf32, #tpu.memory_space<vmem>>, vector<1x512xf32>
    %29 = vector.broadcast %28 : vector<1x512xf32> to vector<4x512xf32>
    %30 = arith.mulf %27, %29 : vector<4x512xf32>
    %c16 = arith.constant 16 : index
    %c0_24 = arith.constant 0 : index
    %31 = vector.load %arg11[%c16, %c0_24] : memref<108x512xf32, #tpu.memory_space<vmem>>, vector<4x512xf32>
    tpu.vector_store %arg11[%c16, %c0_24], %30 {strides = array<i32>} : memref<108x512xf32, #tpu.memory_space<vmem>>, vector<4x512xf32>,
    %c0_25 = arith.constant 0 : index
    %c65 = arith.constant 65 : index
    %32 = vector.load %arg10[%c0_25, %c65] : memref<4x768xf32, #tpu.memory_space<vmem>>, vector<4x512xf32>
    %c5 = arith.constant 5 : index
    %c0_26 = arith.constant 0 : index
    %33 = vector.load %arg8[%c5, %c0_26] : memref<27x512xf32, #tpu.memory_space<vmem>>, vector<1x512xf32>
    %34 = vector.broadcast %33 : vector<1x512xf32> to vector<4x512xf32>
    %35 = arith.mulf %32, %34 : vector<4x512xf32>
    %c20 = arith.constant 20 : index
    %c0_27 = arith.constant 0 : index
    %36 = vector.load %arg11[%c20, %c0_27] : memref<108x512xf32, #tpu.memory_space<vmem>>, vector<4x512xf32>
    tpu.vector_store %arg11[%c20, %c0_27], %35 {strides = array<i32>} : memref<108x512xf32, #tpu.memory_space<vmem>>, vector<4x512xf32>,
    %c0_28 = arith.constant 0 : index
    %c71 = arith.constant 71 : index
    %37 = vector.load %arg10[%c0_28, %c71] : memref<4x768xf32, #tpu.memory_space<vmem>>, vector<4x512xf32>
    %c6 = arith.constant 6 : index
    %c0_29 = arith.constant 0 : index
    %38 = vector.load %arg8[%c6, %c0_29] : memref<27x512xf32, #tpu.memory_space<vmem>>, vector<1x512xf32>
    %39 = vector.broadcast %38 : vector<1x512xf32> to vector<4x512xf32>
    %40 = arith.mulf %37, %39 : vector<4x512xf32>
    %c24 = arith.constant 24 : index
    %c0_30 = arith.constant 0 : index
    %41 = vector.load %arg11[%c24, %c0_30] : memref<108x512xf32, #tpu.memory_space<vmem>>, vector<4x512xf32>
    tpu.vector_store %arg11[%c24, %c0_30], %40 {strides = array<i32>} : memref<108x512xf32, #tpu.memory_space<vmem>>, vector<4x512xf32>,
    %c0_31 = arith.constant 0 : index
    %c72 = arith.constant 72 : index
    %42 = vector.load %arg10[%c0_31, %c72] : memref<4x768xf32, #tpu.memory_space<vmem>>, vector<4x512xf32>
    %c7 = arith.constant 7 : index
    %c0_32 = arith.constant 0 : index
    %43 = vector.load %arg8[%c7, %c0_32] : memref<27x512xf32, #tpu.memory_space<vmem>>, vector<1x512xf32>
    %44 = vector.broadcast %43 : vector<1x512xf32> to vector<4x512xf32>
    %45 = arith.mulf %42, %44 : vector<4x512xf32>
    %c28 = arith.constant 28 : index
    %c0_33 = arith.constant 0 : index
    %46 = vector.load %arg11[%c28, %c0_33] : memref<108x512xf32, #tpu.memory_space<vmem>>, vector<4x512xf32>
    tpu.vector_store %arg11[%c28, %c0_33], %45 {strides = array<i32>} : memref<108x512xf32, #tpu.memory_space<vmem>>, vector<4x512xf32>,
    %c0_34 = arith.constant 0 : index
    %c73 = arith.constant 73 : index
    %47 = vector.load %arg10[%c0_34, %c73] : memref<4x768xf32, #tpu.memory_space<vmem>>, vector<4x512xf32>
    %c8_35 = arith.constant 8 : index
    %c0_36 = arith.constant 0 : index
    %48 = vector.load %arg8[%c8_35, %c0_36] : memref<27x512xf32, #tpu.memory_space<vmem>>, vector<1x512xf32>
    %49 = vector.broadcast %48 : vector<1x512xf32> to vector<4x512xf32>
    %50 = arith.mulf %47, %49 : vector<4x512xf32>
    %c32 = arith.constant 32 : index
    %c0_37 = arith.constant 0 : index
    %51 = vector.load %arg11[%c32, %c0_37] : memref<108x512xf32, #tpu.memory_space<vmem>>, vector<4x512xf32>
    tpu.vector_store %arg11[%c32, %c0_37], %50 {strides = array<i32>} : memref<108x512xf32, #tpu.memory_space<vmem>>, vector<4x512xf32>,
    %c0_38 = arith.constant 0 : index
    %c119 = arith.constant 119 : index
    %52 = vector.load %arg10[%c0_38, %c119] : memref<4x768xf32, #tpu.memory_space<vmem>>, vector<4x512xf32>
    %c9 = arith.constant 9 : index
    %c0_39 = arith.constant 0 : index
    %53 = vector.load %arg8[%c9, %c0_39] : memref<27x512xf32, #tpu.memory_space<vmem>>, vector<1x512xf32>
    %54 = vector.broadcast %53 : vector<1x512xf32> to vector<4x512xf32>
    %55 = arith.mulf %52, %54 : vector<4x512xf32>
    %c36 = arith.constant 36 : index
    %c0_40 = arith.constant 0 : index
    %56 = vector.load %arg11[%c36, %c0_40] : memref<108x512xf32, #tpu.memory_space<vmem>>, vector<4x512xf32>
    tpu.vector_store %arg11[%c36, %c0_40], %55 {strides = array<i32>} : memref<108x512xf32, #tpu.memory_space<vmem>>, vector<4x512xf32>,
    %c0_41 = arith.constant 0 : index
    %c120 = arith.constant 120 : index
    %57 = vector.load %arg10[%c0_41, %c120] : memref<4x768xf32, #tpu.memory_space<vmem>>, vector<4x512xf32>
    %c10 = arith.constant 10 : index
    %c0_42 = arith.constant 0 : index
    %58 = vector.load %arg8[%c10, %c0_42] : memref<27x512xf32, #tpu.memory_space<vmem>>, vector<1x512xf32>
    %59 = vector.broadcast %58 : vector<1x512xf32> to vector<4x512xf32>
    %60 = arith.mulf %57, %59 : vector<4x512xf32>
    %c40 = arith.constant 40 : index
    %c0_43 = arith.constant 0 : index
    %61 = vector.load %arg11[%c40, %c0_43] : memref<108x512xf32, #tpu.memory_space<vmem>>, vector<4x512xf32>
    tpu.vector_store %arg11[%c40, %c0_43], %60 {strides = array<i32>} : memref<108x512xf32, #tpu.memory_space<vmem>>, vector<4x512xf32>,
    %c0_44 = arith.constant 0 : index
    %c121 = arith.constant 121 : index
    %62 = vector.load %arg10[%c0_44, %c121] : memref<4x768xf32, #tpu.memory_space<vmem>>, vector<4x512xf32>
    %c11 = arith.constant 11 : index
    %c0_45 = arith.constant 0 : index
    %63 = vector.load %arg8[%c11, %c0_45] : memref<27x512xf32, #tpu.memory_space<vmem>>, vector<1x512xf32>
    %64 = vector.broadcast %63 : vector<1x512xf32> to vector<4x512xf32>
    %65 = arith.mulf %62, %64 : vector<4x512xf32>
    %c44 = arith.constant 44 : index
    %c0_46 = arith.constant 0 : index
    %66 = vector.load %arg11[%c44, %c0_46] : memref<108x512xf32, #tpu.memory_space<vmem>>, vector<4x512xf32>
    tpu.vector_store %arg11[%c44, %c0_46], %65 {strides = array<i32>} : memref<108x512xf32, #tpu.memory_space<vmem>>, vector<4x512xf32>,
    %c0_47 = arith.constant 0 : index
    %c127 = arith.constant 127 : index
    %67 = vector.load %arg10[%c0_47, %c127] : memref<4x768xf32, #tpu.memory_space<vmem>>, vector<4x512xf32>
    %c12_48 = arith.constant 12 : index
    %c0_49 = arith.constant 0 : index
    %68 = vector.load %arg8[%c12_48, %c0_49] : memref<27x512xf32, #tpu.memory_space<vmem>>, vector<1x512xf32>
    %69 = vector.broadcast %68 : vector<1x512xf32> to vector<4x512xf32>
    %70 = arith.mulf %67, %69 : vector<4x512xf32>
    %c48 = arith.constant 48 : index
    %c0_50 = arith.constant 0 : index
    %71 = vector.load %arg11[%c48, %c0_50] : memref<108x512xf32, #tpu.memory_space<vmem>>, vector<4x512xf32>
    tpu.vector_store %arg11[%c48, %c0_50], %70 {strides = array<i32>} : memref<108x512xf32, #tpu.memory_space<vmem>>, vector<4x512xf32>,
    %c0_51 = arith.constant 0 : index
    %c128_52 = arith.constant 128 : index
    %72 = vector.load %arg10[%c0_51, %c128_52] : memref<4x768xf32, #tpu.memory_space<vmem>>, vector<4x512xf32>
    %c13 = arith.constant 13 : index
    %c0_53 = arith.constant 0 : index
    %73 = vector.load %arg8[%c13, %c0_53] : memref<27x512xf32, #tpu.memory_space<vmem>>, vector<1x512xf32>
    %74 = vector.broadcast %73 : vector<1x512xf32> to vector<4x512xf32>
    %75 = arith.mulf %72, %74 : vector<4x512xf32>
    %c52 = arith.constant 52 : index
    %c0_54 = arith.constant 0 : index
    %76 = vector.load %arg11[%c52, %c0_54] : memref<108x512xf32, #tpu.memory_space<vmem>>, vector<4x512xf32>
    tpu.vector_store %arg11[%c52, %c0_54], %75 {strides = array<i32>} : memref<108x512xf32, #tpu.memory_space<vmem>>, vector<4x512xf32>,
    %c0_55 = arith.constant 0 : index
    %c129 = arith.constant 129 : index
    %77 = vector.load %arg10[%c0_55, %c129] : memref<4x768xf32, #tpu.memory_space<vmem>>, vector<4x512xf32>
    %c14 = arith.constant 14 : index
    %c0_56 = arith.constant 0 : index
    %78 = vector.load %arg8[%c14, %c0_56] : memref<27x512xf32, #tpu.memory_space<vmem>>, vector<1x512xf32>
    %79 = vector.broadcast %78 : vector<1x512xf32> to vector<4x512xf32>
    %80 = arith.mulf %77, %79 : vector<4x512xf32>
    %c56_57 = arith.constant 56 : index
    %c0_58 = arith.constant 0 : index
    %81 = vector.load %arg11[%c56_57, %c0_58] : memref<108x512xf32, #tpu.memory_space<vmem>>, vector<4x512xf32>
    tpu.vector_store %arg11[%c56_57, %c0_58], %80 {strides = array<i32>} : memref<108x512xf32, #tpu.memory_space<vmem>>, vector<4x512xf32>,
    %c0_59 = arith.constant 0 : index
    %c135 = arith.constant 135 : index
    %82 = vector.load %arg10[%c0_59, %c135] : memref<4x768xf32, #tpu.memory_space<vmem>>, vector<4x512xf32>
    %c15 = arith.constant 15 : index
    %c0_60 = arith.constant 0 : index
    %83 = vector.load %arg8[%c15, %c0_60] : memref<27x512xf32, #tpu.memory_space<vmem>>, vector<1x512xf32>
    %84 = vector.broadcast %83 : vector<1x512xf32> to vector<4x512xf32>
    %85 = arith.mulf %82, %84 : vector<4x512xf32>
    %c60 = arith.constant 60 : index
    %c0_61 = arith.constant 0 : index
    %86 = vector.load %arg11[%c60, %c0_61] : memref<108x512xf32, #tpu.memory_space<vmem>>, vector<4x512xf32>
    tpu.vector_store %arg11[%c60, %c0_61], %85 {strides = array<i32>} : memref<108x512xf32, #tpu.memory_space<vmem>>, vector<4x512xf32>,
    %c0_62 = arith.constant 0 : index
    %c136 = arith.constant 136 : index
    %87 = vector.load %arg10[%c0_62, %c136] : memref<4x768xf32, #tpu.memory_space<vmem>>, vector<4x512xf32>
    %c16_63 = arith.constant 16 : index
    %c0_64 = arith.constant 0 : index
    %88 = vector.load %arg8[%c16_63, %c0_64] : memref<27x512xf32, #tpu.memory_space<vmem>>, vector<1x512xf32>
    %89 = vector.broadcast %88 : vector<1x512xf32> to vector<4x512xf32>
    %90 = arith.mulf %87, %89 : vector<4x512xf32>
    %c64_65 = arith.constant 64 : index
    %c0_66 = arith.constant 0 : index
    %91 = vector.load %arg11[%c64_65, %c0_66] : memref<108x512xf32, #tpu.memory_space<vmem>>, vector<4x512xf32>
    tpu.vector_store %arg11[%c64_65, %c0_66], %90 {strides = array<i32>} : memref<108x512xf32, #tpu.memory_space<vmem>>, vector<4x512xf32>,
    %c0_67 = arith.constant 0 : index
    %c137 = arith.constant 137 : index
    %92 = vector.load %arg10[%c0_67, %c137] : memref<4x768xf32, #tpu.memory_space<vmem>>, vector<4x512xf32>
    %c17 = arith.constant 17 : index
    %c0_68 = arith.constant 0 : index
    %93 = vector.load %arg8[%c17, %c0_68] : memref<27x512xf32, #tpu.memory_space<vmem>>, vector<1x512xf32>
    %94 = vector.broadcast %93 : vector<1x512xf32> to vector<4x512xf32>
    %95 = arith.mulf %92, %94 : vector<4x512xf32>
    %c68 = arith.constant 68 : index
    %c0_69 = arith.constant 0 : index
    %96 = vector.load %arg11[%c68, %c0_69] : memref<108x512xf32, #tpu.memory_space<vmem>>, vector<4x512xf32>
    tpu.vector_store %arg11[%c68, %c0_69], %95 {strides = array<i32>} : memref<108x512xf32, #tpu.memory_space<vmem>>, vector<4x512xf32>,
    %c0_70 = arith.constant 0 : index
    %c183 = arith.constant 183 : index
    %97 = vector.load %arg10[%c0_70, %c183] : memref<4x768xf32, #tpu.memory_space<vmem>>, vector<4x512xf32>
    %c18 = arith.constant 18 : index
    %c0_71 = arith.constant 0 : index
    %98 = vector.load %arg8[%c18, %c0_71] : memref<27x512xf32, #tpu.memory_space<vmem>>, vector<1x512xf32>
    %99 = vector.broadcast %98 : vector<1x512xf32> to vector<4x512xf32>
    %100 = arith.mulf %97, %99 : vector<4x512xf32>
    %c72_72 = arith.constant 72 : index
    %c0_73 = arith.constant 0 : index
    %101 = vector.load %arg11[%c72_72, %c0_73] : memref<108x512xf32, #tpu.memory_space<vmem>>, vector<4x512xf32>
    tpu.vector_store %arg11[%c72_72, %c0_73], %100 {strides = array<i32>} : memref<108x512xf32, #tpu.memory_space<vmem>>, vector<4x512xf32>,
    %c0_74 = arith.constant 0 : index
    %c184 = arith.constant 184 : index
    %102 = vector.load %arg10[%c0_74, %c184] : memref<4x768xf32, #tpu.memory_space<vmem>>, vector<4x512xf32>
    %c19 = arith.constant 19 : index
    %c0_75 = arith.constant 0 : index
    %103 = vector.load %arg8[%c19, %c0_75] : memref<27x512xf32, #tpu.memory_space<vmem>>, vector<1x512xf32>
    %104 = vector.broadcast %103 : vector<1x512xf32> to vector<4x512xf32>
    %105 = arith.mulf %102, %104 : vector<4x512xf32>
    %c76 = arith.constant 76 : index
    %c0_76 = arith.constant 0 : index
    %106 = vector.load %arg11[%c76, %c0_76] : memref<108x512xf32, #tpu.memory_space<vmem>>, vector<4x512xf32>
    tpu.vector_store %arg11[%c76, %c0_76], %105 {strides = array<i32>} : memref<108x512xf32, #tpu.memory_space<vmem>>, vector<4x512xf32>,
    %c0_77 = arith.constant 0 : index
    %c185 = arith.constant 185 : index
    %107 = vector.load %arg10[%c0_77, %c185] : memref<4x768xf32, #tpu.memory_space<vmem>>, vector<4x512xf32>
    %c20_78 = arith.constant 20 : index
    %c0_79 = arith.constant 0 : index
    %108 = vector.load %arg8[%c20_78, %c0_79] : memref<27x512xf32, #tpu.memory_space<vmem>>, vector<1x512xf32>
    %109 = vector.broadcast %108 : vector<1x512xf32> to vector<4x512xf32>
    %110 = arith.mulf %107, %109 : vector<4x512xf32>
    %c80 = arith.constant 80 : index
    %c0_80 = arith.constant 0 : index
    %111 = vector.load %arg11[%c80, %c0_80] : memref<108x512xf32, #tpu.memory_space<vmem>>, vector<4x512xf32>
    tpu.vector_store %arg11[%c80, %c0_80], %110 {strides = array<i32>} : memref<108x512xf32, #tpu.memory_space<vmem>>, vector<4x512xf32>,
    %c0_81 = arith.constant 0 : index
    %c191 = arith.constant 191 : index
    %112 = vector.load %arg10[%c0_81, %c191] : memref<4x768xf32, #tpu.memory_space<vmem>>, vector<4x512xf32>
    %c21 = arith.constant 21 : index
    %c0_82 = arith.constant 0 : index
    %113 = vector.load %arg8[%c21, %c0_82] : memref<27x512xf32, #tpu.memory_space<vmem>>, vector<1x512xf32>
    %114 = vector.broadcast %113 : vector<1x512xf32> to vector<4x512xf32>
    %115 = arith.mulf %112, %114 : vector<4x512xf32>
    %c84 = arith.constant 84 : index
    %c0_83 = arith.constant 0 : index
    %116 = vector.load %arg11[%c84, %c0_83] : memref<108x512xf32, #tpu.memory_space<vmem>>, vector<4x512xf32>
    tpu.vector_store %arg11[%c84, %c0_83], %115 {strides = array<i32>} : memref<108x512xf32, #tpu.memory_space<vmem>>, vector<4x512xf32>,
    %c0_84 = arith.constant 0 : index
    %c192 = arith.constant 192 : index
    %117 = vector.load %arg10[%c0_84, %c192] : memref<4x768xf32, #tpu.memory_space<vmem>>, vector<4x512xf32>
    %c22 = arith.constant 22 : index
    %c0_85 = arith.constant 0 : index
    %118 = vector.load %arg8[%c22, %c0_85] : memref<27x512xf32, #tpu.memory_space<vmem>>, vector<1x512xf32>
    %119 = vector.broadcast %118 : vector<1x512xf32> to vector<4x512xf32>
    %120 = arith.mulf %117, %119 : vector<4x512xf32>
    %c88 = arith.constant 88 : index
    %c0_86 = arith.constant 0 : index
    %121 = vector.load %arg11[%c88, %c0_86] : memref<108x512xf32, #tpu.memory_space<vmem>>, vector<4x512xf32>
    tpu.vector_store %arg11[%c88, %c0_86], %120 {strides = array<i32>} : memref<108x512xf32, #tpu.memory_space<vmem>>, vector<4x512xf32>,
    %c0_87 = arith.constant 0 : index
    %c193 = arith.constant 193 : index
    %122 = vector.load %arg10[%c0_87, %c193] : memref<4x768xf32, #tpu.memory_space<vmem>>, vector<4x512xf32>
    %c23 = arith.constant 23 : index
    %c0_88 = arith.constant 0 : index
    %123 = vector.load %arg8[%c23, %c0_88] : memref<27x512xf32, #tpu.memory_space<vmem>>, vector<1x512xf32>
    %124 = vector.broadcast %123 : vector<1x512xf32> to vector<4x512xf32>
    %125 = arith.mulf %122, %124 : vector<4x512xf32>
    %c92 = arith.constant 92 : index
    %c0_89 = arith.constant 0 : index
    %126 = vector.load %arg11[%c92, %c0_89] : memref<108x512xf32, #tpu.memory_space<vmem>>, vector<4x512xf32>
    tpu.vector_store %arg11[%c92, %c0_89], %125 {strides = array<i32>} : memref<108x512xf32, #tpu.memory_space<vmem>>, vector<4x512xf32>,
    %c0_90 = arith.constant 0 : index
    %c199 = arith.constant 199 : index
    %127 = vector.load %arg10[%c0_90, %c199] : memref<4x768xf32, #tpu.memory_space<vmem>>, vector<4x512xf32>
    %c24_91 = arith.constant 24 : index
    %c0_92 = arith.constant 0 : index
    %128 = vector.load %arg8[%c24_91, %c0_92] : memref<27x512xf32, #tpu.memory_space<vmem>>, vector<1x512xf32>
    %129 = vector.broadcast %128 : vector<1x512xf32> to vector<4x512xf32>
    %130 = arith.mulf %127, %129 : vector<4x512xf32>
    %c96 = arith.constant 96 : index
    %c0_93 = arith.constant 0 : index
    %131 = vector.load %arg11[%c96, %c0_93] : memref<108x512xf32, #tpu.memory_space<vmem>>, vector<4x512xf32>
    tpu.vector_store %arg11[%c96, %c0_93], %130 {strides = array<i32>} : memref<108x512xf32, #tpu.memory_space<vmem>>, vector<4x512xf32>,
    %c0_94 = arith.constant 0 : index
    %c200 = arith.constant 200 : index
    %132 = vector.load %arg10[%c0_94, %c200] : memref<4x768xf32, #tpu.memory_space<vmem>>, vector<4x512xf32>
    %c25 = arith.constant 25 : index
    %c0_95 = arith.constant 0 : index
    %133 = vector.load %arg8[%c25, %c0_95] : memref<27x512xf32, #tpu.memory_space<vmem>>, vector<1x512xf32>
    %134 = vector.broadcast %133 : vector<1x512xf32> to vector<4x512xf32>
    %135 = arith.mulf %132, %134 : vector<4x512xf32>
    %c100 = arith.constant 100 : index
    %c0_96 = arith.constant 0 : index
    %136 = vector.load %arg11[%c100, %c0_96] : memref<108x512xf32, #tpu.memory_space<vmem>>, vector<4x512xf32>
    tpu.vector_store %arg11[%c100, %c0_96], %135 {strides = array<i32>} : memref<108x512xf32, #tpu.memory_space<vmem>>, vector<4x512xf32>,
    %c0_97 = arith.constant 0 : index
    %c201 = arith.constant 201 : index
    %137 = vector.load %arg10[%c0_97, %c201] : memref<4x768xf32, #tpu.memory_space<vmem>>, vector<4x512xf32>
    %c26 = arith.constant 26 : index
    %c0_98 = arith.constant 0 : index
    %138 = vector.load %arg8[%c26, %c0_98] : memref<27x512xf32, #tpu.memory_space<vmem>>, vector<1x512xf32>
    %139 = vector.broadcast %138 : vector<1x512xf32> to vector<4x512xf32>
    %140 = arith.mulf %137, %139 : vector<4x512xf32>
    %c104 = arith.constant 104 : index
    %c0_99 = arith.constant 0 : index
    %141 = vector.load %arg11[%c104, %c0_99] : memref<108x512xf32, #tpu.memory_space<vmem>>, vector<4x512xf32>
    tpu.vector_store %arg11[%c104, %c0_99], %140 {strides = array<i32>} : memref<108x512xf32, #tpu.memory_space<vmem>>, vector<4x512xf32>,
    %c0_100 = arith.constant 0 : index
    %c0_101 = arith.constant 0 : index
    %142 = vector.load %arg2[%c0_100, %c0_101] : memref<4x108xf32, #tpu.memory_space<vmem>>, vector<4x108xf32>
    %c0_102 = arith.constant 0 : index
    %c0_103 = arith.constant 0 : index
    %143 = vector.load %arg11[%c0_102, %c0_103] : memref<108x512xf32, #tpu.memory_space<vmem>>, vector<108x512xf32>
    %cst_104 = arith.constant dense<0.000000e+00> : vector<4x512xf32>
    %144 = tpu.matmul %142, %143, %cst_104 {dimension_numbers = #tpu.dot_dimension_numbers<[1], [0], [0], [1], [0, 0, 1, 1], [], []>} : vector<4x108xf32>, vector<108x512xf32>, vector<4x512xf32> -> vector<4x512xf32>
    %c0_105 = arith.constant 0 : index
    %c0_106 = arith.constant 0 : index
    %145 = vector.load %arg4[%c0_105, %c0_106] : memref<4x1xf32, #tpu.memory_space<vmem>>, vector<4x1xf32>
    %146 = vector.broadcast %145 : vector<4x1xf32> to vector<4x512xf32>
    %147 = arith.mulf %144, %146 : vector<4x512xf32>
    %c0_107 = arith.constant 0 : index
    %c0_108 = arith.constant 0 : index
    %148 = vector.load %arg5[%c0_107, %c0_108] : memref<4x1xf32, #tpu.memory_space<vmem>>, vector<4x1xf32>
    %149 = vector.broadcast %148 : vector<4x1xf32> to vector<4x512xf32>
    %150 = arith.addf %147, %149 : vector<4x512xf32>
    %cst_109 = arith.constant 0.000000e+00 : f32
    %151 = vector.broadcast %cst_109 : f32 to vector<4x512xf32>
    %152 = arith.maximumf %150, %151 : vector<4x512xf32>
    %c0_110 = arith.constant 0 : index
    %c128_111 = arith.constant 128 : index
    %153 = vector.load %arg10[%c0_110, %c128_111] : memref<4x768xf32, #tpu.memory_space<vmem>>, vector<4x512xf32>
    tpu.vector_store %arg10[%c0_110, %c128_111], %152 {strides = array<i32>} : memref<4x768xf32, #tpu.memory_space<vmem>>, vector<4x512xf32>,
    %c0_112 = arith.constant 0 : index
    %c55_113 = arith.constant 55 : index
    %154 = vector.load %arg10[%c0_112, %c55_113] : memref<4x768xf32, #tpu.memory_space<vmem>>, vector<4x512xf32>
    %c0_114 = arith.constant 0 : index
    %c0_115 = arith.constant 0 : index
    %155 = vector.load %arg8[%c0_114, %c0_115] : memref<27x512xf32, #tpu.memory_space<vmem>>, vector<1x512xf32>
    %156 = vector.broadcast %155 : vector<1x512xf32> to vector<4x512xf32>
    %157 = arith.mulf %154, %156 : vector<4x512xf32>
    %c0_116 = arith.constant 0 : index
    %c0_117 = arith.constant 0 : index
    %158 = vector.load %arg11[%c0_116, %c0_117] : memref<108x512xf32, #tpu.memory_space<vmem>>, vector<4x512xf32>
    tpu.vector_store %arg11[%c0_116, %c0_117], %157 {strides = array<i32>} : memref<108x512xf32, #tpu.memory_space<vmem>>, vector<4x512xf32>,
    %c0_118 = arith.constant 0 : index
    %c56_119 = arith.constant 56 : index
    %159 = vector.load %arg10[%c0_118, %c56_119] : memref<4x768xf32, #tpu.memory_space<vmem>>, vector<4x512xf32>
    %c1_120 = arith.constant 1 : index
    %c0_121 = arith.constant 0 : index
    %160 = vector.load %arg8[%c1_120, %c0_121] : memref<27x512xf32, #tpu.memory_space<vmem>>, vector<1x512xf32>
    %161 = vector.broadcast %160 : vector<1x512xf32> to vector<4x512xf32>
    %162 = arith.mulf %159, %161 : vector<4x512xf32>
    %c4_122 = arith.constant 4 : index
    %c0_123 = arith.constant 0 : index
    %163 = vector.load %arg11[%c4_122, %c0_123] : memref<108x512xf32, #tpu.memory_space<vmem>>, vector<4x512xf32>
    tpu.vector_store %arg11[%c4_122, %c0_123], %162 {strides = array<i32>} : memref<108x512xf32, #tpu.memory_space<vmem>>, vector<4x512xf32>,
    %c0_124 = arith.constant 0 : index
    %c57_125 = arith.constant 57 : index
    %164 = vector.load %arg10[%c0_124, %c57_125] : memref<4x768xf32, #tpu.memory_space<vmem>>, vector<4x512xf32>
    %c2_126 = arith.constant 2 : index
    %c0_127 = arith.constant 0 : index
    %165 = vector.load %arg8[%c2_126, %c0_127] : memref<27x512xf32, #tpu.memory_space<vmem>>, vector<1x512xf32>
    %166 = vector.broadcast %165 : vector<1x512xf32> to vector<4x512xf32>
    %167 = arith.mulf %164, %166 : vector<4x512xf32>
    %c8_128 = arith.constant 8 : index
    %c0_129 = arith.constant 0 : index
    %168 = vector.load %arg11[%c8_128, %c0_129] : memref<108x512xf32, #tpu.memory_space<vmem>>, vector<4x512xf32>
    tpu.vector_store %arg11[%c8_128, %c0_129], %167 {strides = array<i32>} : memref<108x512xf32, #tpu.memory_space<vmem>>, vector<4x512xf32>,
    %c0_130 = arith.constant 0 : index
    %c63_131 = arith.constant 63 : index
    %169 = vector.load %arg10[%c0_130, %c63_131] : memref<4x768xf32, #tpu.memory_space<vmem>>, vector<4x512xf32>
    %c3_132 = arith.constant 3 : index
    %c0_133 = arith.constant 0 : index
    %170 = vector.load %arg8[%c3_132, %c0_133] : memref<27x512xf32, #tpu.memory_space<vmem>>, vector<1x512xf32>
    %171 = vector.broadcast %170 : vector<1x512xf32> to vector<4x512xf32>
    %172 = arith.mulf %169, %171 : vector<4x512xf32>
    %c12_134 = arith.constant 12 : index
    %c0_135 = arith.constant 0 : index
    %173 = vector.load %arg11[%c12_134, %c0_135] : memref<108x512xf32, #tpu.memory_space<vmem>>, vector<4x512xf32>
    tpu.vector_store %arg11[%c12_134, %c0_135], %172 {strides = array<i32>} : memref<108x512xf32, #tpu.memory_space<vmem>>, vector<4x512xf32>,
    %c0_136 = arith.constant 0 : index
    %c64_137 = arith.constant 64 : index
    %174 = vector.load %arg10[%c0_136, %c64_137] : memref<4x768xf32, #tpu.memory_space<vmem>>, vector<4x512xf32>
    %c4_138 = arith.constant 4 : index
    %c0_139 = arith.constant 0 : index
    %175 = vector.load %arg8[%c4_138, %c0_139] : memref<27x512xf32, #tpu.memory_space<vmem>>, vector<1x512xf32>
    %176 = vector.broadcast %175 : vector<1x512xf32> to vector<4x512xf32>
    %177 = arith.mulf %174, %176 : vector<4x512xf32>
    %c16_140 = arith.constant 16 : index
    %c0_141 = arith.constant 0 : index
    %178 = vector.load %arg11[%c16_140, %c0_141] : memref<108x512xf32, #tpu.memory_space<vmem>>, vector<4x512xf32>
    tpu.vector_store %arg11[%c16_140, %c0_141], %177 {strides = array<i32>} : memref<108x512xf32, #tpu.memory_space<vmem>>, vector<4x512xf32>,
    %c0_142 = arith.constant 0 : index
    %c65_143 = arith.constant 65 : index
    %179 = vector.load %arg10[%c0_142, %c65_143] : memref<4x768xf32, #tpu.memory_space<vmem>>, vector<4x512xf32>
    %c5_144 = arith.constant 5 : index
    %c0_145 = arith.constant 0 : index
    %180 = vector.load %arg8[%c5_144, %c0_145] : memref<27x512xf32, #tpu.memory_space<vmem>>, vector<1x512xf32>
    %181 = vector.broadcast %180 : vector<1x512xf32> to vector<4x512xf32>
    %182 = arith.mulf %179, %181 : vector<4x512xf32>
    %c20_146 = arith.constant 20 : index
    %c0_147 = arith.constant 0 : index
    %183 = vector.load %arg11[%c20_146, %c0_147] : memref<108x512xf32, #tpu.memory_space<vmem>>, vector<4x512xf32>
    tpu.vector_store %arg11[%c20_146, %c0_147], %182 {strides = array<i32>} : memref<108x512xf32, #tpu.memory_space<vmem>>, vector<4x512xf32>,
    %c0_148 = arith.constant 0 : index
    %c71_149 = arith.constant 71 : index
    %184 = vector.load %arg10[%c0_148, %c71_149] : memref<4x768xf32, #tpu.memory_space<vmem>>, vector<4x512xf32>
    %c6_150 = arith.constant 6 : index
    %c0_151 = arith.constant 0 : index
    %185 = vector.load %arg8[%c6_150, %c0_151] : memref<27x512xf32, #tpu.memory_space<vmem>>, vector<1x512xf32>
    %186 = vector.broadcast %185 : vector<1x512xf32> to vector<4x512xf32>
    %187 = arith.mulf %184, %186 : vector<4x512xf32>
    %c24_152 = arith.constant 24 : index
    %c0_153 = arith.constant 0 : index
    %188 = vector.load %arg11[%c24_152, %c0_153] : memref<108x512xf32, #tpu.memory_space<vmem>>, vector<4x512xf32>
    tpu.vector_store %arg11[%c24_152, %c0_153], %187 {strides = array<i32>} : memref<108x512xf32, #tpu.memory_space<vmem>>, vector<4x512xf32>,
    %c0_154 = arith.constant 0 : index
    %c72_155 = arith.constant 72 : index
    %189 = vector.load %arg10[%c0_154, %c72_155] : memref<4x768xf32, #tpu.memory_space<vmem>>, vector<4x512xf32>
    %c7_156 = arith.constant 7 : index
    %c0_157 = arith.constant 0 : index
    %190 = vector.load %arg8[%c7_156, %c0_157] : memref<27x512xf32, #tpu.memory_space<vmem>>, vector<1x512xf32>
    %191 = vector.broadcast %190 : vector<1x512xf32> to vector<4x512xf32>
    %192 = arith.mulf %189, %191 : vector<4x512xf32>
    %c28_158 = arith.constant 28 : index
    %c0_159 = arith.constant 0 : index
    %193 = vector.load %arg11[%c28_158, %c0_159] : memref<108x512xf32, #tpu.memory_space<vmem>>, vector<4x512xf32>
    tpu.vector_store %arg11[%c28_158, %c0_159], %192 {strides = array<i32>} : memref<108x512xf32, #tpu.memory_space<vmem>>, vector<4x512xf32>,
    %c0_160 = arith.constant 0 : index
    %c73_161 = arith.constant 73 : index
    %194 = vector.load %arg10[%c0_160, %c73_161] : memref<4x768xf32, #tpu.memory_space<vmem>>, vector<4x512xf32>
    %c8_162 = arith.constant 8 : index
    %c0_163 = arith.constant 0 : index
    %195 = vector.load %arg8[%c8_162, %c0_163] : memref<27x512xf32, #tpu.memory_space<vmem>>, vector<1x512xf32>
    %196 = vector.broadcast %195 : vector<1x512xf32> to vector<4x512xf32>
    %197 = arith.mulf %194, %196 : vector<4x512xf32>
    %c32_164 = arith.constant 32 : index
    %c0_165 = arith.constant 0 : index
    %198 = vector.load %arg11[%c32_164, %c0_165] : memref<108x512xf32, #tpu.memory_space<vmem>>, vector<4x512xf32>
    tpu.vector_store %arg11[%c32_164, %c0_165], %197 {strides = array<i32>} : memref<108x512xf32, #tpu.memory_space<vmem>>, vector<4x512xf32>,
    %c0_166 = arith.constant 0 : index
    %c119_167 = arith.constant 119 : index
    %199 = vector.load %arg10[%c0_166, %c119_167] : memref<4x768xf32, #tpu.memory_space<vmem>>, vector<4x512xf32>
    %c9_168 = arith.constant 9 : index
    %c0_169 = arith.constant 0 : index
    %200 = vector.load %arg8[%c9_168, %c0_169] : memref<27x512xf32, #tpu.memory_space<vmem>>, vector<1x512xf32>
    %201 = vector.broadcast %200 : vector<1x512xf32> to vector<4x512xf32>
    %202 = arith.mulf %199, %201 : vector<4x512xf32>
    %c36_170 = arith.constant 36 : index
    %c0_171 = arith.constant 0 : index
    %203 = vector.load %arg11[%c36_170, %c0_171] : memref<108x512xf32, #tpu.memory_space<vmem>>, vector<4x512xf32>
    tpu.vector_store %arg11[%c36_170, %c0_171], %202 {strides = array<i32>} : memref<108x512xf32, #tpu.memory_space<vmem>>, vector<4x512xf32>,
    %c0_172 = arith.constant 0 : index
    %c120_173 = arith.constant 120 : index
    %204 = vector.load %arg10[%c0_172, %c120_173] : memref<4x768xf32, #tpu.memory_space<vmem>>, vector<4x512xf32>
    %c10_174 = arith.constant 10 : index
    %c0_175 = arith.constant 0 : index
    %205 = vector.load %arg8[%c10_174, %c0_175] : memref<27x512xf32, #tpu.memory_space<vmem>>, vector<1x512xf32>
    %206 = vector.broadcast %205 : vector<1x512xf32> to vector<4x512xf32>
    %207 = arith.mulf %204, %206 : vector<4x512xf32>
    %c40_176 = arith.constant 40 : index
    %c0_177 = arith.constant 0 : index
    %208 = vector.load %arg11[%c40_176, %c0_177] : memref<108x512xf32, #tpu.memory_space<vmem>>, vector<4x512xf32>
    tpu.vector_store %arg11[%c40_176, %c0_177], %207 {strides = array<i32>} : memref<108x512xf32, #tpu.memory_space<vmem>>, vector<4x512xf32>,
    %c0_178 = arith.constant 0 : index
    %c121_179 = arith.constant 121 : index
    %209 = vector.load %arg10[%c0_178, %c121_179] : memref<4x768xf32, #tpu.memory_space<vmem>>, vector<4x512xf32>
    %c11_180 = arith.constant 11 : index
    %c0_181 = arith.constant 0 : index
    %210 = vector.load %arg8[%c11_180, %c0_181] : memref<27x512xf32, #tpu.memory_space<vmem>>, vector<1x512xf32>
    %211 = vector.broadcast %210 : vector<1x512xf32> to vector<4x512xf32>
    %212 = arith.mulf %209, %211 : vector<4x512xf32>
    %c44_182 = arith.constant 44 : index
    %c0_183 = arith.constant 0 : index
    %213 = vector.load %arg11[%c44_182, %c0_183] : memref<108x512xf32, #tpu.memory_space<vmem>>, vector<4x512xf32>
    tpu.vector_store %arg11[%c44_182, %c0_183], %212 {strides = array<i32>} : memref<108x512xf32, #tpu.memory_space<vmem>>, vector<4x512xf32>,
    %c0_184 = arith.constant 0 : index
    %c127_185 = arith.constant 127 : index
    %214 = vector.load %arg10[%c0_184, %c127_185] : memref<4x768xf32, #tpu.memory_space<vmem>>, vector<4x512xf32>
    %c12_186 = arith.constant 12 : index
    %c0_187 = arith.constant 0 : index
    %215 = vector.load %arg8[%c12_186, %c0_187] : memref<27x512xf32, #tpu.memory_space<vmem>>, vector<1x512xf32>
    %216 = vector.broadcast %215 : vector<1x512xf32> to vector<4x512xf32>
    %217 = arith.mulf %214, %216 : vector<4x512xf32>
    %c48_188 = arith.constant 48 : index
    %c0_189 = arith.constant 0 : index
    %218 = vector.load %arg11[%c48_188, %c0_189] : memref<108x512xf32, #tpu.memory_space<vmem>>, vector<4x512xf32>
    tpu.vector_store %arg11[%c48_188, %c0_189], %217 {strides = array<i32>} : memref<108x512xf32, #tpu.memory_space<vmem>>, vector<4x512xf32>,
    %c0_190 = arith.constant 0 : index
    %c128_191 = arith.constant 128 : index
    %219 = vector.load %arg10[%c0_190, %c128_191] : memref<4x768xf32, #tpu.memory_space<vmem>>, vector<4x512xf32>
    %c13_192 = arith.constant 13 : index
    %c0_193 = arith.constant 0 : index
    %220 = vector.load %arg8[%c13_192, %c0_193] : memref<27x512xf32, #tpu.memory_space<vmem>>, vector<1x512xf32>
    %221 = vector.broadcast %220 : vector<1x512xf32> to vector<4x512xf32>
    %222 = arith.mulf %219, %221 : vector<4x512xf32>
    %c52_194 = arith.constant 52 : index
    %c0_195 = arith.constant 0 : index
    %223 = vector.load %arg11[%c52_194, %c0_195] : memref<108x512xf32, #tpu.memory_space<vmem>>, vector<4x512xf32>
    tpu.vector_store %arg11[%c52_194, %c0_195], %222 {strides = array<i32>} : memref<108x512xf32, #tpu.memory_space<vmem>>, vector<4x512xf32>,
    %c0_196 = arith.constant 0 : index
    %c129_197 = arith.constant 129 : index
    %224 = vector.load %arg10[%c0_196, %c129_197] : memref<4x768xf32, #tpu.memory_space<vmem>>, vector<4x512xf32>
    %c14_198 = arith.constant 14 : index
    %c0_199 = arith.constant 0 : index
    %225 = vector.load %arg8[%c14_198, %c0_199] : memref<27x512xf32, #tpu.memory_space<vmem>>, vector<1x512xf32>
    %226 = vector.broadcast %225 : vector<1x512xf32> to vector<4x512xf32>
    %227 = arith.mulf %224, %226 : vector<4x512xf32>
    %c56_200 = arith.constant 56 : index
    %c0_201 = arith.constant 0 : index
    %228 = vector.load %arg11[%c56_200, %c0_201] : memref<108x512xf32, #tpu.memory_space<vmem>>, vector<4x512xf32>
    tpu.vector_store %arg11[%c56_200, %c0_201], %227 {strides = array<i32>} : memref<108x512xf32, #tpu.memory_space<vmem>>, vector<4x512xf32>,
    %c0_202 = arith.constant 0 : index
    %c135_203 = arith.constant 135 : index
    %229 = vector.load %arg10[%c0_202, %c135_203] : memref<4x768xf32, #tpu.memory_space<vmem>>, vector<4x512xf32>
    %c15_204 = arith.constant 15 : index
    %c0_205 = arith.constant 0 : index
    %230 = vector.load %arg8[%c15_204, %c0_205] : memref<27x512xf32, #tpu.memory_space<vmem>>, vector<1x512xf32>
    %231 = vector.broadcast %230 : vector<1x512xf32> to vector<4x512xf32>
    %232 = arith.mulf %229, %231 : vector<4x512xf32>
    %c60_206 = arith.constant 60 : index
    %c0_207 = arith.constant 0 : index
    %233 = vector.load %arg11[%c60_206, %c0_207] : memref<108x512xf32, #tpu.memory_space<vmem>>, vector<4x512xf32>
    tpu.vector_store %arg11[%c60_206, %c0_207], %232 {strides = array<i32>} : memref<108x512xf32, #tpu.memory_space<vmem>>, vector<4x512xf32>,
    %c0_208 = arith.constant 0 : index
    %c136_209 = arith.constant 136 : index
    %234 = vector.load %arg10[%c0_208, %c136_209] : memref<4x768xf32, #tpu.memory_space<vmem>>, vector<4x512xf32>
    %c16_210 = arith.constant 16 : index
    %c0_211 = arith.constant 0 : index
    %235 = vector.load %arg8[%c16_210, %c0_211] : memref<27x512xf32, #tpu.memory_space<vmem>>, vector<1x512xf32>
    %236 = vector.broadcast %235 : vector<1x512xf32> to vector<4x512xf32>
    %237 = arith.mulf %234, %236 : vector<4x512xf32>
    %c64_212 = arith.constant 64 : index
    %c0_213 = arith.constant 0 : index
    %238 = vector.load %arg11[%c64_212, %c0_213] : memref<108x512xf32, #tpu.memory_space<vmem>>, vector<4x512xf32>
    tpu.vector_store %arg11[%c64_212, %c0_213], %237 {strides = array<i32>} : memref<108x512xf32, #tpu.memory_space<vmem>>, vector<4x512xf32>,
    %c0_214 = arith.constant 0 : index
    %c137_215 = arith.constant 137 : index
    %239 = vector.load %arg10[%c0_214, %c137_215] : memref<4x768xf32, #tpu.memory_space<vmem>>, vector<4x512xf32>
    %c17_216 = arith.constant 17 : index
    %c0_217 = arith.constant 0 : index
    %240 = vector.load %arg8[%c17_216, %c0_217] : memref<27x512xf32, #tpu.memory_space<vmem>>, vector<1x512xf32>
    %241 = vector.broadcast %240 : vector<1x512xf32> to vector<4x512xf32>
    %242 = arith.mulf %239, %241 : vector<4x512xf32>
    %c68_218 = arith.constant 68 : index
    %c0_219 = arith.constant 0 : index
    %243 = vector.load %arg11[%c68_218, %c0_219] : memref<108x512xf32, #tpu.memory_space<vmem>>, vector<4x512xf32>
    tpu.vector_store %arg11[%c68_218, %c0_219], %242 {strides = array<i32>} : memref<108x512xf32, #tpu.memory_space<vmem>>, vector<4x512xf32>,
    %c0_220 = arith.constant 0 : index
    %c183_221 = arith.constant 183 : index
    %244 = vector.load %arg10[%c0_220, %c183_221] : memref<4x768xf32, #tpu.memory_space<vmem>>, vector<4x512xf32>
    %c18_222 = arith.constant 18 : index
    %c0_223 = arith.constant 0 : index
    %245 = vector.load %arg8[%c18_222, %c0_223] : memref<27x512xf32, #tpu.memory_space<vmem>>, vector<1x512xf32>
    %246 = vector.broadcast %245 : vector<1x512xf32> to vector<4x512xf32>
    %247 = arith.mulf %244, %246 : vector<4x512xf32>
    %c72_224 = arith.constant 72 : index
    %c0_225 = arith.constant 0 : index
    %248 = vector.load %arg11[%c72_224, %c0_225] : memref<108x512xf32, #tpu.memory_space<vmem>>, vector<4x512xf32>
    tpu.vector_store %arg11[%c72_224, %c0_225], %247 {strides = array<i32>} : memref<108x512xf32, #tpu.memory_space<vmem>>, vector<4x512xf32>,
    %c0_226 = arith.constant 0 : index
    %c184_227 = arith.constant 184 : index
    %249 = vector.load %arg10[%c0_226, %c184_227] : memref<4x768xf32, #tpu.memory_space<vmem>>, vector<4x512xf32>
    %c19_228 = arith.constant 19 : index
    %c0_229 = arith.constant 0 : index
    %250 = vector.load %arg8[%c19_228, %c0_229] : memref<27x512xf32, #tpu.memory_space<vmem>>, vector<1x512xf32>
    %251 = vector.broadcast %250 : vector<1x512xf32> to vector<4x512xf32>
    %252 = arith.mulf %249, %251 : vector<4x512xf32>
    %c76_230 = arith.constant 76 : index
    %c0_231 = arith.constant 0 : index
    %253 = vector.load %arg11[%c76_230, %c0_231] : memref<108x512xf32, #tpu.memory_space<vmem>>, vector<4x512xf32>
    tpu.vector_store %arg11[%c76_230, %c0_231], %252 {strides = array<i32>} : memref<108x512xf32, #tpu.memory_space<vmem>>, vector<4x512xf32>,
    %c0_232 = arith.constant 0 : index
    %c185_233 = arith.constant 185 : index
    %254 = vector.load %arg10[%c0_232, %c185_233] : memref<4x768xf32, #tpu.memory_space<vmem>>, vector<4x512xf32>
    %c20_234 = arith.constant 20 : index
    %c0_235 = arith.constant 0 : index
    %255 = vector.load %arg8[%c20_234, %c0_235] : memref<27x512xf32, #tpu.memory_space<vmem>>, vector<1x512xf32>
    %256 = vector.broadcast %255 : vector<1x512xf32> to vector<4x512xf32>
    %257 = arith.mulf %254, %256 : vector<4x512xf32>
    %c80_236 = arith.constant 80 : index
    %c0_237 = arith.constant 0 : index
    %258 = vector.load %arg11[%c80_236, %c0_237] : memref<108x512xf32, #tpu.memory_space<vmem>>, vector<4x512xf32>
    tpu.vector_store %arg11[%c80_236, %c0_237], %257 {strides = array<i32>} : memref<108x512xf32, #tpu.memory_space<vmem>>, vector<4x512xf32>,
    %c0_238 = arith.constant 0 : index
    %c191_239 = arith.constant 191 : index
    %259 = vector.load %arg10[%c0_238, %c191_239] : memref<4x768xf32, #tpu.memory_space<vmem>>, vector<4x512xf32>
    %c21_240 = arith.constant 21 : index
    %c0_241 = arith.constant 0 : index
    %260 = vector.load %arg8[%c21_240, %c0_241] : memref<27x512xf32, #tpu.memory_space<vmem>>, vector<1x512xf32>
    %261 = vector.broadcast %260 : vector<1x512xf32> to vector<4x512xf32>
    %262 = arith.mulf %259, %261 : vector<4x512xf32>
    %c84_242 = arith.constant 84 : index
    %c0_243 = arith.constant 0 : index
    %263 = vector.load %arg11[%c84_242, %c0_243] : memref<108x512xf32, #tpu.memory_space<vmem>>, vector<4x512xf32>
    tpu.vector_store %arg11[%c84_242, %c0_243], %262 {strides = array<i32>} : memref<108x512xf32, #tpu.memory_space<vmem>>, vector<4x512xf32>,
    %c0_244 = arith.constant 0 : index
    %c192_245 = arith.constant 192 : index
    %264 = vector.load %arg10[%c0_244, %c192_245] : memref<4x768xf32, #tpu.memory_space<vmem>>, vector<4x512xf32>
    %c22_246 = arith.constant 22 : index
    %c0_247 = arith.constant 0 : index
    %265 = vector.load %arg8[%c22_246, %c0_247] : memref<27x512xf32, #tpu.memory_space<vmem>>, vector<1x512xf32>
    %266 = vector.broadcast %265 : vector<1x512xf32> to vector<4x512xf32>
    %267 = arith.mulf %264, %266 : vector<4x512xf32>
    %c88_248 = arith.constant 88 : index
    %c0_249 = arith.constant 0 : index
    %268 = vector.load %arg11[%c88_248, %c0_249] : memref<108x512xf32, #tpu.memory_space<vmem>>, vector<4x512xf32>
    tpu.vector_store %arg11[%c88_248, %c0_249], %267 {strides = array<i32>} : memref<108x512xf32, #tpu.memory_space<vmem>>, vector<4x512xf32>,
    %c0_250 = arith.constant 0 : index
    %c193_251 = arith.constant 193 : index
    %269 = vector.load %arg10[%c0_250, %c193_251] : memref<4x768xf32, #tpu.memory_space<vmem>>, vector<4x512xf32>
    %c23_252 = arith.constant 23 : index
    %c0_253 = arith.constant 0 : index
    %270 = vector.load %arg8[%c23_252, %c0_253] : memref<27x512xf32, #tpu.memory_space<vmem>>, vector<1x512xf32>
    %271 = vector.broadcast %270 : vector<1x512xf32> to vector<4x512xf32>
    %272 = arith.mulf %269, %271 : vector<4x512xf32>
    %c92_254 = arith.constant 92 : index
    %c0_255 = arith.constant 0 : index
    %273 = vector.load %arg11[%c92_254, %c0_255] : memref<108x512xf32, #tpu.memory_space<vmem>>, vector<4x512xf32>
    tpu.vector_store %arg11[%c92_254, %c0_255], %272 {strides = array<i32>} : memref<108x512xf32, #tpu.memory_space<vmem>>, vector<4x512xf32>,
    %c0_256 = arith.constant 0 : index
    %c199_257 = arith.constant 199 : index
    %274 = vector.load %arg10[%c0_256, %c199_257] : memref<4x768xf32, #tpu.memory_space<vmem>>, vector<4x512xf32>
    %c24_258 = arith.constant 24 : index
    %c0_259 = arith.constant 0 : index
    %275 = vector.load %arg8[%c24_258, %c0_259] : memref<27x512xf32, #tpu.memory_space<vmem>>, vector<1x512xf32>
    %276 = vector.broadcast %275 : vector<1x512xf32> to vector<4x512xf32>
    %277 = arith.mulf %274, %276 : vector<4x512xf32>
    %c96_260 = arith.constant 96 : index
    %c0_261 = arith.constant 0 : index
    %278 = vector.load %arg11[%c96_260, %c0_261] : memref<108x512xf32, #tpu.memory_space<vmem>>, vector<4x512xf32>
    tpu.vector_store %arg11[%c96_260, %c0_261], %277 {strides = array<i32>} : memref<108x512xf32, #tpu.memory_space<vmem>>, vector<4x512xf32>,
    %c0_262 = arith.constant 0 : index
    %c200_263 = arith.constant 200 : index
    %279 = vector.load %arg10[%c0_262, %c200_263] : memref<4x768xf32, #tpu.memory_space<vmem>>, vector<4x512xf32>
    %c25_264 = arith.constant 25 : index
    %c0_265 = arith.constant 0 : index
    %280 = vector.load %arg8[%c25_264, %c0_265] : memref<27x512xf32, #tpu.memory_space<vmem>>, vector<1x512xf32>
    %281 = vector.broadcast %280 : vector<1x512xf32> to vector<4x512xf32>
    %282 = arith.mulf %279, %281 : vector<4x512xf32>
    %c100_266 = arith.constant 100 : index
    %c0_267 = arith.constant 0 : index
    %283 = vector.load %arg11[%c100_266, %c0_267] : memref<108x512xf32, #tpu.memory_space<vmem>>, vector<4x512xf32>
    tpu.vector_store %arg11[%c100_266, %c0_267], %282 {strides = array<i32>} : memref<108x512xf32, #tpu.memory_space<vmem>>, vector<4x512xf32>,
    %c0_268 = arith.constant 0 : index
    %c201_269 = arith.constant 201 : index
    %284 = vector.load %arg10[%c0_268, %c201_269] : memref<4x768xf32, #tpu.memory_space<vmem>>, vector<4x512xf32>
    %c26_270 = arith.constant 26 : index
    %c0_271 = arith.constant 0 : index
    %285 = vector.load %arg8[%c26_270, %c0_271] : memref<27x512xf32, #tpu.memory_space<vmem>>, vector<1x512xf32>
    %286 = vector.broadcast %285 : vector<1x512xf32> to vector<4x512xf32>
    %287 = arith.mulf %284, %286 : vector<4x512xf32>
    %c104_272 = arith.constant 104 : index
    %c0_273 = arith.constant 0 : index
    %288 = vector.load %arg11[%c104_272, %c0_273] : memref<108x512xf32, #tpu.memory_space<vmem>>, vector<4x512xf32>
    tpu.vector_store %arg11[%c104_272, %c0_273], %287 {strides = array<i32>} : memref<108x512xf32, #tpu.memory_space<vmem>>, vector<4x512xf32>,
    %c0_274 = arith.constant 0 : index
    %c0_275 = arith.constant 0 : index
    %289 = vector.load %arg3[%c0_274, %c0_275] : memref<4x108xf32, #tpu.memory_space<vmem>>, vector<4x108xf32>
    %c0_276 = arith.constant 0 : index
    %c0_277 = arith.constant 0 : index
    %290 = vector.load %arg11[%c0_276, %c0_277] : memref<108x512xf32, #tpu.memory_space<vmem>>, vector<108x512xf32>
    %cst_278 = arith.constant dense<0.000000e+00> : vector<4x512xf32>
    %291 = tpu.matmul %289, %290, %cst_278 {dimension_numbers = #tpu.dot_dimension_numbers<[1], [0], [0], [1], [0, 0, 1, 1], [], []>} : vector<4x108xf32>, vector<108x512xf32>, vector<4x512xf32> -> vector<4x512xf32>
    %c0_279 = arith.constant 0 : index
    %c0_280 = arith.constant 0 : index
    %292 = vector.load %arg6[%c0_279, %c0_280] : memref<4x1xf32, #tpu.memory_space<vmem>>, vector<4x1xf32>
    %293 = vector.broadcast %292 : vector<4x1xf32> to vector<4x512xf32>
    %294 = arith.mulf %291, %293 : vector<4x512xf32>
    %c0_281 = arith.constant 0 : index
    %c0_282 = arith.constant 0 : index
    %295 = vector.load %arg7[%c0_281, %c0_282] : memref<4x1xf32, #tpu.memory_space<vmem>>, vector<4x1xf32>
    %296 = vector.broadcast %295 : vector<4x1xf32> to vector<4x512xf32>
    %297 = arith.addf %294, %296 : vector<4x512xf32>
    %298 = arith.addf %5, %297 : vector<4x512xf32>
    %cst_283 = arith.constant 0.000000e+00 : f32
    %299 = vector.broadcast %cst_283 : f32 to vector<4x512xf32>
    %300 = arith.maximumf %298, %299 : vector<4x512xf32>
    %c0_284 = arith.constant 0 : index
    %c0_285 = arith.constant 0 : index
    %c0_286 = arith.constant 0 : index
    %301 = vector.load %arg9[%c0_284, %c0_285, %c0_286] : memref<1x4x512xf32, #tpu.memory_space<vmem>>, vector<1x4x512xf32>
    %302 = vector.shape_cast %301 : vector<1x4x512xf32> to vector<4x512xf32>
    %303 = vector.shape_cast %300 : vector<4x512xf32> to vector<1x4x512xf32>
    tpu.vector_store %arg9[%c0_284, %c0_285, %c0_286], %303 {strides = array<i32>} : memref<1x4x512xf32, #tpu.memory_space<vmem>>, vector<1x4x512xf32>,
    return
  }
  func.func @transform_0(%arg0: i32) -> (i32, i32, i32) {
    %c0_i32 = arith.constant 0 : i32
    %c0_i32_0 = arith.constant 0 : i32
    %c0_i32_1 = arith.constant 0 : i32
    return %arg0, %c0_i32, %c0_i32_0 : i32, i32, i32
  }
  func.func @transform_1(%arg0: i32) -> (i32, i32) {
    %c0_i32 = arith.constant 0 : i32
    %c0_i32_0 = arith.constant 0 : i32
    %c0_i32_1 = arith.constant 0 : i32
    return %c0_i32, %c0_i32_0 : i32, i32
  }
  func.func @transform_2(%arg0: i32) -> (i32, i32) {
    %c0_i32 = arith.constant 0 : i32
    %c0_i32_0 = arith.constant 0 : i32
    %c0_i32_1 = arith.constant 0 : i32
    return %c0_i32, %c0_i32_0 : i32, i32
  }
  func.func @transform_3(%arg0: i32) -> (i32, i32) {
    %c0_i32 = arith.constant 0 : i32
    %c0_i32_0 = arith.constant 0 : i32
    %c0_i32_1 = arith.constant 0 : i32
    return %c0_i32, %c0_i32_0 : i32, i32
  }
  func.func @transform_4(%arg0: i32) -> (i32, i32) {
    %c0_i32 = arith.constant 0 : i32
    %c0_i32_0 = arith.constant 0 : i32
    %c0_i32_1 = arith.constant 0 : i32
    return %c0_i32, %c0_i32_0 : i32, i32
  }
  func.func @transform_5(%arg0: i32) -> (i32, i32) {
    %c0_i32 = arith.constant 0 : i32
    %c0_i32_0 = arith.constant 0 : i32
    %c0_i32_1 = arith.constant 0 : i32
    return %c0_i32, %c0_i32_0 : i32, i32
  }
  func.func @transform_6(%arg0: i32) -> (i32, i32) {
    %c0_i32 = arith.constant 0 : i32
    %c0_i32_0 = arith.constant 0 : i32
    %c0_i32_1 = arith.constant 0 : i32
    return %c0_i32, %c0_i32_0 : i32, i32
  }
  func.func @transform_7(%arg0: i32) -> (i32, i32) {
    %c0_i32 = arith.constant 0 : i32
    %c0_i32_0 = arith.constant 0 : i32
    %c0_i32_1 = arith.constant 0 : i32
    return %c0_i32, %c0_i32_0 : i32, i32
  }
  func.func @transform_8(%arg0: i32) -> (i32, i32, i32) {
    %c0_i32 = arith.constant 0 : i32
    %c0_i32_0 = arith.constant 0 : i32
    %c0_i32_1 = arith.constant 0 : i32
    return %arg0, %c0_i32, %c0_i32_0 : i32, i32, i32
  }
}

</mosaic_0001>

<bundles_post_ra>
// kernel: tpu_custom_call.1
= control target key start
LH: loop header
LB: loop body
LE: loop exit
PB: predicated region body
PF: predicated region fallthrough
CT: control target
= control target key end

     0   :  { %s6856_s0 = inlined_call_operand.hbm [shape: f32[2,4,512], index: 0, kind: input, shape index: {}]   ;;  %s6857_s1 = inlined_call_operand.vmem [shape: f32[4,108], index: 1, kind: input, shape index: {}]   ;;  %s6858_s2 = inlined_call_operand.vmem [shape: f32[4,108], index: 2, kind: input, shape index: {}]   ;;  %s6859_s3 = inlined_call_operand.vmem [shape: f32[4,1], index: 3, kind: input, shape index: {}]   ;;  %s6860_s4 = inlined_call_operand.vmem [shape: f32[4,1], index: 4, kind: input, shape index: {}]   ;;  %s6861_s5 = inlined_call_operand.vmem [shape: f32[4,1], index: 5, kind: input, shape index: {}]   ;;  %s6862_s6 = inlined_call_operand.vmem [shape: f32[4,1], index: 6, kind: input, shape index: {}]   ;;  %s6863_s7 = inlined_call_operand.hbm [shape: f32[27,512], index: 7, kind: input, shape index: {}]   ;;  %s6864_s8 = inlined_call_operand.hbm [shape: f32[2,4,512], index: 8, kind: output, shape index: {}]  }
   0x1   :  { %6899 = sst [smem:[#allocation15_spill]] %s6863_s7 }
   0x2   :  { %13 = vsyncpa [#allocation5], 0 }
   0x3   :  { %15 = vsyncpa [#allocation5 + $0x1], 0 }
   0x4   :  { %16 = vsyncpa [#allocation8], 0 }
   0x5   :  { %17 = vsyncpa [#allocation6], 0 }
   0x6   :  { %19 = vsyncpa [#allocation6 + $0x1], 0  ;;  %s4764_s27 = smov 0   ;;  %s4766_s28 = smov 0  }
   0x7   :  { %s4768_s29 = smov 0   ;;  %s4770_s30 = smov 0  }
   0x8 LB: > { %s4785_s9 = sadd.s32 4294967295, %s4693_s30   ;;  %s4455_s10 = sadd.s32 4294967294, %s4693_s30   ;;  %s4693_s30 = sphi %s4770_s30, %s6971_s30   ;;  %s4689_s29 = sphi %s4768_s29, %s6975_s29   ;;  %s4685_s28 = sphi %s4766_s28, %s6974_s28   ;;  %s4681_s27 = sphi %s4764_s27, %s6973_s27  }
   0x9   : > { %p45_p0 = scmp.ne.s32.totalorder %s4685_s28, %s4681_s27  ;;  %p6867_p1 = scmp.eq.s32.totalorder %s4785_s9, 0 }
   0xa   : > { %p222_p3 = scmp.eq.s32.totalorder %s4455_s10, 1  ;;  %p4456_p5 = scmp.ge.s32.totalorder %s4693_s30, 1 }
   0xb   : > { %p4794_p4 = por %p6867_p1, %p45_p0  ;;  %p229_p7 = scmp.lt.s32.totalorder %s4693_s30, 3 }
   0xc   : > { %p4799_p6 = por %p222_p3, %p45_p0  ;;  %s4695_s14 = smov [#allocation7]  }
   0xd   : > { %s6900_s11 = scalar_select %p4794_p4, 1, 0 }
   0xe   : > { %s6901_s12 = scalar_select %p4799_p6, 1, 0 }
   0xf   : > { %p4804_p8 = pnand %p4456_p5, %p229_p7  ;;  %s259_s15 = sshll.u32 %s4695_s14, 4  ;;  %s260_s15 = int_to_ptr.vmem [resolvable:$true] %s259_s15 }
  0x10   : > { %s4818_s17 = sadd.s32 1, %s4693_s30   ;;  %s32_s18 = sadd.s32 1, %s4689_s29 }
  0x11   : > { %s6902_s13 = scalar_select %p4804_p8, 1, 0 }
  0x12   : > { %p4493_p9 = pneg %p4804_p8  ;;  %6904 = sst [smem:[#allocation13_spill]] %s4818_s17 }
  0x13   : > { %s29_s19 = ssub.s32 %s4693_s30, %s4818_s17  ;;  %s4582_s20 = scalar_lea.vmem %s260_s15, 2048 }
  0x14   : > { %p4813_p11 = pnand %p4493_p9, %p6867_p1  ;;  %p4583_p13 = scmp.ne.s32.totalorder %s260_s15, %s4582_s20 }
  0x15   : > { %p4590_p5 = scmp.lt.s32.totalorder %s260_s15, %s260_s15  ;;  %p4591_p7 = scmp.lt.s32.totalorder %s4582_s20, %s4582_s20 }
  0x16   : > { %p4573_p12 = pneg %p4813_p11 }
  0x17   : > { %p4592_p10 = por %p4591_p7, %p4590_p5 }
  0x18   : > { %p4585_p0 = pnand %p4583_p13, %p4573_p12 }
  0x1a   : > { %p4586_p3 = pneg %p4585_p0 }
  0x1c   : > { %p4593_p2 = pnand %p4592_p10, %p4586_p3 }
  0x1e   : > { %4596 = shalt.err (!%p4593_p2)
}
  0x1f   : > { %s4696_s21 = smov 512   ;;  %s4697_s22 = smov 32  }
  0x20   : > { %s6905_s7 = sld [smem:[#allocation15_spill]]  ;;  %p30_p9 = scmp.eq.s32.totalorder %s29_s19, 0 }
  0x21   : > { %p39_p12 = scmp.ne.s32.totalorder %s4689_s29, %s4685_s28  ;;  %p40_p10 = scmp.eq.s32.totalorder %s4693_s30, 0 }
  0x22   : > { %p4506_p2 = scmp.lt.s32.totalorder %s4693_s30, 2  ;;  %p6907_p0 = scmp.eq.s32.totalorder %s4785_s9, 1 }
  0x23   : > { %s4835_s25 = scalar_select %p30_p9, %s4689_s29, %s32_s18  }
  0x24   : > { %p41_p13 = por %p40_p10, %p39_p12  ;;  %p4839_p3 = por %p6907_p0, %p39_p12 }
  0x25   : > { %6906 = sst [smem:[#allocation14_spill]] %s4835_s25  ;;  %s273_s10 = sand.u32 1, %s4689_s29  }
  0x26   : > { %4496 = dma.hbm_to_vmem [thread:$0]  (!%p4813_p11), %s6905_s7, 2048, %s260_s15, [#allocation8], %s4696_s21, %s4696_s21, %s4697_s22  }
  0x27   : > { %s6908_s26 = scalar_select %p4839_p3, 1, 0 }
  0x28   : > { %s4483_s14 = sshll.u32 %s4693_s30, 8  ;;  %s4459_s20 = sshll.u32 %s273_s10, 4 }
  0x29   : > { %s4848_s23 = scalar_lea.hbm %s6856_s0, %s4483_s14  ;;  %s277_s15 = scalar_lea.vmem [#allocation4], %s4459_s20 }
  0x2a   : > { %s285_s18 = sshll.u32 %s277_s15, 4  ;;  %p4850_p11 = pnand %p4506_p2, %p41_p13  ;;  %s286_s18 = int_to_ptr.vmem [resolvable:$true] %s285_s18 }
  0x2b   : > { %s274_s21 = scalar_lea.sflag [#allocation5], %s273_s10  ;;  %s4597_s22 = scalar_lea.hbm %s4848_s23, 256 }
  0x2c   : > { %p4598_p5 = scmp.ne.s32.totalorder %s4848_s23, %s4597_s22  ;;  %p4599_p7 = pneg %p4850_p11 }
  0x2d   : > { %s4602_s14 = scalar_lea.hbm %s6856_s0, 512  ;;  %p4603_p10 = scmp.lt.s32.totalorder %s4848_s23, %s6856_s0 }
  0x2e   : > { %p4600_p9 = pnand %p4599_p7, %p4598_p5  ;;  %p4604_p2 = scmp.lt.s32.totalorder %s4602_s14, %s4597_s22 }
  0x30   : > { %p4601_p12 = pneg %p4600_p9  ;;  %p4605_p13 = por %p4604_p2, %p4603_p10 }
  0x32   : > { %p4606_p0 = pnand %p4605_p13, %p4601_p12 }
  0x34   : > { %4609 = shalt.err (!%p4606_p0)
}
  0x35   : > { %s4610_s15 = scalar_lea.vmem %s286_s18, 256  ;;  %s4698_s10 = smov [#allocation4]  }
  0x36   : > { %p4611_p1 = scmp.ne.s32.totalorder %s286_s18, %s4610_s15  ;;  %s4615_s7 = sshll.u32 %s4698_s10, 4  ;;  %s4616_s7 = int_to_ptr.vmem [resolvable:$false] %s4615_s7 }
  0x37   : > { %s4617_s25 = scalar_lea.vmem %s4616_s7, 512  ;;  %p4618_p5 = scmp.lt.s32.totalorder %s286_s18, %s4616_s7 }
  0x38   : > { %p4613_p6 = pnand %p4611_p1, %p4599_p7  ;;  %p4619_p9 = scmp.lt.s32.totalorder %s4617_s25, %s4610_s15 }
  0x3a   : > { %p4614_p3 = pneg %p4613_p6  ;;  %p4620_p4 = por %p4619_p9, %p4618_p5 }
  0x3c   : > { %p4621_p8 = pnand %p4620_p4, %p4614_p3 }
  0x3e   : > { %4624 = shalt.err (!%p4621_p8)
}
  0x3f   : > { %4500 = dma.hbm_to_vmem [thread:$0]  (!%p4850_p11), %s4848_s23, 256, %s286_s18, %s274_s21  }
  0x40   : > { %p6910_p12 = scmp.ne.s32.totalorder %s6902_s13, 0 }
  0x41   : > { %s4871_s22 = sand.u32 (!%p6910_p12), 1, %s4685_s28   ;;  %p6911_p1 = scmp.ne.s32.totalorder (!%p6910_p12), %s6900_s11, 0 }
  0x42   : > { %294 = sbr.rel (%p6910_p12) target bundleno = 1428 (0x594), region = 52  ;;  %s6871_s17 = sshll.u32 (!%p6910_p12), %s4871_s22, 4 }
  0x43   : > { %s297_s7 = scalar_lea.sflag (!%p6910_p12), [#allocation5], %s4871_s22  ;;  %s4877_s25 = scalar_lea.vmem (!%p6910_p12), [#allocation4], %s6871_s17 }
  0x47   : > { %4668 = dma.done.wait (%p6911_p1), %s297_s7, 256  }
  0x48   : > { %4670 = vsyncadd (%p6911_p1), %s297_s7, 4294967040  ;;  %p6912_p4 = scmp.eq.s32.totalorder %s4785_s9, 0 }
  0x4a   : > { %4672 = dma.done.wait (%p6912_p4), [#allocation8], 2048   ;;  %p6913_p6 = pmov %p6912_p4 }
  0x4b   : > { %v348_v0 = vlaneseq  ;;  %v4699_v1 = vmov 0.0   ;;  %v346_v7 = vld [vmem:[#allocation7] ss:$8 sm:$0xf]  ;;  %s4700_s11 = smov 55   ;;  %s4701_s13 = smov 56  }
  0x4c   : > { %4674 = vsyncadd (%p6913_p6), [#allocation8], 4294965248  ;;  %337 = vst [vmem:[#allocation2] sm:$0xf] %v4699_v1  ;;  %2333 = vmatprep.mubr.f32.mxu1 %v4699_v1  ;;  %2262 = vmatprep.mubr.f32.mxu0 %v4699_v1  ;;  %s4702_s23 = smov 57   ;;  %v4920_v35 = vld [vmem:[%s4877_s25] sm:$0xff] }
  0x4d   : > { %338 = vst [vmem:[#allocation2 + $0x14] sm:$0xf] %v4699_v1  ;;  %v349_v2 = vshrl.u32 %v348_v0, 7  ;;  %v415_v8 = vld [vmem:[#allocation7 + $0x1] ss:$8 sm:$0xf] }
  0x4e   : > { %v484_v13 = vld [vmem:[#allocation7 + $0x2] ss:$8 sm:$0xf]  ;;  %v552_v18 = vld [vmem:[#allocation7 + $0x3] ss:$8 sm:$0xf] }
  0x4f   : > { %v4891_v3 = vsub.s32 0, %v349_v2  ;;  %v4893_v4 = vsub.s32 1, %v349_v2  ;;  %v4895_v5 = vsub.s32 2, %v349_v2  ;;  %v4897_v6 = vsub.s32 3, %v349_v2  ;;  %341 = vst [vmem:[#allocation2 + $0x4] sm:$0xff] %v4920_v35  ;;  %v4924_v36 = vld [vmem:[%s4877_s25 + $0x8] sm:$0xff] }
  0x50   : > { %v621_v30 = vld [vmem:[#allocation7 + $0x4] ss:$8 sm:$0xf]  ;;  %v2063_v34 = vld [vmem:[#allocation7 + $0x62] ss:$8 sm:$0xf] }
  0x51   : > { %v351_v9 = vrot.slane %v346_v7, %v4891_v3  ;;  %v355_v10 = vrot.slane %v346_v7, %v4893_v4  ;;  %v420_v11 = vrot.slane %v415_v8, %v4891_v3  ;;  %v424_v12 = vrot.slane %v415_v8, %v4893_v4  ;;  %342 = vst [vmem:[#allocation2 + $0xc] sm:$0xff] %v4924_v36  ;;  %s4703_s18 = smov 63   ;;  %v1930_v43 = vld [vmem:[#allocation7 + $0x60] ss:$8 sm:$0xf]  ;;  %s4704_s19 = smov 64  }
  0x52   : > { %v359_v14 = vrot.slane %v346_v7, %v4895_v5  ;;  %v363_v15 = vrot.slane %v346_v7, %v4897_v6  ;;  %v497_v16 = vrot.slane %v484_v13, %v4895_v5  ;;  %v501_v17 = vrot.slane %v484_v13, %v4897_v6  ;;  %v1996_v50 = vld [vmem:[#allocation7 + $0x61] ss:$8 sm:$0xf]  ;;  %s4705_s21 = smov 73   ;;  %s4706_s24 = smov 71  }
  0x53   : > { %v364_v19 = vcombine.low %v351_v9, %v355_v10  ;;  %v433_v20 = vcombine.low %v420_v11, %v424_v12  ;;  %v428_v22 = vrot.slane %v415_v8, %v4895_v5  ;;  %v432_v23 = vrot.slane %v415_v8, %v4897_v6  ;;  %v1797_v57 = vld [vmem:[#allocation7 + $0x46] ss:$8 sm:$0xf]  ;;  %v1863_v0 = vld [vmem:[#allocation7 + $0x47] ss:$8 sm:$0xf] }
  0x54   : > { %v365_v21 = vcombine.low %v359_v14, %v363_v15  ;;  %v503_v24 = vcombine.low %v497_v16, %v501_v17  ;;  %v557_v25 = vrot.slane %v552_v18, %v4891_v3  ;;  %v561_v26 = vrot.slane %v552_v18, %v4893_v4  ;;  %s6893_s14 = smov 72   ;;  %v1664_v12 = vld [vmem:[#allocation7 + $0x44] ss:$8 sm:$0xf]  ;;  %s6895_s16 = smov 65  }
  0x55   : > { %366 = vrot.lane.b32.xlu0 %v364_v19, %s4700_s11  ;;  %435 = vrot.lane.b32.xlu1 %v433_v20, %s4701_s13  ;;  %v434_v27 = vcombine.low %v428_v22, %v432_v23  ;;  %v489_v28 = vrot.slane %v484_v13, %v4891_v3  ;;  %v493_v29 = vrot.slane %v484_v13, %v4893_v4  ;;  %v1730_v19 = vld [vmem:[#allocation7 + $0x45] ss:$8 sm:$0xf]  ;;  %s6886_s20 = smov 8   ;;  %s6872_s15 = smov 9   ;;  %vm6898_vm0 = vcmask 449536  }
  0x56   : > { %v570_v31 = vcombine.low %v557_v25, %v561_v26  ;;  %v634_v32 = vrot.slane %v621_v30, %v4895_v5  ;;  %v638_v33 = vrot.slane %v621_v30, %v4897_v6  ;;  %v565_v38 = vrot.slane %v552_v18, %v4895_v5  ;;  %v1531_v26 = vld [vmem:[#allocation7 + $0x42] ss:$8 sm:$0xf]  ;;  %s6888_s10 = smov 1   ;;  %s6874_s7 = smov 7  }
  0x57   : > { %v502_v37 = vcombine.low %v489_v28, %v493_v29  ;;  %v569_v39 = vrot.slane %v552_v18, %v4897_v6  ;;  %v2076_v41 = vrot.slane %v2063_v34, %v4895_v5  ;;  %v2080_v42 = vrot.slane %v2063_v34, %v4897_v6  ;;  %s6884_s25 = smov 127   ;;  %s6882_s17 = smov 120  }
  0x58   : > { %v640_v40 = vcombine.low %v634_v32, %v638_v33  ;;  %v626_v45 = vrot.slane %v621_v30, %v4891_v3  ;;  %v630_v46 = vrot.slane %v621_v30, %v4893_v4  ;;  %v1943_v48 = vrot.slane %v1930_v43, %v4895_v5  ;;  %v1597_v33 = vld [vmem:[#allocation7 + $0x43] ss:$8 sm:$0xf]  ;;  %p6968_p3 = scmp.ne.s32.totalorder %s6908_s26, 0 }
  0x59   : > { %368 = vrot.lane.b32.xlu0 %v365_v21, %s4700_s11  ;;  %506 = vrot.lane.b32.xlu1 %v503_v24, %s4702_s23  ;;  %v571_v44 = vcombine.low %v565_v38, %v569_v39  ;;  %v2082_v47 = vcombine.low %v2076_v41, %v2080_v42  ;;  %v1947_v49 = vrot.slane %v1930_v43, %v4897_v6  ;;  %v1398_v42 = vld [vmem:[#allocation7 + $0x40] ss:$8 sm:$0xf]  ;;  %vm6879_vm1 = vcmask 457728  }
  0x5a   : > { %v639_v51 = vcombine.low %v626_v45, %v630_v46  ;;  %v2068_v52 = vrot.slane %v2063_v34, %v4891_v3  ;;  %v2072_v53 = vrot.slane %v2063_v34, %v4893_v4  ;;  %v2009_v55 = vrot.slane %v1996_v50, %v4895_v5 }
  0x5b   : > { %v1949_v54 = vcombine.low %v1943_v48, %v1947_v49  ;;  %v2013_v56 = vrot.slane %v1996_v50, %v4897_v6  ;;  %v1935_v59 = vrot.slane %v1930_v43, %v4891_v3  ;;  %v1939_v60 = vrot.slane %v1930_v43, %v4893_v4  ;;  %v1464_v49 = vld [vmem:[#allocation7 + $0x41] ss:$8 sm:$0xf] }
  0x5c   : > { %v2081_v58 = vcombine.low %v2068_v52, %v2072_v53  ;;  %v1810_v62 = vrot.slane %v1797_v57, %v4895_v5  ;;  %v1814_v63 = vrot.slane %v1797_v57, %v4897_v6  ;;  %v2001_v7 = vrot.slane %v1996_v50, %v4891_v3 }
  0x5d   : > { %437 = vrot.lane.b32.xlu0 %v434_v27, %s4701_s13  ;;  %572 = vrot.lane.b32.xlu1 %v570_v31, %s4703_s18  ;;  %v2015_v61 = vcombine.low %v2009_v55, %v2013_v56  ;;  %v1948_v2 = vcombine.low %v1935_v59, %v1939_v60  ;;  %v2005_v8 = vrot.slane %v1996_v50, %v4893_v4  ;;  %v1265_v56 = vld [vmem:[#allocation7 + $0x26] ss:$8 sm:$0xf]  ;;  %vm510_vm2 = vcmask 465920  }
  0x5e   : > { %v1816_v9 = vcombine.low %v1810_v62, %v1814_v63  ;;  %v1876_v10 = vrot.slane %v1863_v0, %v4895_v5  ;;  %v1880_v11 = vrot.slane %v1863_v0, %v4897_v6  ;;  %v1802_v14 = vrot.slane %v1797_v57, %v4891_v3  ;;  %v1331_v63 = vld [vmem:[#allocation7 + $0x27] ss:$8 sm:$0xf] }
  0x5f   : > { %v2014_v13 = vcombine.low %v2001_v7, %v2005_v8  ;;  %v1806_v15 = vrot.slane %v1797_v57, %v4893_v4  ;;  %v1677_v17 = vrot.slane %v1664_v12, %v4895_v5  ;;  %v1681_v18 = vrot.slane %v1664_v12, %v4897_v6 }
  0x60   : > { %v1882_v16 = vcombine.low %v1876_v10, %v1880_v11  ;;  %v1868_v21 = vrot.slane %v1863_v0, %v4891_v3  ;;  %v1872_v22 = vrot.slane %v1863_v0, %v4893_v4  ;;  %v1743_v24 = vrot.slane %v1730_v19, %v4895_v5  ;;  %v1160_v11 = vld [vmem:[#allocation7 + $0x24] ss:$8 sm:$0xf] }
  0x61   : > { %504 = vrot.lane.b32.xlu0 %v502_v37, %s4702_s23  ;;  %643 = vrot.lane.b32.xlu1 %v640_v40, %s4704_s19  ;;  %v1815_v20 = vcombine.low %v1802_v14, %v1806_v15  ;;  %v1683_v23 = vcombine.low %v1677_v17, %v1681_v18  ;;  %v1747_v25 = vrot.slane %v1730_v19, %v4897_v6  ;;  %v1023_v18 = vld [vmem:[#allocation7 + $0x22] ss:$8 sm:$0xf]  ;;  %vm578_vm3 = vcmask 515072  }
  0x62   : > { %v1881_v27 = vcombine.low %v1868_v21, %v1872_v22  ;;  %v1669_v28 = vrot.slane %v1664_v12, %v4891_v3  ;;  %v1673_v29 = vrot.slane %v1664_v12, %v4893_v4  ;;  %v1544_v31 = vrot.slane %v1531_v26, %v4895_v5 }
  0x63   : > { %v1749_v30 = vcombine.low %v1743_v24, %v1747_v25  ;;  %v1548_v32 = vrot.slane %v1531_v26, %v4897_v6  ;;  %v1735_v37 = vrot.slane %v1730_v19, %v4891_v3  ;;  %v1739_v38 = vrot.slane %v1730_v19, %v4893_v4  ;;  %v1091_v25 = vld [vmem:[#allocation7 + $0x23] ss:$8 sm:$0xf] }
  0x64   : > { %v1682_v34 = vcombine.low %v1669_v28, %v1673_v29  ;;  %v1610_v40 = vrot.slane %v1597_v33, %v4895_v5  ;;  %v1614_v41 = vrot.slane %v1597_v33, %v4897_v6  ;;  %v1540_v45 = vrot.slane %v1531_v26, %v4893_v4 }
  0x65   : > { %574 = vrot.lane.b32.xlu0 %v571_v44, %s4703_s18  ;;  %2085 = vrot.lane.b32.xlu1 %v2082_v47, %s4705_s21  ;;  %v1550_v39 = vcombine.low %v1544_v31, %v1548_v32  ;;  %v1748_v43 = vcombine.low %v1735_v37, %v1739_v38  ;;  %v1536_v44 = vrot.slane %v1531_v26, %v4891_v3  ;;  %v888_v32 = vld [vmem:[#allocation7 + $0x20] ss:$8 sm:$0xf]  ;;  %vm647_vm4 = vcmask 523264  }
  0x66   : > { %v1616_v46 = vcombine.low %v1610_v40, %v1614_v41  ;;  %v1411_v47 = vrot.slane %v1398_v42, %v4895_v5  ;;  %v1415_v48 = vrot.slane %v1398_v42, %v4897_v6  ;;  %v1606_v52 = vrot.slane %v1597_v33, %v4893_v4 }
  0x67   : > { %v1549_v50 = vcombine.low %v1536_v44, %v1540_v45  ;;  %v1481_v55 = vrot.slane %v1464_v49, %v4897_v6  ;;  %v1407_v59 = vrot.slane %v1398_v42, %v4893_v4  ;;  %v1282_v62 = vrot.slane %v1265_v56, %v4897_v6 }
  0x68   : > { %v1417_v53 = vcombine.low %v1411_v47, %v1415_v48  ;;  %v1473_v7 = vrot.slane %v1464_v49, %v4893_v4  ;;  %v1348_v10 = vrot.slane %v1331_v63, %v4897_v6  ;;  %v1274_v14 = vrot.slane %v1265_v56, %v4893_v4 }
  0x69   : > { %641 = vrot.lane.b32.xlu0 %v639_v51, %s4704_s19  ;;  %1952 = vrot.lane.b32.xlu1 %v1949_v54, %s4706_s24  ;;  %v1602_v51 = vrot.slane %v1597_v33, %v4891_v3  ;;  %v1477_v54 = vrot.slane %v1464_v49, %v4895_v5  ;;  %v1177_v17 = vrot.slane %v1160_v11, %v4897_v6  ;;  %vm374_vm5 = vcmask 1043456  }
  0x6a   : > { %v1340_v21 = vrot.slane %v1331_v63, %v4893_v4  ;;  %v1040_v24 = vrot.slane %v1023_v18, %v4897_v6  ;;  %v1169_v28 = vrot.slane %v1160_v11, %v4893_v4  ;;  %v1108_v31 = vrot.slane %v1091_v25, %v4897_v6 }
  0x6b   : > { %v1615_v57 = vcombine.low %v1602_v51, %v1606_v52  ;;  %v1483_v60 = vcombine.low %v1477_v54, %v1481_v55  ;;  %v1032_v37 = vrot.slane %v1023_v18, %v4893_v4  ;;  %v905_v40 = vrot.slane %v888_v32, %v4897_v6  ;;  %v5039_v52 = vld [vmem:[#allocation2] sm:$0xff] }
  0x6c   : > { %v1096_v41 = vrot.slane %v1091_v25, %v4891_v3  ;;  %v897_v47 = vrot.slane %v888_v32, %v4893_v4  ;;  %vm398_vm6 = vcmask 596992   ;;  %vm535_vm7 = vcmask 580608  }
  0x6d   : > { %2083 = vrot.lane.b32.xlu0 %v2081_v58, %s4705_s21  ;;  %2018 = vrot.lane.b32.xlu1 %v2015_v61, %s6893_s14  ;;  %v1403_v58 = vrot.slane %v1398_v42, %v4891_v3  ;;  %v1278_v61 = vrot.slane %v1265_v56, %v4895_v5  ;;  %vm467_vm8 = vcmask 588800   ;;  %vm604_vm9 = vcmask 531456  }
  0x6e   : > { %vm1074_vm10 = vcmask 64512   ;;  %vm6876_vm11 = vcmask 72704   ;;  %vm1211_vm12 = vcmask 7168   ;;  %vm1143_vm13 = vcmask 56320  }
  0x6f   : > { %v1416_v0 = vcombine.low %v1403_v58, %v1407_v59  ;;  %v1284_v8 = vcombine.low %v1278_v61, %v1282_v62  ;;  %vm1186_vm14 = vcmask 1039360   ;;  %vm6892_vm15 = vcmask 982016  }
  0x71   : > { %1950 = vrot.lane.b32.xlu0 %v1948_v2, %s4706_s24  ;;  %1819 = vrot.lane.b32.xlu1 %v1816_v9, %s4704_s19  ;;  %v1469_v2 = vrot.slane %v1464_v49, %v4891_v3  ;;  %v1344_v9 = vrot.slane %v1331_v63, %v4895_v5 }
  0x73   : > { %v1482_v12 = vcombine.low %v1469_v2, %v1473_v7  ;;  %v1350_v15 = vcombine.low %v1344_v9, %v1348_v10 }
  0x75   : > { %2016 = vrot.lane.b32.xlu0 %v2014_v13, %s6893_s14  ;;  %1885 = vrot.lane.b32.xlu1 %v1882_v16, %s6895_s16  ;;  %v1270_v13 = vrot.slane %v1265_v56, %v4891_v3  ;;  %v1173_v16 = vrot.slane %v1160_v11, %v4895_v5 }
  0x77   : > { %v1283_v19 = vcombine.low %v1270_v13, %v1274_v14  ;;  %v1179_v22 = vcombine.low %v1173_v16, %v1177_v17 }
  0x79   : > { %1817 = vrot.lane.b32.xlu0 %v1815_v20, %s4704_s19  ;;  %1686 = vrot.lane.b32.xlu1 %v1683_v23, %s4702_s23  ;;  %v1336_v20 = vrot.slane %v1331_v63, %v4891_v3  ;;  %v1036_v23 = vrot.slane %v1023_v18, %v4895_v5 }
  0x7b   : > { %v1349_v26 = vcombine.low %v1336_v20, %v1340_v21  ;;  %v1042_v29 = vcombine.low %v1036_v23, %v1040_v24 }
  0x7d   : > { %1883 = vrot.lane.b32.xlu0 %v1881_v27, %s6895_s16  ;;  %1752 = vrot.lane.b32.xlu1 %v1749_v30, %s4703_s18  ;;  %v1165_v27 = vrot.slane %v1160_v11, %v4891_v3  ;;  %v1104_v30 = vrot.slane %v1091_v25, %v4895_v5 }
  0x7f   : > { %v1178_v33 = vcombine.low %v1165_v27, %v1169_v28  ;;  %v1110_v38 = vcombine.low %v1104_v30, %v1108_v31 }
  0x81   : > { %1684 = vrot.lane.b32.xlu0 %v1682_v34, %s4702_s23  ;;  %1553 = vrot.lane.b32.xlu1 %v1550_v39, %s4700_s11  ;;  %v1028_v34 = vrot.slane %v1023_v18, %v4891_v3  ;;  %v901_v39 = vrot.slane %v888_v32, %v4895_v5  ;;  %v550_v18 = vld [vmem:[#allocation2 + $0x10] sm:$0xf] }
  0x83   : > { %v1041_v42 = vcombine.low %v1028_v34, %v1032_v37  ;;  %v907_v44 = vcombine.low %v901_v39, %v905_v40  ;;  %v344_v37 = vld [vmem:[#allocation2 + $0x8] sm:$0xff] }
  0x85   : > { %1750 = vrot.lane.b32.xlu0 %v1748_v43, %s4703_s18  ;;  %1619 = vrot.lane.b32.xlu1 %v1616_v46, %s4701_s13  ;;  %v1100_v43 = vrot.slane %v1091_v25, %v4893_v4  ;;  %v893_v46 = vrot.slane %v888_v32, %v4891_v3 }
  0x87   : > { %v1109_v45 = vcombine.low %v1096_v41, %v1100_v43  ;;  %v906_v48 = vcombine.low %v893_v46, %v897_v47 }
  0x89   : > { %1551 = vrot.lane.b32.xlu0 %v1549_v50, %s4700_s11  ;;  %1420 = vrot.lane.b32.xlu1 %v1417_v53, %s6886_s20 }
  0x8d   : > { %1617 = vrot.lane.b32.xlu0 %v1615_v57, %s4701_s13  ;;  %1486 = vrot.lane.b32.xlu1 %v1483_v60, %s6872_s15  ;;  %v345_v57 = vld [vmem:[#allocation2 + $0x10] sm:$0xf] }
  0x8e   : > { %v482_v60 = vld [vmem:[#allocation2 + $0x10] sm:$0xf] }
  0x91   : > { %1418 = vrot.lane.b32.xlu0 %v1416_v0, %s6886_s20  ;;  %1287 = vrot.lane.b32.xlu1 %v1284_v8, %s6888_s10  ;;  %v413_v0 = vld [vmem:[#allocation2 + $0x10] sm:$0xf] }
  0x95   : > { %1484 = vrot.lane.b32.xlu0 %v1482_v12, %s6872_s15  ;;  %1353 = vrot.lane.b32.xlu1 %v1350_v15, %s6874_s7  ;;  %s6880_s15 = smov 121  }
  0x99   : > { %1285 = vrot.lane.b32.xlu0 %v1283_v19, %s6888_s10  ;;  %1182 = vrot.lane.b32.xlu1 %v1179_v22, %s6884_s25 }
  0x9d   : > { %1351 = vrot.lane.b32.xlu0 %v1349_v26, %s6874_s7  ;;  %1045 = vrot.lane.b32.xlu1 %v1042_v29, %s6882_s17  ;;  %s6877_s7 = smov 119  }
  0xa1   : > { %1180 = vrot.lane.b32.xlu0 %v1178_v33, %s6884_s25  ;;  %1113 = vrot.lane.b32.xlu1 %v1110_v38, %s6880_s15 }
  0xa5   : > { %1043 = vrot.lane.b32.xlu0 %v1041_v42, %s6882_s17  ;;  %910 = vrot.lane.b32.xlu1 %v907_v44, %s4705_s21 }
  0xa9   : > { %1111 = vrot.lane.b32.xlu0 %v1109_v45, %s6880_s15 }
  0xad   : > { %908 = vrot.lane.b32.xlu0 %v906_v48, %s4705_s21 }
  0xc7   : > { %v367_v49 = vpop.permute.xlu0 %366  ;;  %v436_v50 = vpop.permute.xlu1 %435 }
  0xc8   : > { %v370_v51 = vrot.slane %v367_v49, 4  ;;  %v439_v62 = vrot.slane %v436_v50, 4 }
  0xca   : > { %v373_v53 = vsel %vm6898_vm0, %v370_v51, %v367_v49  ;;  %v442_v8 = vsel %vm6879_vm1, %v439_v62, %v436_v50 }
  0xcb   : > { %v369_v54 = vpop.permute.xlu0 %368  ;;  %v380_v55 = vmul.f32 %v373_v53, %v5039_v52  ;;  %v5043_v56 = vpop.permute.xlu1 %506  ;;  %v448_v14 = vmul.f32 %v442_v8, %v5039_v52  ;;  %v755_v8 = vld [vmem:[#allocation7 + $0x6] ss:$8 sm:$0xf] }
  0xcc   : > { %v371_v58 = vrot.slane %v369_v54, 4  ;;  %v509_v59 = vrot.slane %v5043_v56, 4 }
  0xcd   : > { %388 = vrot.lane.b32.xlu1 %v380_v55, %s4705_s21  ;;  %v386_v31 = vcombine.high %v380_v55, %v380_v55  ;;  %v454_v40 = vcombine.low %v448_v14, %v448_v14 }
  0xce   : > { %v382_v61 = vmul.f32 %v371_v58, %v345_v57  ;;  %v519_v7 = vmul.f32 %v509_v59, %v482_v60  ;;  %v375_v30 = vsel %vm374_vm5, %v370_v51, %v371_v58 }
  0xcf   : > { %v438_v63 = vpop.permute.xlu0 %437  ;;  %v573_v13 = vpop.permute.xlu1 %572  ;;  %v376_v34 = vsel %vm6898_vm0, %v375_v30, %v369_v54 }
  0xd0   : > { %v440_v2 = vrot.slane %v438_v63, 4  ;;  %396 = vrot.lane.b32.xlu0 %v382_v61, %s4705_s21  ;;  %v576_v16 = vrot.slane %v573_v13, 4  ;;  %v381_v41 = vmul.f32 %v376_v34, %v344_v37 }
  0xd2   : > { %v450_v9 = vmul.f32 %v440_v2, %v413_v0  ;;  %v579_v20 = vsel %vm578_vm3, %v576_v16, %v573_v13  ;;  %v443_v39 = vsel %vm374_vm5, %v439_v62, %v440_v2  ;;  %v387_v62 = vcombine.high %v381_v41, %v381_v41 }
  0xd3   : > { %v505_v10 = vpop.permute.xlu0 %504  ;;  %v585_v26 = vmul.f32 %v579_v20, %v5039_v52  ;;  %v5060_v28 = vpop.permute.xlu1 %643  ;;  %v444_v42 = vsel %vm6879_vm1, %v443_v39, %v438_v63  ;;  %v764_v13 = vrot.slane %v755_v8, %v4893_v4 }
  0xd4   : > { %v508_v11 = vrot.slane %v505_v10, 4  ;;  %533 = vrot.lane.b32.xlu0 %v519_v7, %s4706_s24  ;;  %v456_v12 = vcombine.low %v450_v9, %v450_v9  ;;  %v449_v47 = vmul.f32 %v444_v42, %v344_v37  ;;  %v646_v50 = vrot.slane %v5060_v28, 4 }
  0xd5   : > { %v591_v51 = vcombine.low %v585_v26, %v585_v26 }
  0xd6   : > { %465 = vrot.lane.b32.xlu1 %v456_v12, %s6893_s14  ;;  %v511_v15 = vsel %vm510_vm2, %v508_v11, %v505_v10  ;;  %v512_v44 = vsel %vm374_vm5, %v508_v11, %v509_v59  ;;  %v954_v59 = vld [vmem:[#allocation7 + $0x21] ss:$8 sm:$0xf]  ;;  %v455_v10 = vcombine.low %v449_v47, %v449_v47  ;;  %v760_v12 = vrot.slane %v755_v8, %v4891_v3 }
  0xd7   : > { %v575_v17 = vpop.permute.xlu0 %574  ;;  %v517_v21 = vmul.f32 %v511_v15, %v5039_v52  ;;  %v5068_v33 = vpop.permute.xlu1 %2085  ;;  %v513_v48 = vsel %vm510_vm2, %v512_v44, %v5043_v56  ;;  %v959_v63 = vrot.slane %v954_v59, %v4891_v3  ;;  %v963_v0 = vrot.slane %v954_v59, %v4893_v4 }
  0xd8   : > { %v577_v19 = vrot.slane %v575_v17, 4  ;;  %459 = vrot.lane.b32.xlu0 %v448_v14, %s6893_s14  ;;  %v518_v53 = vmul.f32 %v513_v48, %v344_v37  ;;  %v821_v14 = vld [vmem:[#allocation7 + $0x7] ss:$8 sm:$0xf]  ;;  %v773_v20 = vcombine.low %v760_v12, %v764_v13  ;;  %v967_v34 = vrot.slane %v954_v59, %v4895_v5 }
  0xd9   : > { %v523_v43 = vcombine.high %v517_v21, %v517_v21  ;;  %v972_v11 = vcombine.low %v959_v63, %v963_v0  ;;  %v772_v44 = vrot.slane %v755_v8, %v4897_v6 }
  0xda   : > { %v587_v22 = vmul.f32 %v577_v19, %v550_v18  ;;  %v580_v49 = vsel %vm374_vm5, %v576_v16, %v577_v19  ;;  %v830_v18 = vrot.slane %v821_v14, %v4893_v4  ;;  %v524_v19 = vcombine.high %v518_v53, %v518_v53 }
  0xdb   : > { %v642_v23 = vpop.permute.xlu0 %641  ;;  %v5079_v45 = vpop.permute.xlu1 %1952  ;;  %v581_v57 = vsel %vm578_vm3, %v580_v49, %v575_v17  ;;  %v826_v17 = vrot.slane %v821_v14, %v4891_v3 }
  0xdc   : > { %525 = vrot.lane.b32.xlu0 %v517_v21, %s4706_s24  ;;  %v645_v24 = vrot.slane %v642_v23, 4  ;;  %v593_v25 = vcombine.low %v587_v22, %v587_v22  ;;  %v586_v60 = vmul.f32 %v581_v57, %v344_v37  ;;  %v688_v21 = vld [vmem:[#allocation7 + $0x5] ss:$8 sm:$0xf] }
  0xde   : > { %v648_v27 = vsel %vm647_vm4, %v645_v24, %v642_v23  ;;  %602 = vrot.lane.b32.xlu1 %v593_v25, %s6895_s16  ;;  %v649_v56 = vsel %vm374_vm5, %v645_v24, %v646_v50  ;;  %v839_v23 = vcombine.low %v826_v17, %v830_v18  ;;  %v2088_v24 = vrot.slane %v5068_v33, 4 }
  0xdf   : > { %v5062_v29 = vpop.permute.xlu0 %2083  ;;  %v654_v32 = vmul.f32 %v648_v27, %v5039_v52  ;;  %v5090_v54 = vpop.permute.xlu1 %2018  ;;  %v650_v61 = vsel %vm647_vm4, %v649_v56, %v5060_v28  ;;  %v592_v25 = vcombine.low %v586_v60, %v586_v60  ;;  %v697_v27 = vrot.slane %v688_v21, %v4893_v4 }
  0xe0   : > { %596 = vrot.lane.b32.xlu0 %v585_v26, %s6895_s16  ;;  %v655_v9 = vmul.f32 %v650_v61, %v344_v37  ;;  %v2087_v22 = vrot.slane %v5062_v29, 4  ;;  %v693_v26 = vrot.slane %v688_v21, %v4891_v3  ;;  %v971_v37 = vrot.slane %v954_v59, %v4897_v6 }
  0xe1   : > { %v660_v58 = vcombine.high %v654_v32, %v654_v32  ;;  %v834_v56 = vrot.slane %v821_v14, %v4895_v5  ;;  %v1955_v59 = vrot.slane %v5079_v45, 4 }
  0xe2   : > { %390 = vrot.lane.b32.xlu1 %v386_v31, %s4705_s21  ;;  %v2090_v39 = vsel %vm374_vm5, %v2087_v22, %v2088_v24  ;;  %v706_v42 = vcombine.low %v693_v26, %v697_v27  ;;  %v2061_v26 = vld [vmem:[#allocation2 + $0x14] sm:$0xf] }
  0xe3   : > { %v5071_v38 = vpop.permute.xlu0 %1950  ;;  %v5105_v2 = vpop.permute.xlu1 %1819  ;;  %v2091_v49 = vsel %vm398_vm6, %v2090_v39, %v5068_v33 }
  0xe4   : > { %662 = vrot.lane.b32.xlu0 %v654_v32, %s4704_s19  ;;  %v2089_v32 = vsel %vm398_vm6, %v2087_v22, %v5062_v29  ;;  %v768_v29 = vrot.slane %v755_v8, %v4895_v5  ;;  %v2096_v57 = vmul.f32 %v2091_v49, %v4924_v36  ;;  %v701_v8 = vrot.slane %v688_v21, %v4895_v5 }
  0xe6   : > { %457 = vrot.lane.b32.xlu1 %v454_v40, %s6893_s14  ;;  %v2095_v40 = vmul.f32 %v2089_v32, %v4920_v35  ;;  %v2102_v63 = vcombine.high %v2096_v57, %v2096_v57 }
  0xe7   : > { %v5081_v46 = vpop.permute.xlu0 %2016  ;;  %v5114_v15 = vpop.permute.xlu1 %1885 }
  0xe8   : > { %392 = vrot.lane.b32.xlu0 %v381_v41, %s4705_s21  ;;  %v661_v41 = vcombine.high %v655_v9, %v655_v9  ;;  %v1888_v49 = vrot.slane %v5114_v15, 4 }
  0xea   : > { %527 = vrot.lane.b32.xlu1 %v523_v43, %s4706_s24  ;;  %v973_v43 = vcombine.low %v967_v34, %v971_v37  ;;  %v1994_v34 = vld [vmem:[#allocation2 + $0x14] sm:$0xf] }
  0xeb   : > { %v5092_v55 = vpop.permute.xlu0 %1817  ;;  %v5127_v30 = vpop.permute.xlu1 %1686 }
  0xec   : > { %463 = vrot.lane.b32.xlu0 %v449_v47, %s6893_s14 }
  0xee   : > { %594 = vrot.lane.b32.xlu1 %v591_v51, %s6895_s16  ;;  %v2101_v51 = vcombine.high %v2095_v40, %v2095_v40 }
  0xef   : > { %v5107_v7 = vpop.permute.xlu0 %1883  ;;  %v5144_v47 = vpop.permute.xlu1 %1752 }
  0xf0   : > { %529 = vrot.lane.b32.xlu0 %v518_v53, %s4706_s24  ;;  %v774_v53 = vcombine.low %v768_v29, %v772_v44  ;;  %v1821_v29 = vrot.slane %v5092_v55, 4 }
  0xf2   : > { %664 = vrot.lane.b32.xlu1 %v660_v58, %s4704_s19  ;;  %v838_v58 = vrot.slane %v821_v14, %v4897_v6 }
  0xf3   : > { %v5116_v16 = vpop.permute.xlu0 %1684  ;;  %v5158_v61 = vpop.permute.xlu1 %1553 }
  0xf4   : > { %600 = vrot.lane.b32.xlu0 %v586_v60, %s6895_s16  ;;  %v1954_v60 = vrot.slane %v5071_v38, 4  ;;  %v840_v0 = vcombine.low %v834_v56, %v838_v58 }
  0xf6   : > { %394 = vrot.lane.b32.xlu1 %v387_v62, %s4705_s21  ;;  %v1957_v12 = vsel %vm374_vm5, %v1954_v60, %v1955_v59 }
  0xf7   : > { %v5129_v31 = vpop.permute.xlu0 %1750  ;;  %v5170_v14 = vpop.permute.xlu1 %1619  ;;  %v1958_v18 = vsel %vm535_vm7, %v1957_v12, %v5079_v45  ;;  %v1956_v45 = vsel %vm535_vm7, %v1954_v60, %v5071_v38 }
  0xf8   : > { %666 = vrot.lane.b32.xlu0 %v655_v9, %s4704_s19  ;;  %v705_v9 = vrot.slane %v688_v21, %v4897_v6  ;;  %v1928_v21 = vld [vmem:[#allocation2 + $0x14] sm:$0xf]  ;;  %v1962_v37 = vmul.f32 %v1956_v45, %v4920_v35  ;;  %v1688_v45 = vrot.slane %v5116_v16, 4 }
  0xf9   : > { %v1964_v27 = vmul.f32 %v1955_v59, %v1928_v21 }
  0xfa   : > { %461 = vrot.lane.b32.xlu1 %v455_v10, %s6893_s14  ;;  %v2021_v10 = vrot.slane %v5090_v54, 4  ;;  %v707_v13 = vcombine.low %v701_v8, %v705_v9  ;;  %v1968_v44 = vcombine.high %v1962_v37, %v1962_v37  ;;  %v1795_v9 = vld [vmem:[#allocation2 + $0x14] sm:$0xf] }
  0xfb   : > { %v5146_v48 = vpop.permute.xlu0 %1551 }
  0xfc   : > { %974 = vrot.lane.b32.xlu0 %v972_v11, %s6877_s7  ;;  %v2020_v11 = vrot.slane %v5081_v46, 4  ;;  %v2030_v38 = vmul.f32 %v2021_v10, %v1994_v34 }
  0xfe   : > { %531 = vrot.lane.b32.xlu1 %v524_v19, %s4706_s24  ;;  %v2023_v19 = vsel %vm374_vm5, %v2020_v11, %v2021_v10 }
  0xff   : > { %v5160_v62 = vpop.permute.xlu0 %1617  ;;  %v2024_v22 = vsel %vm467_vm8, %v2023_v19, %v5090_v54  ;;  %v2097_v54 = vmul.f32 %v2088_v24, %v2061_v26  ;;  %v2036_v24 = vcombine.low %v2030_v38, %v2030_v38 }
 0x100   : > { %775 = vrot.lane.b32.xlu0 %v773_v20, %s4706_s24  ;;  %v1963_v20 = vmul.f32 %v1958_v18, %v4924_v36  ;;  %v2029_v32 = vmul.f32 %v2024_v22, %v4924_v36  ;;  %v1689_v22 = vrot.slane %v5127_v30, 4 }
 0x102   : > { %598 = vrot.lane.b32.xlu1 %v592_v25, %s6895_s16  ;;  %v2035_v39 = vcombine.low %v2029_v32, %v2029_v32 }
 0x103   : > { %v5172_v17 = vpop.permute.xlu0 %1418 }
 0x104   : > { %841 = vrot.lane.b32.xlu0 %v839_v23, %s6893_s14  ;;  %v5183_v23 = vpop.permute.xlu1 %1420 }
 0x106   : > { %668 = vrot.lane.b32.xlu1 %v661_v41, %s4704_s19 }
 0x107   : > { %v5185_v25 = vpop.permute.xlu0 %1484 }
 0x108   : > { %708 = vrot.lane.b32.xlu0 %v706_v42, %s6895_s16  ;;  %v2022_v42 = vsel %vm467_vm8, %v2020_v11, %v5081_v46 }
 0x109   : > { %v2028_v33 = vmul.f32 %v2022_v42, %v4920_v35 }
 0x10a   : > { %976 = vrot.lane.b32.xlu1 %v973_v43, %s6877_s7  ;;  %v1822_v43 = vrot.slane %v5105_v2, 4 }
 0x10b   : > { %v5198_v41 = vpop.permute.xlu0 %1285  ;;  %v2034_v58 = vcombine.low %v2028_v33, %v2028_v33 }
 0x10c   : > { %2105 = vrot.lane.b32.xlu0 %v2101_v51, %s4700_s11  ;;  %v1887_v51 = vrot.slane %v5107_v7, 4  ;;  %v1831_v11 = vmul.f32 %v1822_v43, %v1795_v9 }
 0x10e   : > { %777 = vrot.lane.b32.xlu1 %v774_v53, %s4706_s24  ;;  %v1969_v53 = vcombine.high %v1963_v20, %v1963_v20  ;;  %v1890_v60 = vsel %vm374_vm5, %v1887_v51, %v1888_v49 }
 0x10f   : > { %v5213_v56 = vpop.permute.xlu0 %1351  ;;  %v1891_v10 = vsel %vm604_vm9, %v1890_v60, %v5114_v15  ;;  %v1728_v60 = vld [vmem:[#allocation2 + $0x14] sm:$0xf] }
 0x110   : > { %2109 = vrot.lane.b32.xlu0 %v2102_v63, %s4700_s11  ;;  %v1896_v12 = vmul.f32 %v1891_v10, %v4924_v36 }
 0x112   : > { %843 = vrot.lane.b32.xlu1 %v840_v0, %s6893_s14  ;;  %v1902_v21 = vcombine.low %v1896_v12, %v1896_v12 }
 0x113   : > { %v5224_v8 = vpop.permute.xlu0 %1180 }
 0x114   : > { %2103 = vrot.lane.b32.xlu0 %v2095_v40, %s4700_s11  ;;  %v5196_v40 = vpop.permute.xlu1 %1486 }
 0x116   : > { %710 = vrot.lane.b32.xlu1 %v707_v13, %s6895_s16  ;;  %v1861_v13 = vld [vmem:[#allocation2 + $0x14] sm:$0xf] }
 0x117   : > { %v1897_v15 = vmul.f32 %v1888_v49, %v1861_v13  ;;  %v1662_v49 = vld [vmem:[#allocation2 + $0x14] sm:$0xf] }
 0x118   : > { %1974 = vrot.lane.b32.xlu0 %v1963_v20, %s4702_s23  ;;  %v5210_v46 = vpop.permute.xlu1 %1287  ;;  %v5237_v20 = vpop.permute.xlu0 %1043 }
 0x11a   : > { %2107 = vrot.lane.b32.xlu1 %v2096_v57, %s4700_s11  ;;  %v1824_v57 = vsel %vm374_vm5, %v1821_v29, %v1822_v43 }
 0x11b   : > { %v1825_v59 = vsel %vm647_vm4, %v1824_v57, %v5105_v2  ;;  %v1823_v2 = vsel %vm647_vm4, %v1821_v29, %v5092_v55  ;;  %v1889_v55 = vsel %vm604_vm9, %v1887_v51, %v5107_v7  ;;  %v1755_v7 = vrot.slane %v5144_v47, 4 }
 0x11c   : > { %1978 = vrot.lane.b32.xlu0 %v1964_v27, %s4702_s23  ;;  %v5221_v63 = vpop.permute.xlu1 %1353  ;;  %v1830_v0 = vmul.f32 %v1825_v59, %v4924_v36  ;;  %v1829_v18 = vmul.f32 %v1823_v2, %v4920_v35  ;;  %v1903_v27 = vcombine.low %v1897_v15, %v1897_v15 }
 0x11e   : > { %2111 = vrot.lane.b32.xlu1 %v2097_v54, %s4700_s11  ;;  %v1835_v26 = vcombine.high %v1829_v18, %v1829_v18  ;;  %v5249_v54 = vpop.permute.xlu0 %1111  ;;  %v1836_v38 = vcombine.high %v1830_v0, %v1830_v0 }
 0x120   : > { %2041 = vrot.lane.b32.xlu0 %v2035_v39, %s4701_s13  ;;  %v5234_v19 = vpop.permute.xlu1 %1182  ;;  %v1754_v39 = vrot.slane %v5129_v31, 4 }
 0x122   : > { %1972 = vrot.lane.b32.xlu1 %v1968_v44, %s4702_s23  ;;  %v1757_v29 = vsel %vm374_vm5, %v1754_v39, %v1755_v7  ;;  %v1756_v10 = vsel %vm578_vm3, %v1754_v39, %v5129_v31  ;;  %v1621_v31 = vrot.slane %v5160_v62, 4 }
 0x123   : > { %v1758_v51 = vsel %vm578_vm3, %v1757_v29, %v5144_v47  ;;  %v1764_v47 = vmul.f32 %v1755_v7, %v1728_v60  ;;  %v1595_v60 = vld [vmem:[#allocation2 + $0x14] sm:$0xf] }
 0x124   : > { %2045 = vrot.lane.b32.xlu0 %v2036_v24, %s4701_s13  ;;  %v5246_v34 = vpop.permute.xlu1 %1045  ;;  %v1763_v59 = vmul.f32 %v1758_v51, %v4924_v36 }
 0x125   : > { %v1770_v15 = vcombine.low %v1764_v47, %v1764_v47 }
 0x126   : > { %1976 = vrot.lane.b32.xlu1 %v1969_v53, %s4702_s23  ;;  %v1698_v53 = vmul.f32 %v1689_v22, %v1662_v49 }
 0x128   : > { %2037 = vrot.lane.b32.xlu0 %v2034_v58, %s4701_s13  ;;  %v5259_v44 = vpop.permute.xlu1 %1113 }
 0x12a   : > { %2039 = vrot.lane.b32.xlu1 %v2028_v33, %s4701_s13  ;;  %v5262_v33 = vpop.permute.xlu0 %908 }
 0x12c   : > { %1841 = vrot.lane.b32.xlu0 %v1830_v0, %s4704_s19  ;;  %v5271_v57 = vpop.permute.xlu1 %910 }
 0x12e   : > { %2043 = vrot.lane.b32.xlu1 %v2029_v32, %s4701_s13  ;;  %v1895_v32 = vmul.f32 %v1889_v55, %v4920_v35 }
 0x130   : > { %1845 = vrot.lane.b32.xlu0 %v1831_v11, %s4704_s19  ;;  %v1901_v42 = vcombine.low %v1895_v32, %v1895_v32  ;;  %v1556_v11 = vrot.slane %v5158_v61, 4 }
 0x132   : > { %1970 = vrot.lane.b32.xlu1 %v1962_v37, %s4702_s23  ;;  %v1691_v37 = vsel %vm374_vm5, %v1688_v45, %v1689_v22  ;;  %v1622_v22 = vrot.slane %v5170_v14, 4 }
 0x133   : > { %v1692_v43 = vsel %vm510_vm2, %v1691_v37, %v5127_v30  ;;  %v1690_v30 = vsel %vm510_vm2, %v1688_v45, %v5116_v16  ;;  %v1769_v16 = vcombine.low %v1763_v59, %v1763_v59 }
 0x134   : > { %1908 = vrot.lane.b32.xlu0 %v1902_v21, %s4703_s18  ;;  %v1697_v24 = vmul.f32 %v1692_v43, %v4924_v36  ;;  %v1696_v0 = vmul.f32 %v1690_v30, %v4920_v35  ;;  %v1762_v21 = vmul.f32 %v1756_v10, %v4920_v35  ;;  %v1624_v7 = vsel %vm374_vm5, %v1621_v31, %v1622_v22  ;;  %v1529_v43 = vld [vmem:[#allocation2 + $0x14] sm:$0xf] }
 0x135   : > { %v1625_v29 = vsel %vm6879_vm1, %v1624_v7, %v5170_v14  ;;  %v1565_v51 = vmul.f32 %v1556_v11, %v1529_v43 }
 0x136   : > { %1839 = vrot.lane.b32.xlu1 %v1835_v26, %s4704_s19  ;;  %v1702_v2 = vcombine.high %v1696_v0, %v1696_v0  ;;  %v1703_v26 = vcombine.high %v1697_v24, %v1697_v24 }
 0x138   : > { %1912 = vrot.lane.b32.xlu0 %v1903_v27, %s4703_s18  ;;  %v1768_v27 = vcombine.low %v1762_v21, %v1762_v21 }
 0x13a   : > { %1843 = vrot.lane.b32.xlu1 %v1836_v38, %s4704_s19 }
 0x13c   : > { %1904 = vrot.lane.b32.xlu0 %v1901_v42, %s4703_s18 }
 0x13e   : > { %1906 = vrot.lane.b32.xlu1 %v1895_v32, %s4703_s18 }
 0x13f   : > { %v389_v13 = vpop.permute.xlu1 %388 }
 0x140   : > { %1708 = vrot.lane.b32.xlu0 %v1697_v24, %s4706_s24 }
 0x142   : > { %v5273_v58 = vpop.permute.xlu0 %396  ;;  %1910 = vrot.lane.b32.xlu1 %v1896_v12, %s4703_s18  ;;  %v1555_v12 = vrot.slane %v5146_v48, 4 }
 0x144   : > { %1712 = vrot.lane.b32.xlu0 %v1698_v53, %s4706_s24  ;;  %v5314_v53 = vmul.f32 %v1625_v29, %v4924_v36 }
 0x146   : > { %v5279_v9 = vpop.permute.xlu0 %533  ;;  %1837 = vrot.lane.b32.xlu1 %v1829_v18, %s4704_s19  ;;  %v1558_v18 = vsel %vm374_vm5, %v1555_v12, %v1556_v11  ;;  %v1423_v11 = vrot.slane %v5183_v23, 4 }
 0x147   : > { %v1559_v37 = vsel %vm6898_vm0, %v1558_v18, %v5158_v61  ;;  %v1557_v61 = vsel %vm6898_vm0, %v1555_v12, %v5146_v48  ;;  %v1422_v12 = vrot.slane %v5172_v17, 4 }
 0x148   : > { %1775 = vrot.lane.b32.xlu0 %v1769_v16, %s6895_s16  ;;  %v466_v45 = vpop.permute.xlu1 %465  ;;  %v1564_v42 = vmul.f32 %v1559_v37, %v4924_v36  ;;  %v5317_v47 = vmul.f32 %v1557_v61, %v4920_v35  ;;  %v1631_v16 = vmul.f32 %v1622_v22, %v1595_v60  ;;  %v1623_v36 = vsel %vm6879_vm1, %v1621_v31, %v5160_v62  ;;  %v5353_v60 = vld [vmem:[#allocation2 + $0xc] sm:$0xff] }
 0x149   : > { %v1425_v31 = vsel %vm374_vm5, %v1422_v12, %v1423_v11 }
 0x14a   : > { %v5288_v55 = vpop.permute.xlu0 %459  ;;  %1706 = vrot.lane.b32.xlu1 %v1702_v2, %s4706_s24  ;;  %v1569_v2 = vcombine.high %v5317_v47, %v5317_v47  ;;  %v1570_v37 = vcombine.high %v1564_v42, %v1564_v42 }
 0x14c   : > { %1779 = vrot.lane.b32.xlu0 %v1770_v15, %s6895_s16  ;;  %v1637_v15 = vcombine.low %v1631_v16, %v1631_v16 }
 0x14e   : > { %v526_v32 = vpop.permute.xlu0 %525  ;;  %1710 = vrot.lane.b32.xlu1 %v1703_v26, %s4706_s24  ;;  %v1489_v26 = vrot.slane %v5196_v40, 4 }
 0x150   : > { %1771 = vrot.lane.b32.xlu0 %v1768_v27, %s6895_s16  ;;  %v5300_v39 = vpop.permute.xlu1 %602  ;;  %v1488_v27 = vrot.slane %v5185_v25, 4 }
 0x152   : > { %v5302_v38 = vpop.permute.xlu0 %596  ;;  %1773 = vrot.lane.b32.xlu1 %v1762_v21, %s6895_s16  ;;  %v5334_v21 = vld [vmem:[#allocation2 + $0x4] sm:$0xff]  ;;  %v1491_v61 = vsel %vm374_vm5, %v1488_v27, %v1489_v26 }
 0x153   : > { %v1629_v62 = vmul.f32 %v5334_v21, %v1623_v36 }
 0x154   : > { %1575 = vrot.lane.b32.xlu0 %v1564_v42, %s4705_s21  ;;  %v391_v24 = vpop.permute.xlu1 %390 }
 0x155   : > { %v399_v49 = vsel %vm398_vm6, %v389_v13, %v391_v24  ;;  %v1635_v43 = vcombine.low %v1629_v62, %v1629_v62 }
 0x156   : > { %407 = vst [vmem:[#allocation3 + $0xb0] sm:$0xf] %v399_v49  ;;  %v663_v30 = vpop.permute.xlu0 %662  ;;  %1777 = vrot.lane.b32.xlu1 %v1763_v59, %s6895_s16  ;;  %v1636_v59 = vcombine.low %v5314_v53, %v5314_v53 }
 0x158   : > { %1579 = vrot.lane.b32.xlu0 %v1565_v51, %s4705_s21  ;;  %v458_v14 = vpop.permute.xlu1 %457 }
 0x159   : > { %v468_v48 = vsel %vm467_vm8, %v458_v14, %v5288_v55 }
 0x15a   : > { %476 = vst [vmem:[#allocation3 + $0xb0] sm:$0xf0] %v468_v48  ;;  %v393_v10 = vpop.permute.xlu0 %392  ;;  %1704 = vrot.lane.b32.xlu1 %v1696_v0, %s4706_s24  ;;  %v1396_v48 = vld [vmem:[#allocation2 + $0x14] sm:$0xf] }
 0x15b   : > { %v400_v35 = vsel %vm398_vm6, %v391_v24, %v393_v10  ;;  %v1426_v24 = vsel %vm1074_vm10, %v1425_v31, %v5183_v23  ;;  %v1492_v23 = vsel %vm6876_vm11, %v1491_v61, %v5196_v40  ;;  %v1290_v31 = vrot.slane %v5210_v46, 4 }
 0x15c   : > { %408 = vst [vmem:[#allocation3 + $0x1b0] sm:$0xf] %v400_v35  ;;  %1642 = vrot.lane.b32.xlu0 %v1636_v59, %s6893_s14  ;;  %v528_v13 = vpop.permute.xlu1 %527  ;;  %v1431_v14 = vmul.f32 %v5353_v60, %v1426_v24  ;;  %v1497_v40 = vmul.f32 %v5353_v60, %v1492_v23 }
 0x15d   : > { %v536_v0 = vsel %vm535_vm7, %v526_v32, %v528_v13 }
 0x15e   : > { %544 = vst [vmem:[#allocation3 + $0x50] sm:$0xf] %v536_v0  ;;  %v464_v18 = vpop.permute.xlu0 %463  ;;  %1573 = vrot.lane.b32.xlu1 %v1569_v2, %s4705_s21  ;;  %v1432_v2 = vmul.f32 %v1423_v11, %v1396_v48 }
 0x15f   : > { %v471_v22 = vsel %vm467_vm8, %v464_v18, %v466_v45 }
 0x160   : > { %479 = vst [vmem:[#allocation3 + $0x18] sm:$0xf0] %v471_v22  ;;  %1646 = vrot.lane.b32.xlu0 %v1637_v15, %s6893_s14  ;;  %v595_v32 = vpop.permute.xlu1 %594 }
 0x161   : > { %v605_v7 = vsel %vm604_vm9, %v595_v32, %v5302_v38 }
 0x162   : > { %613 = vst [vmem:[#allocation3 + $0x50] sm:$0xf0] %v605_v7  ;;  %v530_v29 = vpop.permute.xlu0 %529  ;;  %1577 = vrot.lane.b32.xlu1 %v1570_v37, %s4705_s21  ;;  %v1356_v7 = vrot.slane %v5221_v63, 4 }
 0x163   : > { %v537_v45 = vsel %vm535_vm7, %v528_v13, %v530_v29 }
 0x164   : > { %545 = vst [vmem:[#allocation3 + $0x168] sm:$0xf] %v537_v45  ;;  %1638 = vrot.lane.b32.xlu0 %v1635_v43, %s6893_s14  ;;  %v665_v42 = vpop.permute.xlu1 %664  ;;  %v1355_v43 = vrot.slane %v5213_v56, 4 }
 0x165   : > { %v672_v49 = vsel %vm647_vm4, %v663_v30, %v665_v42  ;;  %v1424_v30 = vsel %vm1074_vm10, %v1422_v12, %v5172_v17  ;;  %v1503_v12 = vcombine.low %v1497_v40, %v1497_v40 }
 0x166   : > { %680 = vst [vmem:[#allocation3 + $0x180] sm:$0xf] %v672_v49  ;;  %v601_v51 = vpop.permute.xlu0 %600  ;;  %1640 = vrot.lane.b32.xlu1 %v1629_v62, %s6893_s14  ;;  %v5371_v15 = vmul.f32 %v5334_v21, %v1424_v30  ;;  %v1490_v62 = vsel %vm6876_vm11, %v1488_v27, %v5185_v25  ;;  %v5405_v49 = vld [vmem:[#allocation2 + $0xc] sm:$0xff]  ;;  %vm6891_vm11 = vcmask 990208  }
 0x167   : > { %v608_v16 = vsel %vm604_vm9, %v601_v51, %v5300_v39  ;;  %v1462_v39 = vld [vmem:[#allocation2 + $0x14] sm:$0xf]  ;;  %v1496_v37 = vmul.f32 %v5334_v21, %v1490_v62 }
 0x168   : > { %616 = vst [vmem:[#allocation3 + $0x48] sm:$0xf0] %v608_v16  ;;  %1442 = vrot.lane.b32.xlu0 %v1431_v14, %s6882_s17  ;;  %v395_v59 = vpop.permute.xlu1 %394  ;;  %v1498_v11 = vmul.f32 %v1489_v26, %v1462_v39  ;;  %v1436_v22 = vcombine.high %v5371_v15, %v5371_v15  ;;  %v1329_v39 = vld [vmem:[#allocation2 + $0x14] sm:$0xf] }
 0x169   : > { %v401_v36 = vsel %vm398_vm6, %v393_v10, %v395_v59  ;;  %v402_v35 = vsel %vm398_vm6, %v395_v59, %v5273_v58  ;;  %v1502_v61 = vcombine.low %v1496_v37, %v1496_v37  ;;  %v1263_v59 = vld [vmem:[#allocation2 + $0x14] sm:$0xf] }
 0x16a   : > { %409 = vst [vmem:[#allocation3 + $0xd8] sm:$0xf] %v401_v36  ;;  %410 = vst [vmem:[#allocation3 + $0x18] sm:$0xf] %v402_v35  ;;  %v667_v13 = vpop.permute.xlu0 %666  ;;  %1644 = vrot.lane.b32.xlu1 %v5314_v53, %s6893_s14  ;;  %v1299_v35 = vmul.f32 %v1290_v31, %v1263_v59 }
 0x16b   : > { %v673_v0 = vsel %vm647_vm4, %v665_v42, %v667_v13 }
 0x16c   : > { %681 = vst [vmem:[#allocation3 + $0x110] sm:$0xf] %v673_v0  ;;  %1446 = vrot.lane.b32.xlu0 %v1432_v2, %s6882_s17  ;;  %v462_v17 = vpop.permute.xlu1 %461 }
 0x16d   : > { %v469_v58 = vsel %vm467_vm8, %v5288_v55, %v462_v17  ;;  %v470_v10 = vsel %vm467_vm8, %v462_v17, %v464_v18  ;;  %v1289_v55 = vrot.slane %v5198_v41, 4  ;;  %v1365_v17 = vmul.f32 %v1356_v7, %v1329_v39 }
 0x16e   : > { %477 = vst [vmem:[#allocation3 + $0x1b0] sm:$0xf0] %v469_v58  ;;  %478 = vst [vmem:[#allocation3 + $0xd8] sm:$0xf0] %v470_v10  ;;  %v5377_v53 = vpop.permute.xlu0 %974  ;;  %1571 = vrot.lane.b32.xlu1 %v5317_v47, %s4705_s21  ;;  %v1504_v47 = vcombine.low %v1498_v11, %v1498_v11  ;;  %v1185_v11 = vrot.slane %v5234_v19, 4 }
 0x16f   : > { %v1292_v27 = vsel %vm374_vm5, %v1289_v55, %v1290_v31  ;;  %v1291_v36 = vsel %vm1211_vm12, %v1289_v55, %v5198_v41  ;;  %v1227_v55 = vld [vmem:[#allocation7 + $0x25] ss:$8 sm:$0xf] }
 0x170   : > { %1509 = vrot.lane.b32.xlu0 %v1503_v12, %s6877_s7  ;;  %v532_v18 = vpop.permute.xlu1 %531  ;;  %v1293_v48 = vsel %vm1211_vm12, %v1292_v27, %v5210_v46  ;;  %v5431_v0 = vmul.f32 %v5334_v21, %v1291_v36  ;;  %v1184_v12 = vrot.slane %v5224_v8, 4 }
 0x171   : > { %v538_v26 = vsel %vm535_vm7, %v530_v29, %v532_v18  ;;  %v539_v32 = vsel %vm535_vm7, %v532_v18, %v5279_v9  ;;  %v1437_v9 = vcombine.high %v1431_v14, %v1431_v14  ;;  %v1358_v14 = vsel %vm374_vm5, %v1355_v43, %v1356_v7 }
 0x172   : > { %546 = vst [vmem:[#allocation3 + $0x130] sm:$0xf] %v538_v26  ;;  %547 = vst [vmem:[#allocation3 + $0x48] sm:$0xf] %v539_v32  ;;  %v5392_v25 = vpop.permute.xlu0 %775  ;;  %1440 = vrot.lane.b32.xlu1 %v1436_v22, %s6882_s17  ;;  %v1298_v16 = vmul.f32 %v1293_v48, %v5405_v49  ;;  %v1359_v46 = vsel %vm1143_vm13, %v1358_v14, %v5221_v63  ;;  %v1303_v10 = vcombine.high %v5431_v0, %v5431_v0 }
 0x173   : > { %v1371_v22 = vcombine.low %v1365_v17, %v1365_v17  ;;  %v1188_v18 = vsel %vm374_vm5, %v1184_v12, %v1185_v11  ;;  %v1048_v48 = vrot.slane %v5246_v34, 4  ;;  %v1047_v14 = vrot.slane %v5237_v20, 4  ;;  %v1158_v17 = vld [vmem:[#allocation2 + $0x10] sm:$0xf] }
 0x174   : > { %1513 = vrot.lane.b32.xlu0 %v1504_v47, %s6877_s7  ;;  %v599_v29 = vpop.permute.xlu1 %598  ;;  %v1304_v32 = vcombine.high %v1298_v16, %v1298_v16  ;;  %v1232_v47 = vrot.slane %v1227_v55, %v4891_v3 }
 0x175   : > { %v606_v45 = vsel %vm604_vm9, %v5302_v38, %v599_v29  ;;  %v607_v24 = vsel %vm604_vm9, %v599_v29, %v601_v51  ;;  %v1240_v29 = vrot.slane %v1227_v55, %v4895_v5 }
 0x176   : > { %614 = vst [vmem:[#allocation3 + $0x168] sm:$0xf0] %v606_v45  ;;  %615 = vst [vmem:[#allocation3 + $0x130] sm:$0xf0] %v607_v24  ;;  %v5402_v42 = vpop.permute.xlu0 %841  ;;  %1444 = vrot.lane.b32.xlu1 %v1437_v9, %s6882_s17  ;;  %v1244_v9 = vrot.slane %v1227_v55, %v4897_v6  ;;  %v5461_v45 = vld [vmem:[#allocation2 + $0x8] sm:$0xff]  ;;  %v1189_v24 = vsel %vm1186_vm14, %v1188_v18, %v5234_v19 }
 0x177   : > { %v5472_v19 = vmul.f32 %v1189_v24, %v5461_v45 }
 0x178   : > { %1505 = vrot.lane.b32.xlu0 %v1502_v61, %s6877_s7  ;;  %v5411_v38 = vpop.permute.xlu1 %668  ;;  %v1224_v61 = vld [vmem:[#allocation2 + $0x4] sm:$0xff]  ;;  %v1246_v59 = vcombine.low %v1240_v29, %v1244_v9 }
 0x179   : > { %v674_v51 = vsel %vm647_vm4, %v667_v13, %v5411_v38  ;;  %v5428_v13 = vmul.f32 %v1359_v46, %v5405_v49 }
 0x17a   : > { %682 = vst [vmem:[#allocation3 + $0x118] sm:$0xf] %v674_v51  ;;  %v5415_v23 = vpop.permute.xlu0 %708  ;;  %1507 = vrot.lane.b32.xlu1 %v1496_v37, %s6877_s7  ;;  %v1236_v37 = vrot.slane %v1227_v55, %v4893_v4  ;;  %v1250_v39 = vmul.f32 %v5405_v49, %v1246_v59  ;;  %v1195_v49 = vmul.f32 %v1185_v11, %v1158_v17 }
 0x17b   : > { %v1370_v41 = vcombine.low %v5428_v13, %v5428_v13  ;;  %v1200_v59 = vcombine.high %v5472_v19, %v5472_v19 }
 0x17c   : > { %1309 = vrot.lane.b32.xlu0 %v1298_v16, %s6884_s25  ;;  %v5422_v30 = vpop.permute.xlu1 %976  ;;  %1260 = vst [vmem:[#allocation3 + $0xb8] sm:$0xf0] %v1250_v39 }
 0x17e   : > { %v2106_v2 = vpop.permute.xlu0 %2105  ;;  %1511 = vrot.lane.b32.xlu1 %v1497_v40, %s6877_s7  ;;  %v1357_v40 = vsel %vm1143_vm13, %v1355_v43, %v5213_v56  ;;  %v1245_v43 = vcombine.low %v1232_v47, %v1236_v37  ;;  %v1116_v37 = vrot.slane %v5259_v44, 4  ;;  %s6914_s7 = smov 7  }
 0x180   : > { %1313 = vrot.lane.b32.xlu0 %v1299_v35, %s6884_s25  ;;  %v5434_v63 = vpop.permute.xlu1 %777  ;;  %v1249_v16 = vmul.f32 %v1245_v43, %v1224_v61 }
 0x182   : > { %v2110_v58 = vpop.permute.xlu0 %2109  ;;  %1438 = vrot.lane.b32.xlu1 %v5371_v15, %s6882_s17  ;;  %v1363_v15 = vmul.f32 %v5334_v21, %v1357_v40  ;;  %1258 = vst [vmem:[#allocation3 + $0xf8] sm:$0xf0] %v1249_v16  ;;  %s6916_s17 = smov 127  }
 0x184   : > { %1376 = vrot.lane.b32.xlu0 %v1370_v41, %s6880_s15  ;;  %v5447_v62 = vpop.permute.xlu1 %843  ;;  %v1369_v27 = vcombine.low %v1363_v15, %v1363_v15  ;;  %v1050_v41 = vsel %vm6892_vm15, %v1047_v14, %v5237_v20 }
 0x186   : > { %v2104_v31 = vpop.permute.xlu0 %2103  ;;  %1307 = vrot.lane.b32.xlu1 %v1303_v10, %s6884_s25  ;;  %v1254_v10 = vcombine.low %v1250_v39, %v1250_v39 }
 0x187   : > { %v2113_v56 = vsel %vm6898_vm0, %v2104_v31, %v2106_v2  ;;  %v5486_v31 = vmul.f32 %v1050_v41, %v5039_v52  ;;  %v913_v41 = vrot.slane %v5271_v57, 4 }
 0x188   : > { %2121 = vst [vmem:[#allocation3 + $0x58] sm:$0xf] %v2113_v56  ;;  %1380 = vrot.lane.b32.xlu0 %v1371_v22, %s6880_s15  ;;  %v5454_v26 = vpop.permute.xlu1 %710  ;;  %v1187_v22 = vsel %vm1186_vm14, %v1184_v12, %v5224_v8  ;;  %1259 = vst [vmem:[#allocation3 + $0x190] sm:$0xf0] %v1254_v10  ;;  %v1253_v12 = vcombine.low %v1249_v16, %v1249_v16 }
 0x189   : > { %v1193_v55 = vmul.f32 %v1187_v22, %v5039_v52  ;;  %v1062_v18 = vcombine.high %v5486_v31, %v5486_v31 }
 0x18a   : > { %v1975_v7 = vpop.permute.xlu0 %1974  ;;  %1311 = vrot.lane.b32.xlu1 %v1304_v32, %s6884_s25  ;;  %1257 = vst [vmem:[#allocation3 + $0xe8] sm:$0xf0] %v1253_v12 }
 0x18b   : > { %v1199_v47 = vcombine.high %v1193_v55, %v1193_v55 }
 0x18c   : > { %1372 = vrot.lane.b32.xlu0 %v1369_v27, %s6880_s15  ;;  %v2108_v51 = vpop.permute.xlu1 %2107  ;;  %v1115_v27 = vrot.slane %v5249_v54, 4 }
 0x18d   : > { %v2114_v46 = vsel %vm6898_vm0, %v2106_v2, %v2108_v51  ;;  %v2115_v36 = vsel %vm6898_vm0, %v2108_v51, %v2110_v58  ;;  %v1051_v2 = vsel %vm374_vm5, %v1047_v14, %v1048_v48 }
 0x18e   : > { %2122 = vst [vmem:[#allocation3 + $0xf0] sm:$0xf] %v2114_v46  ;;  %2123 = vst [vmem:[#allocation3 + $0x30] sm:$0xf] %v2115_v36  ;;  %v1979_v35 = vpop.permute.xlu0 %1978  ;;  %1374 = vrot.lane.b32.xlu1 %v1363_v15, %s6880_s15  ;;  %v1052_v56 = vsel %vm6892_vm15, %v1051_v2, %v5246_v34  ;;  %v1118_v51 = vsel %vm6891_vm11, %v1115_v27, %v5249_v54 }
 0x18f   : > { %v1057_v52 = vmul.f32 %v1052_v56, %v5461_v45 }
 0x190   : > { %1205 = vrot.lane.b32.xlu0 %v5472_v19, %s6888_s10  ;;  %v2112_v40 = vpop.permute.xlu1 %2111  ;;  %v912_v19 = vrot.slane %v5262_v33, 4 }
 0x191   : > { %v2116_v15 = vsel %vm6898_vm0, %v2110_v58, %v2112_v40  ;;  %v1063_v14 = vcombine.high %v1057_v52, %v1057_v52 }
 0x192   : > { %2124 = vst [vmem:[#allocation3 + $0x198] sm:$0xf] %v2116_v15  ;;  %v2042_v20 = vpop.permute.xlu0 %2041  ;;  %1378 = vrot.lane.b32.xlu1 %v5428_v13, %s6880_s15  ;;  %v2178_v13 = vld [vmem:[#allocation3 + $0x58] sm:$0xf]  ;;  %v915_v56 = vsel %vm374_vm5, %v912_v19, %v913_v41  ;;  %s6915_s15 = smov 9  }
 0x194   : > { %1209 = vrot.lane.b32.xlu0 %v1195_v49, %s6888_s10  ;;  %v1973_v8 = vpop.permute.xlu1 %1972  ;;  %v914_v49 = vsel %vm398_vm6, %v912_v19, %v5262_v33  ;;  %v916_v33 = vsel %vm398_vm6, %v915_v56, %v5271_v57  ;;  %v5588_v56 = vld [vmem:[#allocation2 + $0x8] sm:$0xff]  ;;  %v845_v57 = vrot.slane %v5402_v42, 4 }
 0x195   : > { %v1981_v58 = vsel %vm510_vm2, %v1973_v8, %v1975_v7  ;;  %v2179_v11 = vld [vmem:[#allocation3 + $0xf0] sm:$0xf]  ;;  %v921_v34 = vmul.f32 %v916_v33, %v5461_v45 }
 0x196   : > { %1989 = vst [vmem:[#allocation3 + $0x38] sm:$0xf] %v1981_v58  ;;  %v2046_v32 = vpop.permute.xlu0 %2045  ;;  %1305 = vrot.lane.b32.xlu1 %v5431_v0, %s6884_s25  ;;  %4466 = vmatprep.subr.msk.mxu0 %vm374_vm5, %v2179_v11  ;;  %v2180_v61 = vld [vmem:[#allocation3 + $0x30] sm:$0xf]  ;;  %s6917_s25 = smov 120  }
 0x197   : > { %4467 = vmatpush1.msk.msra.mxu0 %vm374_vm5, %v2178_v13 }
 0x198   : > { %1066 = vrot.lane.b32.xlu0 %v1062_v18, %s6886_s20  ;;  %v1977_v43 = vpop.permute.xlu1 %1976 }
 0x199   : > { %v1982_v29 = vsel %vm510_vm2, %v1975_v7, %v1977_v43  ;;  %v1983_v0 = vsel %vm510_vm2, %v1977_v43, %v1979_v35  ;;  %v2181_v9 = vld [vmem:[#allocation3 + $0x198] sm:$0xf]  ;;  %v1119_v7 = vsel %vm374_vm5, %v1115_v27, %v1116_v37  ;;  %v5520_v35 = vld [vmem:[#allocation2] sm:$0xff] }
 0x19a   : > { %1990 = vst [vmem:[#allocation3 + $0x88] sm:$0xf] %v1982_v29  ;;  %1991 = vst [vmem:[#allocation3 + $0x170] sm:$0xf] %v1983_v0  ;;  %v2038_v24 = vpop.permute.xlu0 %2037  ;;  %1203 = vrot.lane.b32.xlu1 %v1199_v47, %s6888_s10  ;;  %4469 = vmatprep.subr.msk.mxu1 %vm374_vm5, %v2181_v9  ;;  %v5523_v54 = vmul.f32 %v5520_v35, %v1118_v51  ;;  %v1120_v17 = vsel %vm6891_vm11, %v1119_v7, %v5259_v44  ;;  %v979_v0 = vrot.slane %v5422_v30, 4 }
 0x19b   : > { %4470 = vmatpush1.msk.msra.mxu1 %vm374_vm5, %v2180_v61  ;;  %v1125_v15 = vmul.f32 %v1120_v17, %v5461_v45  ;;  %v5544_v18 = vmul.f32 %v5520_v35, %v914_v49  ;;  %v927_v44 = vcombine.high %v921_v34, %v921_v34 }
 0x19c   : > { %1070 = vrot.lane.b32.xlu0 %v1063_v14, %s6886_s20  ;;  %v2040_v16 = vpop.permute.xlu1 %2039 }
 0x19d   : > { %v2047_v46 = vsel %vm6879_vm1, %v2038_v24, %v2040_v16  ;;  %v2048_v36 = vsel %vm6879_vm1, %v2040_v16, %v2042_v20  ;;  %v926_v29 = vcombine.high %v5544_v18, %v5544_v18  ;;  %v1131_v24 = vcombine.low %v1125_v15, %v1125_v15 }
 0x19e   : > { %2055 = vst [vmem:[#allocation3 + $0x128] sm:$0xf0] %v2047_v46  ;;  %2056 = vst [vmem:[#allocation3 + $0x38] sm:$0xf0] %v2048_v36  ;;  %v1842_v39 = vpop.permute.xlu0 %1841  ;;  %1207 = vrot.lane.b32.xlu1 %v1200_v59, %s6888_s10 }
 0x1a0   : > { %1135 = vrot.lane.b32.xlu0 %v5523_v54, %s6914_s7  ;;  %v2044_v2 = vpop.permute.xlu1 %2043 }
 0x1a1   : > { %v2049_v40 = vsel %vm6879_vm1, %v2042_v20, %v2044_v2  ;;  %v2050_v10 = vsel %vm6879_vm1, %v2044_v2, %v2046_v32  ;;  %v1021_v20 = vld [vmem:[#allocation2 + $0x10] sm:$0xf]  ;;  %vm6890_vm1 = vcmask 973824  }
 0x1a2   : > { %2057 = vst [vmem:[#allocation3 + $0x88] sm:$0xf0] %v2049_v40  ;;  %2058 = vst [vmem:[#allocation3 + $0x170] sm:$0xf0] %v2050_v10  ;;  %v1846_v22 = vpop.permute.xlu0 %1845  ;;  %1201 = vrot.lane.b32.xlu1 %v1193_v55, %s6888_s10  ;;  %v1058_v32 = vmul.f32 %v1048_v48, %v1021_v20  ;;  %v978_v48 = vrot.slane %v5377_v53, 4  ;;  %v1130_v40 = vcombine.low %v5523_v54, %v5523_v54  ;;  %v780_v10 = vrot.slane %v5434_v63, 4 }
 0x1a4   : > { %1139 = vrot.lane.b32.xlu0 %v1125_v15, %s6914_s7  ;;  %v1971_v12 = vpop.permute.xlu1 %1970  ;;  %v982_v59 = vsel %vm374_vm5, %v978_v48, %v979_v0 }
 0x1a5   : > { %v1980_v58 = vsel %vm510_vm2, %v1971_v12, %v1973_v8  ;;  %v2175_v11 = vld [vmem:[#allocation3 + $0x38] sm:$0xff]  ;;  %v983_v2 = vsel %vm6890_vm1, %v982_v59, %v5422_v30  ;;  %v847_v30 = vsel %vm467_vm8, %v845_v57, %v5402_v42 }
 0x1a6   : > { %1988 = vst [vmem:[#allocation3 + $0x128] sm:$0xf] %v1980_v58  ;;  %v1909_v55 = vpop.permute.xlu0 %1908  ;;  %1068 = vrot.lane.b32.xlu1 %v1057_v52, %s6886_s20  ;;  %2204 = vmatprep.subr.mxu0 %v2175_v11  ;;  %v1089_v8 = vld [vmem:[#allocation2 + $0x10] sm:$0xf]  ;;  %v988_v12 = vmul.f32 %v5588_v56, %v983_v2  ;;  %v712_v2 = vrot.slane %v5415_v23, 4 }
 0x1a8   : > { %1064 = vrot.lane.b32.xlu0 %v5486_v31, %s6886_s20  ;;  %v1840_v13 = vpop.permute.xlu1 %1839  ;;  %v1126_v31 = vmul.f32 %v1116_v37, %v1089_v8  ;;  %v981_v37 = vsel %vm6890_vm1, %v978_v48, %v5377_v53  ;;  %v779_v53 = vrot.slane %v5392_v25, 4 }
 0x1a9   : > { %v1848_v47 = vsel %vm647_vm4, %v1840_v13, %v1842_v39  ;;  %v2177_v27 = vld [vmem:[#allocation3 + $0x170] sm:$0xff]  ;;  %v2176_v43 = vld [vmem:[#allocation3 + $0x88] sm:$0xff]  ;;  %v5575_v17 = vmul.f32 %v5520_v35, %v981_v37 }
 0x1aa   : > { %1856 = vst [vmem:[#allocation3 + $0x78] sm:$0xf] %v1848_v47  ;;  %v1913_v52 = vpop.permute.xlu0 %1912  ;;  %1072 = vrot.lane.b32.xlu1 %v1058_v32, %s6886_s20  ;;  %2275 = vmatprep.subr.mxu1 %v2177_v27  ;;  %v1132_v16 = vcombine.low %v1126_v31, %v1126_v31  ;;  %v781_v54 = vsel %vm535_vm7, %v779_v53, %v5392_v25 }
 0x1ab   : > { %2276 = vmatpush1.msra.mxu1 %v2176_v43  ;;  %v782_v58 = vsel %vm374_vm5, %v779_v53, %v780_v10  ;;  %v5600_v8 = vmul.f32 %v5520_v35, %v781_v54  ;;  %v993_v53 = vcombine.low %v5575_v17, %v5575_v17  ;;  %v753_v54 = vld [vmem:[#allocation2 + $0x10] sm:$0xf] }
 0x1ac   : > { %930 = vrot.lane.b32.xlu0 %v926_v29, %s4700_s11  ;;  %v1844_v9 = vpop.permute.xlu1 %1843  ;;  %v783_v25 = vsel %vm535_vm7, %v782_v58, %v5434_v63  ;;  %v686_v63 = vld [vmem:[#allocation2 + $0x10] sm:$0xf] }
 0x1ad   : > { %v1849_v61 = vsel %vm647_vm4, %v1842_v39, %v1844_v9  ;;  %v1850_v14 = vsel %vm647_vm4, %v1844_v9, %v1846_v22  ;;  %v2174_v51 = vld [vmem:[#allocation3 + $0x128] sm:$0xff]  ;;  %v793_v31 = vcombine.high %v5600_v8, %v5600_v8 }
 0x1ae   : > { %1857 = vst [vmem:[#allocation3 + $0xa0] sm:$0xf] %v1849_v61  ;;  %1858 = vst [vmem:[#allocation3 + $0x158] sm:$0xf] %v1850_v14  ;;  %v1905_v7 = vpop.permute.xlu0 %1904  ;;  %1137 = vrot.lane.b32.xlu1 %v1131_v24, %s6914_s7  ;;  %2205 = vmatpush1.msra.mxu0 %v2174_v51  ;;  %v846_v24 = vrot.slane %v5447_v62, 4 }
 0x1b0   : > { %934 = vrot.lane.b32.xlu0 %v927_v44, %s4700_s11  ;;  %v1907_v46 = vpop.permute.xlu1 %1906 }
 0x1b1   : > { %v1914_v36 = vsel %vm578_vm3, %v1905_v7, %v1907_v46  ;;  %v1915_v39 = vsel %vm578_vm3, %v1907_v46, %v1909_v55 }
 0x1b2   : > { %1922 = vst [vmem:[#allocation3 + $0x70] sm:$0xf0] %v1914_v36  ;;  %1923 = vst [vmem:[#allocation3 + $0x78] sm:$0xf0] %v1915_v39  ;;  %v1709_v19 = vpop.permute.xlu0 %1708  ;;  %1141 = vrot.lane.b32.xlu1 %v1132_v16, %s6914_s7  ;;  %v848_v16 = vsel %vm374_vm5, %v845_v57, %v846_v24  ;;  %v5631_v39 = vmul.f32 %v5520_v35, %v847_v30 }
 0x1b3   : > { %v849_v42 = vsel %vm467_vm8, %v848_v16, %v5447_v62  ;;  %v2340_v16 = vld [vmem:[%s6859_s3] sm:$0xf] }
 0x1b4   : > { %998 = vrot.lane.b32.xlu0 %v5575_v17, %s6915_s15  ;;  %v1911_v22 = vpop.permute.xlu1 %1910 }
 0x1b5   : > { %v1916_v15 = vsel %vm578_vm3, %v1909_v55, %v1911_v22  ;;  %v1917_v49 = vsel %vm578_vm3, %v1911_v22, %v1913_v52  ;;  %v886_v55 = vld [vmem:[#allocation2 + $0x10] sm:$0xf] }
 0x1b6   : > { %1924 = vst [vmem:[#allocation3 + $0xa0] sm:$0xf0] %v1916_v15  ;;  %1925 = vst [vmem:[#allocation3 + $0x158] sm:$0xf0] %v1917_v49  ;;  %v1713_v20 = vpop.permute.xlu0 %1712  ;;  %1133 = vrot.lane.b32.xlu1 %v1130_v40, %s6914_s7  ;;  %v922_v27 = vmul.f32 %v913_v41, %v886_v55  ;;  %v713_v40 = vrot.slane %v5454_v26, 4  ;;  %v854_v49 = vmul.f32 %v5588_v56, %v849_v42 }
 0x1b8   : > { %1002 = vrot.lane.b32.xlu0 %v988_v12, %s6915_s15  ;;  %v1838_v11 = vpop.permute.xlu1 %1837  ;;  %v715_v17 = vsel %vm374_vm5, %v712_v2, %v713_v40 }
 0x1b9   : > { %v1847_v33 = vsel %vm647_vm4, %v1838_v11, %v1840_v13  ;;  %v2171_v32 = vld [vmem:[#allocation3 + $0x78] sm:$0xff] }
 0x1ba   : > { %1855 = vst [vmem:[#allocation3 + $0x70] sm:$0xf] %v1847_v33  ;;  %v1776_v47 = vpop.permute.xlu0 %1775  ;;  %932 = vrot.lane.b32.xlu1 %v921_v34, %s4700_s11  ;;  %2206 = vmatprep.subr.mxu0 %v2171_v32  ;;  %v952_v13 = vld [vmem:[#allocation2 + $0x10] sm:$0xf]  ;;  %v788_v34 = vmul.f32 %v5588_v56, %v783_v25  ;;  %v716_v33 = vsel %vm604_vm9, %v715_v17, %v5454_v26 }
 0x1bb   : > { %v989_v41 = vmul.f32 %v979_v0, %v952_v13  ;;  %v619_v56 = vld [vmem:[#allocation2 + $0x10] sm:$0xf]  ;;  %v789_v32 = vmul.f32 %v780_v10, %v753_v54  ;;  %v4717_v10 = vmov 0  }
 0x1bc   : > { %928 = vrot.lane.b32.xlu0 %v5544_v18, %s4700_s11  ;;  %v1707_v43 = vpop.permute.xlu1 %1706  ;;  %v994_v18 = vcombine.low %v988_v12, %v988_v12  ;;  %v794_v44 = vcombine.high %v788_v34, %v788_v34  ;;  %v819_v25 = vld [vmem:[#allocation2 + $0x10] sm:$0xf]  ;;  %4564 = vset.pattern.permute.xlu1 %v4717_v10 }
 0x1bd   : > { %v1715_v29 = vsel %vm535_vm7, %v1707_v43, %v1709_v19  ;;  %v2173_v52 = vld [vmem:[#allocation3 + $0x158] sm:$0xff]  ;;  %v2172_v48 = vld [vmem:[#allocation3 + $0xa0] sm:$0xff]  ;;  %v995_v0 = vcombine.low %v989_v41, %v989_v41  ;;  %4563 = vset.pattern.permute.xlu0 %v4717_v10 }
 0x1be   : > { %1723 = vst [vmem:[#allocation3 + $0x100] sm:$0xf] %v1715_v29  ;;  %v1780_v9 = vpop.permute.xlu0 %1779  ;;  %936 = vrot.lane.b32.xlu1 %v922_v27, %s4700_s11  ;;  %2277 = vmatprep.subr.mxu1 %v2173_v52  ;;  %v656_v29 = vmul.f32 %v646_v50, %v619_v56  ;;  %v5662_v52 = vmul.f32 %v716_v33, %v5461_v45 }
 0x1bf   : > { %2278 = vmatpush1.msra.mxu1 %v2172_v48  ;;  %v860_v48 = vcombine.low %v854_v49, %v854_v49 }
 0x1c0   : > { %797 = vrot.lane.b32.xlu0 %v793_v31, %s4702_s23  ;;  %v1711_v61 = vpop.permute.xlu1 %1710 }
 0x1c1   : > { %v1716_v14 = vsel %vm535_vm7, %v1709_v19, %v1711_v61  ;;  %v1717_v51 = vsel %vm535_vm7, %v1711_v61, %v1713_v20  ;;  %v2170_v7 = vld [vmem:[#allocation3 + $0x70] sm:$0xff] }
 0x1c2   : > { %1724 = vst [vmem:[#allocation3 + $0x160] sm:$0xf] %v1716_v14  ;;  %1725 = vst [vmem:[#allocation3 + $0x20] sm:$0xf] %v1717_v51  ;;  %v1772_v37 = vpop.permute.xlu0 %1771  ;;  %1000 = vrot.lane.b32.xlu1 %v994_v18, %s6915_s15  ;;  %2207 = vmatpush1.msra.mxu0 %v2170_v7  ;;  %v859_v51 = vcombine.low %v5631_v39, %v5631_v39 }
 0x1c4   : > { %801 = vrot.lane.b32.xlu0 %v794_v44, %s4702_s23  ;;  %v1774_v59 = vpop.permute.xlu1 %1773  ;;  %v684_v44 = vld [vmem:[#allocation2] sm:$0xff] }
 0x1c5   : > { %v1781_v46 = vsel %vm604_vm9, %v1772_v37, %v1774_v59  ;;  %v1782_v36 = vsel %vm604_vm9, %v1774_v59, %v1776_v47  ;;  %v714_v37 = vsel %vm604_vm9, %v712_v2, %v5415_v23  ;;  %v5689_v59 = vld [vmem:[#allocation7] ss:$8 sm:$0xf] }
 0x1c6   : > { %1789 = vst [vmem:[#allocation3 + $0x10] sm:$0xf0] %v1781_v46  ;;  %1790 = vst [vmem:[#allocation3 + $0x100] sm:$0xf0] %v1782_v36  ;;  %v1576_v19 = vpop.permute.xlu0 %1575  ;;  %1004 = vrot.lane.b32.xlu1 %v995_v0, %s6915_s15  ;;  %v2390_v36 = vrot.slane %v5689_v59, %v4895_v5  ;;  %v2394_v23 = vrot.slane %v5689_v59, %v4897_v6 }
 0x1c8   : > { %864 = vrot.lane.b32.xlu0 %v5631_v39, %s4701_s13  ;;  %v1778_v35 = vpop.permute.xlu1 %1777  ;;  %v720_v39 = vmul.f32 %v714_v37, %v684_v44  ;;  %v2396_v2 = vcombine.low %v2390_v36, %v2394_v23 }
 0x1c9   : > { %v1783_v22 = vsel %vm604_vm9, %v1776_v47, %v1778_v35  ;;  %v1784_v15 = vsel %vm604_vm9, %v1778_v35, %v1780_v9  ;;  %v727_v9 = vcombine.low %v5662_v52, %v5662_v52 }
 0x1ca   : > { %1791 = vst [vmem:[#allocation3 + $0x160] sm:$0xf0] %v1783_v22  ;;  %1792 = vst [vmem:[#allocation3 + $0x20] sm:$0xf0] %v1784_v15  ;;  %v1580_v12 = vpop.permute.xlu0 %1579  ;;  %996 = vrot.lane.b32.xlu1 %v993_v53, %s6915_s15  ;;  %v726_v33 = vcombine.low %v720_v39, %v720_v39 }
 0x1cc   : > { %868 = vrot.lane.b32.xlu0 %v854_v49, %s4701_s13  ;;  %v1705_v20 = vpop.permute.xlu1 %1704 }
 0x1cd   : > { %v1714_v58 = vsel %vm535_vm7, %v1705_v20, %v1707_v43  ;;  %v2167_v11 = vld [vmem:[#allocation3 + $0x100] sm:$0xff] }
 0x1ce   : > { %1722 = vst [vmem:[#allocation3 + $0x10] sm:$0xf] %v1714_v58  ;;  %v1643_v55 = vpop.permute.xlu0 %1642  ;;  %799 = vrot.lane.b32.xlu1 %v788_v34, %s4702_s23  ;;  %2208 = vmatprep.subr.mxu0 %v2167_v11  ;;  %v722_v34 = vmul.f32 %v713_v40, %v686_v63  ;;  %v5697_v40 = vld [vmem:[#allocation7 + $0x62] ss:$8 sm:$0xf] }
 0x1cf   : > { %v4055_v22 = vrot.slane %v5697_v40, %v4891_v3  ;;  %v4059_v15 = vrot.slane %v5697_v40, %v4893_v4  ;;  %v5709_v58 = vld [vmem:[#allocation7 + $0x60] ss:$8 sm:$0xf] }
 0x1d0   : > { %795 = vrot.lane.b32.xlu0 %v5600_v8, %s4702_s23  ;;  %v1574_v47 = vpop.permute.xlu1 %1573  ;;  %v855_v8 = vmul.f32 %v846_v24, %v819_v25  ;;  %v728_v61 = vcombine.low %v722_v34, %v722_v34  ;;  %v3928_v56 = vrot.slane %v5709_v58, %v4893_v4  ;;  %v2350_v63 = vld [vmem:[%s6860_s4] sm:$0xf] }
 0x1d1   : > { %v1582_v27 = vsel %vm398_vm6, %v1574_v47, %v1576_v19  ;;  %v2169_v43 = vld [vmem:[#allocation3 + $0x20] sm:$0xff]  ;;  %v4068_v54 = vcombine.low %v4055_v22, %v4059_v15 }
 0x1d2   : > { %v2168_v13 = vld [vmem:[#allocation3 + $0x160] sm:$0xff]  ;;  %1590 = vst [vmem:[#allocation3 + $0xa8] sm:$0xf] %v1582_v27  ;;  %v1647_v26 = vpop.permute.xlu0 %1646  ;;  %803 = vrot.lane.b32.xlu1 %v789_v32, %s4702_s23  ;;  %2279 = vmatprep.subr.mxu1 %v2169_v43  ;;  %v861_v62 = vcombine.low %v855_v8, %v855_v8 }
 0x1d3   : > { %2280 = vmatpush1.msra.mxu1 %v2168_v13  ;;  %v5720_v13 = vld [vmem:[#allocation7 + $0x61] ss:$8 sm:$0xf] }
 0x1d4   : > { %670 = vrot.lane.b32.xlu0 %v656_v29, %s4704_s19  ;;  %v1578_v28 = vpop.permute.xlu1 %1577  ;;  %v3989_v10 = vrot.slane %v5720_v13, %v4891_v3  ;;  %v3993_v8 = vrot.slane %v5720_v13, %v4893_v4  ;;  %v3997_v22 = vrot.slane %v5720_v13, %v4895_v5  ;;  %v4001_v15 = vrot.slane %v5720_v13, %v4897_v6 }
 0x1d5   : > { %v1583_v50 = vsel %vm398_vm6, %v1576_v19, %v1578_v28  ;;  %v1584_v45 = vsel %vm398_vm6, %v1578_v28, %v1580_v12  ;;  %v2166_v31 = vld [vmem:[#allocation3 + $0x10] sm:$0xff] }
 0x1d6   : > { %1591 = vst [vmem:[#allocation3 + $0xd0] sm:$0xf] %v1583_v50  ;;  %1592 = vst [vmem:[#allocation3 + $0x1a0] sm:$0xf] %v1584_v45  ;;  %v1639_v57 = vpop.permute.xlu0 %1638  ;;  %866 = vrot.lane.b32.xlu1 %v860_v48, %s4701_s13  ;;  %2209 = vmatpush1.msra.mxu0 %v2166_v31  ;;  %v4002_v34 = vcombine.low %v3989_v10, %v3993_v8 }
 0x1d7   : > { %v5734_v48 = vld [vmem:[#allocation7 + $0x46] ss:$8 sm:$0xf] }
 0x1d8   : > { %733 = vrot.lane.b32.xlu0 %v727_v9, %s4703_s18  ;;  %v1641_v41 = vpop.permute.xlu1 %1640  ;;  %v3793_v50 = vrot.slane %v5734_v48, %v4891_v3  ;;  %v3797_v9 = vrot.slane %v5734_v48, %v4893_v4 }
 0x1d9   : > { %v1648_v18 = vsel %vm467_vm8, %v1639_v57, %v1641_v41  ;;  %v1649_v24 = vsel %vm467_vm8, %v1641_v41, %v1643_v55  ;;  %v5743_v57 = vld [vmem:[#allocation7 + $0x47] ss:$8 sm:$0xf] }
 0x1da   : > { %1656 = vst [vmem:[#allocation3 + $0x40] sm:$0xf0] %v1648_v18  ;;  %1657 = vst [vmem:[#allocation3 + $0xa8] sm:$0xf0] %v1649_v24  ;;  %v1443_v14 = vpop.permute.xlu0 %1442  ;;  %870 = vrot.lane.b32.xlu1 %v861_v62, %s4701_s13  ;;  %v4063_v18 = vrot.slane %v5697_v40, %v4895_v5  ;;  %v4067_v24 = vrot.slane %v5697_v40, %v4897_v6 }
 0x1dc   : > { %737 = vrot.lane.b32.xlu0 %v728_v61, %s4703_s18  ;;  %v1645_v7 = vpop.permute.xlu1 %1644 }
 0x1dd   : > { %v1650_v30 = vsel %vm467_vm8, %v1643_v55, %v1645_v7  ;;  %v1651_v0 = vsel %vm467_vm8, %v1645_v7, %v1647_v26  ;;  %v3924_v55 = vrot.slane %v5709_v58, %v4891_v3  ;;  %v2386_v26 = vrot.slane %v5689_v59, %v4893_v4 }
 0x1de   : > { %1658 = vst [vmem:[#allocation3 + $0xd0] sm:$0xf0] %v1650_v30  ;;  %1659 = vst [vmem:[#allocation3 + $0x1a0] sm:$0xf0] %v1651_v0  ;;  %v1447_v46 = vpop.permute.xlu0 %1446  ;;  %862 = vrot.lane.b32.xlu1 %v859_v51, %s4701_s13  ;;  %v3858_v51 = vrot.slane %v5743_v57, %v4891_v3  ;;  %v3862_v7 = vrot.slane %v5743_v57, %v4893_v4 }
 0x1df   : > { %v3937_v43 = vcombine.low %v3924_v55, %v3928_v56  ;;  %v5756_v30 = vld [vmem:[#allocation7 + $0x44] ss:$8 sm:$0xf]  ;;  %v5786_v55 = vld [vmem:[#allocation7 + $0x42] ss:$8 sm:$0xf] }
 0x1e0   : > { %v1572_v19 = vpop.permute.xlu1 %1571  ;;  %2343 = vperm.xlu0 %4563, %v2340_v16   ;;  %v4069_v16 = vcombine.low %v4063_v18, %v4067_v24  ;;  %v3871_v23 = vcombine.low %v3858_v51, %v3862_v7  ;;  %v3535_v13 = vrot.slane %v5786_v55, %v4893_v4  ;;  %v3670_v24 = vrot.slane %v5756_v30, %v4895_v5 }
 0x1e1   : > { %v1581_v42 = vsel %vm398_vm6, %v1572_v19, %v1574_v47  ;;  %v2163_v53 = vld [vmem:[#allocation3 + $0xa8] sm:$0xff]  ;;  %v3666_v19 = vrot.slane %v5756_v30, %v4893_v4 }
 0x1e2   : > { %1589 = vst [vmem:[#allocation3 + $0x40] sm:$0xf] %v1581_v42  ;;  %v1510_v35 = vpop.permute.xlu0 %1509  ;;  %731 = vrot.lane.b32.xlu1 %v720_v39, %s4703_s18  ;;  %2210 = vmatprep.subr.mxu0 %v2163_v53  ;;  %v3662_v39 = vrot.slane %v5756_v30, %v4891_v3 }
 0x1e4   : > { %v5704_v49 = vpop.permute.xlu1 %1440  ;;  %2399 = vrot.lane.b32.xlu0 %v2396_v2, %s4700_s11  ;;  %v5770_v2 = vld [vmem:[#allocation7 + $0x45] ss:$8 sm:$0xf] }
 0x1e5   : > { %v1449_v12 = vsel %vm6892_vm15, %v5704_v49, %v1443_v14  ;;  %v2165_v17 = vld [vmem:[#allocation3 + $0x1a0] sm:$0xff]  ;;  %v2164_v20 = vld [vmem:[#allocation3 + $0xd0] sm:$0xff] }
 0x1e6   : > { %1457 = vst [vmem:[#allocation3 + $0x68] sm:$0xf] %v1449_v12  ;;  %v1514_v11 = vpop.permute.xlu0 %1513  ;;  %735 = vrot.lane.b32.xlu1 %v5662_v52, %s4703_s18  ;;  %2281 = vmatprep.subr.mxu1 %v2165_v17  ;;  %v2382_v52 = vrot.slane %v5689_v59, %v4891_v3  ;;  %v3932_v59 = vrot.slane %v5709_v58, %v4895_v5 }
 0x1e7   : > { %2282 = vmatpush1.msra.mxu1 %v2164_v20  ;;  %v3727_v17 = vrot.slane %v5770_v2, %v4891_v3  ;;  %v3731_v20 = vrot.slane %v5770_v2, %v4893_v4 }
 0x1e8   : > { %v1445_v32 = vpop.permute.xlu1 %1444  ;;  %4070 = vrot.lane.b32.xlu0 %v4068_v54, %s4705_s21  ;;  %v2395_v41 = vcombine.low %v2382_v52, %v2386_v26 }
 0x1e9   : > { %v1450_v47 = vsel %vm6892_vm15, %v1443_v14, %v1445_v32  ;;  %v1451_v25 = vsel %vm6892_vm15, %v1445_v32, %v1447_v46  ;;  %v2162_v27 = vld [vmem:[#allocation3 + $0x40] sm:$0xff]  ;;  %v3806_v14 = vcombine.low %v3793_v50, %v3797_v9  ;;  %v3936_v46 = vrot.slane %v5709_v58, %v4897_v6 }
 0x1ea   : > { %1458 = vst [vmem:[#allocation3 + $0x148] sm:$0xf] %v1450_v47  ;;  %1459 = vst [vmem:[#allocation3 + $0x8] sm:$0xf] %v1451_v25  ;;  %v1506_v29 = vpop.permute.xlu0 %1505  ;;  %729 = vrot.lane.b32.xlu1 %v726_v33, %s4703_s18  ;;  %2211 = vmatpush1.msra.mxu0 %v2162_v27  ;;  %v4003_v33 = vcombine.low %v3997_v22, %v4001_v15  ;;  %v3801_v32 = vrot.slane %v5734_v48, %v4895_v5 }
 0x1eb   : > { %v3805_v47 = vrot.slane %v5734_v48, %v4897_v6  ;;  %v3740_v27 = vcombine.low %v3727_v17, %v3731_v20  ;;  %v3866_v48 = vrot.slane %v5743_v57, %v4895_v5  ;;  %v3539_v15 = vrot.slane %v5786_v55, %v4895_v5 }
 0x1ec   : > { %v1508_v28 = vpop.permute.xlu1 %1507  ;;  %3939 = vrot.lane.b32.xlu0 %v3937_v43, %s4706_s24  ;;  %v3531_v43 = vrot.slane %v5786_v55, %v4891_v3 }
 0x1ed   : > { %v1515_v45 = vsel %vm6890_vm1, %v1506_v29, %v1508_v28  ;;  %v1516_v31 = vsel %vm6890_vm1, %v1508_v28, %v1510_v35  ;;  %v3807_v8 = vcombine.low %v3801_v32, %v3805_v47  ;;  %v3870_v28 = vrot.slane %v5743_v57, %v4897_v6 }
 0x1ee   : > { %1523 = vst [vmem:[#allocation3] sm:$0xf0] %v1515_v45  ;;  %1524 = vst [vmem:[#allocation3 + $0x68] sm:$0xf0] %v1516_v31  ;;  %v1310_v62 = vpop.permute.xlu0 %1309  ;;  %2353 = vperm.xlu1 %4564, %v2350_v63   ;;  %v3544_v45 = vcombine.low %v3531_v43, %v3535_v13 }
 0x1ef   : > { %v5800_v63 = vld [vmem:[#allocation7 + $0x43] ss:$8 sm:$0xf]  ;;  %v3872_v57 = vcombine.low %v3866_v48, %v3870_v28 }
 0x1f0   : > { %v1512_v61 = vpop.permute.xlu1 %1511  ;;  %4004 = vrot.lane.b32.xlu0 %v4002_v34, %s6893_s14  ;;  %v3596_v31 = vrot.slane %v5800_v63, %v4891_v3  ;;  %v3600_v34 = vrot.slane %v5800_v63, %v4893_v4  ;;  %v3604_v47 = vrot.slane %v5800_v63, %v4895_v5 }
 0x1f1   : > { %v1517_v44 = vsel %vm6890_vm1, %v1510_v35, %v1512_v61  ;;  %v1518_v37 = vsel %vm6890_vm1, %v1512_v61, %v1514_v11  ;;  %v3938_v35 = vcombine.low %v3932_v59, %v3936_v46  ;;  %v3674_v61 = vrot.slane %v5756_v30, %v4897_v6 }
 0x1f2   : > { %1525 = vst [vmem:[#allocation3 + $0x148] sm:$0xf0] %v1517_v44  ;;  %1526 = vst [vmem:[#allocation3 + $0x8] sm:$0xf0] %v1518_v37  ;;  %v1314_v0 = vpop.permute.xlu0 %1313  ;;  %2397 = vrot.lane.b32.xlu1 %v2395_v41, %s4700_s11  ;;  %v3609_v51 = vcombine.low %v3596_v31, %v3600_v34  ;;  %v3735_v46 = vrot.slane %v5770_v2, %v4895_v5  ;;  %vm6920_vm1 = vcmask 72704  }
 0x1f3   : > { %v5814_v41 = vld [vmem:[#allocation7 + $0x40] ss:$8 sm:$0xf]  ;;  %v3676_v30 = vcombine.low %v3670_v24, %v3674_v61 }
 0x1f4   : > { %v1439_v36 = vpop.permute.xlu1 %1438  ;;  %3808 = vrot.lane.b32.xlu0 %v3806_v14, %s4704_s19  ;;  %v3400_v7 = vrot.slane %v5814_v41, %v4891_v3  ;;  %v3404_v44 = vrot.slane %v5814_v41, %v4893_v4  ;;  %v3408_v28 = vrot.slane %v5814_v41, %v4895_v5 }
 0x1f5   : > { %v1448_v42 = vsel %vm6892_vm15, %v1439_v36, %v5704_v49  ;;  %v2159_v53 = vld [vmem:[#allocation3 + $0x68] sm:$0xff]  ;;  %v3675_v49 = vcombine.low %v3662_v39, %v3666_v19  ;;  %v3739_v36 = vrot.slane %v5770_v2, %v4897_v6 }
 0x1f6   : > { %1456 = vst [vmem:[#allocation3] sm:$0xf] %v1448_v42  ;;  %v1377_v40 = vpop.permute.xlu0 %1376  ;;  %2212 = vmatprep.subr.mxu0 %v2159_v53  ;;  %4072 = vrot.lane.b32.xlu1 %v4069_v16, %s4705_s21  ;;  %v5828_v16 = vld [vmem:[#allocation7 + $0x41] ss:$8 sm:$0xf]  ;;  %v3413_v39 = vcombine.low %v3400_v7, %v3404_v44 }
 0x1f7   : > { %v3465_v19 = vrot.slane %v5828_v16, %v4891_v3  ;;  %v3469_v42 = vrot.slane %v5828_v16, %v4893_v4  ;;  %v3741_v2 = vcombine.low %v3735_v46, %v3739_v36  ;;  %v3473_v61 = vrot.slane %v5828_v16, %v4895_v5  ;;  %v5906_v36 = vld [vmem:[#allocation7 + $0x23] ss:$8 sm:$0xf] }
 0x1f8   : > { %v5777_v12 = vpop.permute.xlu1 %1307  ;;  %3873 = vrot.lane.b32.xlu0 %v3871_v23, %s6895_s16 }
 0x1f9   : > { %v1316_v54 = vsel %vm1186_vm14, %v5777_v12, %v1310_v62  ;;  %v2161_v58 = vld [vmem:[#allocation3 + $0x8] sm:$0xff] }
 0x1fa   : > { %v2160_v11 = vld [vmem:[#allocation3 + $0x148] sm:$0xff]  ;;  %1324 = vst [vmem:[#allocation3 + $0xc0] sm:$0xf] %v1316_v54  ;;  %v1381_v56 = vpop.permute.xlu0 %1380  ;;  %2283 = vmatprep.subr.mxu1 %v2161_v58  ;;  %3941 = vrot.lane.b32.xlu1 %v3938_v35, %s4706_s24 }
 0x1fb   : > { %2284 = vmatpush1.msra.mxu1 %v2160_v11  ;;  %v5842_v35 = vld [vmem:[#allocation7 + $0x26] ss:$8 sm:$0xf] }
 0x1fc   : > { %v1312_v25 = vpop.permute.xlu1 %1311  ;;  %3677 = vrot.lane.b32.xlu0 %v3675_v49, %s4702_s23  ;;  %v3543_v49 = vrot.slane %v5786_v55, %v4897_v6  ;;  %v3269_v20 = vrot.slane %v5842_v35, %v4891_v3  ;;  %v3273_v54 = vrot.slane %v5842_v35, %v4893_v4 }
 0x1fd   : > { %v1317_v29 = vsel %vm1186_vm14, %v1310_v62, %v1312_v25  ;;  %v1318_v52 = vsel %vm1186_vm14, %v1312_v25, %v1314_v0  ;;  %v2158_v26 = vld [vmem:[#allocation3] sm:$0xff]  ;;  %v3608_v25 = vrot.slane %v5800_v63, %v4897_v6 }
 0x1fe   : > { %1325 = vst [vmem:[#allocation3 + $0x178] sm:$0xf] %v1317_v29  ;;  %1326 = vst [vmem:[#allocation3 + $0xc8] sm:$0xf] %v1318_v52  ;;  %v1373_v10 = vpop.permute.xlu0 %1372  ;;  %2213 = vmatpush1.msra.mxu0 %v2158_v26  ;;  %4006 = vrot.lane.b32.xlu1 %v4003_v33, %s6893_s14  ;;  %v3545_v55 = vcombine.low %v3539_v15, %v3543_v49  ;;  %v3282_v43 = vcombine.low %v3269_v20, %v3273_v54 }
 0x1ff   : > { %v5857_v33 = vld [vmem:[#allocation7 + $0x27] ss:$8 sm:$0xf]  ;;  %v3610_v48 = vcombine.low %v3604_v47, %v3608_v25  ;;  %v3106_v15 = vrot.slane %v5906_v36, %v4893_v4  ;;  %v5940_v25 = vld [vmem:[#allocation7 + $0x21] ss:$8 sm:$0xf] }
 0x200   : > { %v1375_v50 = vpop.permute.xlu1 %1374  ;;  %3742 = vrot.lane.b32.xlu0 %v3740_v27, %s4703_s18  ;;  %v3334_v13 = vrot.slane %v5857_v33, %v4891_v3  ;;  %v3338_v29 = vrot.slane %v5857_v33, %v4893_v4  ;;  %v3342_v20 = vrot.slane %v5857_v33, %v4895_v5  ;;  %v3346_v54 = vrot.slane %v5857_v33, %v4897_v6 }
 0x201   : > { %v1382_v9 = vsel %vm6891_vm11, %v1373_v10, %v1375_v50  ;;  %v1383_v62 = vsel %vm6891_vm11, %v1375_v50, %v1377_v40  ;;  %v3412_v50 = vrot.slane %v5814_v41, %v4897_v6 }
 0x202   : > { %1390 = vst [vmem:[#allocation3 + $0x90] sm:$0xf0] %v1382_v9  ;;  %1391 = vst [vmem:[#allocation3 + $0xc0] sm:$0xf0] %v1383_v62  ;;  %v1206_v18 = vpop.permute.xlu0 %1205  ;;  %3810 = vrot.lane.b32.xlu1 %v3807_v8, %s4704_s19  ;;  %v3347_v31 = vcombine.low %v3334_v13, %v3338_v29 }
 0x203   : > { %v5873_v8 = vld [vmem:[#allocation7 + $0x24] ss:$8 sm:$0xf]  ;;  %v3414_v41 = vcombine.low %v3408_v28, %v3412_v50  ;;  %v5954_v28 = vld [vmem:[#allocation7 + $0x6] ss:$8 sm:$0xf] }
 0x204   : > { %v1379_v14 = vpop.permute.xlu1 %1378  ;;  %3546 = vrot.lane.b32.xlu0 %v3544_v45, %s4700_s11  ;;  %v3168_v34 = vrot.slane %v5873_v8, %v4891_v3  ;;  %v3172_v9 = vrot.slane %v5873_v8, %v4893_v4  ;;  %v3180_v13 = vrot.slane %v5873_v8, %v4897_v6 }
 0x205   : > { %v1384_v37 = vsel %vm6891_vm11, %v1377_v40, %v1379_v14  ;;  %v1385_v0 = vsel %vm6891_vm11, %v1379_v14, %v1381_v56  ;;  %v3477_v14 = vrot.slane %v5828_v16, %v4897_v6  ;;  %vm6921_vm11 = vmmov %vm6920_vm1 }
 0x206   : > { %1392 = vst [vmem:[#allocation3 + $0x178] sm:$0xf0] %v1384_v37  ;;  %1393 = vst [vmem:[#allocation3 + $0xc8] sm:$0xf0] %v1385_v0  ;;  %v1210_v59 = vpop.permute.xlu0 %1209  ;;  %3875 = vrot.lane.b32.xlu1 %v3872_v57, %s6895_s16  ;;  %v3181_v7 = vcombine.low %v3168_v34, %v3172_v9 }
 0x207   : > { %v5888_v57 = vld [vmem:[#allocation7 + $0x22] ss:$8 sm:$0xf] }
 0x208   : > { %v1306_v23 = vpop.permute.xlu1 %1305  ;;  %3611 = vrot.lane.b32.xlu0 %v3609_v51, %s4701_s13  ;;  %v3037_v44 = vrot.slane %v5888_v57, %v4891_v3  ;;  %v3041_v37 = vrot.slane %v5888_v57, %v4893_v4 }
 0x209   : > { %v1315_v53 = vsel %vm1186_vm14, %v1306_v23, %v5777_v12  ;;  %v2155_v40 = vld [vmem:[#allocation3 + $0xc0] sm:$0xff]  ;;  %v3478_v12 = vcombine.low %v3465_v19, %v3469_v42  ;;  %v3479_v23 = vcombine.low %v3473_v61, %v3477_v14  ;;  %v3281_v19 = vrot.slane %v5842_v35, %v4897_v6 }
 0x20a   : > { %1323 = vst [vmem:[#allocation3 + $0x90] sm:$0xf] %v1315_v53  ;;  %v5844_v22 = vpop.permute.xlu0 %1066  ;;  %2214 = vmatprep.subr.mxu0 %v2155_v40  ;;  %3679 = vrot.lane.b32.xlu1 %v3676_v30, %s4702_s23  ;;  %v3050_v40 = vcombine.low %v3037_v44, %v3041_v37  ;;  %v5970_v61 = vld [vmem:[#allocation7 + $0x7] ss:$8 sm:$0xf] }
 0x20b   : > { %v2840_v37 = vrot.slane %v5970_v61, %v4891_v3 }
 0x20c   : > { %v1204_v17 = vpop.permute.xlu1 %1203  ;;  %3415 = vrot.lane.b32.xlu0 %v3413_v39, %s6886_s20  ;;  %v3277_v39 = vrot.slane %v5842_v35, %v4895_v5  ;;  %v5922_v35 = vld [vmem:[#allocation7 + $0x20] ss:$8 sm:$0xf] }
 0x20d   : > { %v1213_v58 = vsel %vm1211_vm12, %v1204_v17, %v1206_v18  ;;  %v2157_v11 = vld [vmem:[#allocation3 + $0xc8] sm:$0xff]  ;;  %v2156_v56 = vld [vmem:[#allocation3 + $0x178] sm:$0xff] }
 0x20e   : > { %1221 = vst [vmem:[#allocation3 + $0xf8] sm:$0xf] %v1213_v58  ;;  %v5859_v32 = vpop.permute.xlu0 %1070  ;;  %2285 = vmatprep.subr.mxu1 %v2157_v11  ;;  %3744 = vrot.lane.b32.xlu1 %v3741_v2, %s4703_s18  ;;  %v3102_v2 = vrot.slane %v5906_v36, %v4891_v3 }
 0x20f   : > { %2286 = vmatpush1.msra.mxu1 %v2156_v56  ;;  %v2906_v56 = vrot.slane %v5922_v35, %v4891_v3 }
 0x210   : > { %v1208_v27 = vpop.permute.xlu1 %1207  ;;  %3480 = vrot.lane.b32.xlu0 %v3478_v12, %s6915_s15  ;;  %v3283_v12 = vcombine.low %v3277_v39, %v3281_v19  ;;  %v3115_v11 = vcombine.low %v3102_v2, %v3106_v15  ;;  %v2914_v19 = vrot.slane %v5922_v35, %v4895_v5 }
 0x211   : > { %v1214_v52 = vsel %vm1211_vm12, %v1206_v18, %v1208_v27  ;;  %v1215_v26 = vsel %vm1211_vm12, %v1208_v27, %v1210_v59  ;;  %v2154_v10 = vld [vmem:[#allocation3 + $0x90] sm:$0xff]  ;;  %v3348_v27 = vcombine.low %v3342_v20, %v3346_v54  ;;  %v2979_v54 = vrot.slane %v5940_v25, %v4895_v5 }
 0x212   : > { %1222 = vst [vmem:[#allocation3 + $0x190] sm:$0xf] %v1214_v52  ;;  %1223 = vst [vmem:[#allocation3 + $0xb8] sm:$0xf] %v1215_v26  ;;  %v5875_v63 = vpop.permute.xlu0 %1135  ;;  %2215 = vmatpush1.msra.mxu0 %v2154_v10  ;;  %3548 = vrot.lane.b32.xlu1 %v3545_v55, %s4700_s11  ;;  %v2971_v26 = vrot.slane %v5940_v25, %v4891_v3  ;;  %v2975_v10 = vrot.slane %v5940_v25, %v4893_v4 }
 0x213   : > { %v6002_v20 = vld [vmem:[#allocation7 + $0x5] ss:$8 sm:$0xf] }
 0x214   : > { %v1202_v45 = vpop.permute.xlu1 %1201  ;;  %3284 = vrot.lane.b32.xlu0 %v3282_v43, %s6888_s10  ;;  %v3176_v43 = vrot.slane %v5873_v8, %v4895_v5  ;;  %v2984_v9 = vcombine.low %v2971_v26, %v2975_v10 }
 0x215   : > { %v1212_v62 = vsel %vm1211_vm12, %v1202_v45, %v1204_v17  ;;  %v2151_v18 = vld [vmem:[#allocation3 + $0xf8] sm:$0xff]  ;;  %v3045_v45 = vrot.slane %v5888_v57, %v4895_v5 }
 0x216   : > { %1220 = vst [vmem:[#allocation3 + $0xe8] sm:$0xf] %v1212_v62  ;;  %v5890_v24 = vpop.permute.xlu0 %1139  ;;  %2216 = vmatprep.subr.mxu0 %v2151_v18  ;;  %3613 = vrot.lane.b32.xlu1 %v3610_v48, %s4701_s13  ;;  %v3182_v8 = vcombine.low %v3176_v43, %v3180_v13  ;;  %v2775_v62 = vrot.slane %v5954_v28, %v4891_v3 }
 0x217   : > { %v2779_v18 = vrot.slane %v5954_v28, %v4893_v4  ;;  %v2783_v13 = vrot.slane %v5954_v28, %v4895_v5 }
 0x218   : > { %v1069_v51 = vpop.permute.xlu1 %1068  ;;  %3349 = vrot.lane.b32.xlu0 %v3347_v31, %s6914_s7  ;;  %v3049_v31 = vrot.slane %v5888_v57, %v4897_v6 }
 0x219   : > { %v1076_v0 = vsel %vm1074_vm10, %v5844_v22, %v1069_v51  ;;  %v1077_v59 = vsel %vm1074_vm10, %v1069_v51, %v5859_v32  ;;  %v2153_v30 = vld [vmem:[#allocation3 + $0xb8] sm:$0xff]  ;;  %v2152_v46 = vld [vmem:[#allocation3 + $0x190] sm:$0xff]  ;;  %v3110_v51 = vrot.slane %v5906_v36, %v4895_v5 }
 0x21a   : > { %1084 = vst [vmem:[#allocation3 + $0x1a8] sm:$0xf] %v1076_v0  ;;  %1085 = vst [vmem:[#allocation3 + $0x1b8] sm:$0xf] %v1077_v59  ;;  %v1065_v16 = vpop.permute.xlu0 %1064  ;;  %2287 = vmatprep.subr.mxu1 %v2153_v30  ;;  %3417 = vrot.lane.b32.xlu1 %v3414_v41, %s6886_s20  ;;  %s6918_s20 = smov 121   ;;  %v3051_v57 = vcombine.low %v3045_v45, %v3049_v31  ;;  %v2844_v0 = vrot.slane %v5970_v61, %v4893_v4 }
 0x21b   : > { %v1075_v42 = vsel %vm1074_vm10, %v1065_v16, %v5844_v22  ;;  %2288 = vmatpush1.msra.mxu1 %v2152_v46  ;;  %v5987_v16 = vld [vmem:[#allocation7 + $0x4] ss:$8 sm:$0xf]  ;;  %v6034_v45 = vld [vmem:[#allocation7 + $0x3] ss:$8 sm:$0xf] }
 0x21c   : > { %1083 = vst [vmem:[#allocation3 + $0x80] sm:$0xf] %v1075_v42  ;;  %v1073_v53 = vpop.permute.xlu1 %1072  ;;  %3183 = vrot.lane.b32.xlu0 %v3181_v7, %s6916_s17  ;;  %v3114_v7 = vrot.slane %v5906_v36, %v4897_v6  ;;  %v2918_v42 = vrot.slane %v5922_v35, %v4897_v6  ;;  %v2853_v2 = vcombine.low %v2840_v37, %v2844_v0 }
 0x21d   : > { %v1078_v49 = vsel %vm1074_vm10, %v5859_v32, %v1073_v53  ;;  %v2150_v17 = vld [vmem:[#allocation3 + $0xe8] sm:$0xff]  ;;  %v2910_v32 = vrot.slane %v5922_v35, %v4893_v4  ;;  %v2644_v15 = vrot.slane %v5987_v16, %v4891_v3 }
 0x21e   : > { %1086 = vst [vmem:[#allocation3 + $0x28] sm:$0xf] %v1078_v49  ;;  %v5924_v22 = vpop.permute.xlu0 %930  ;;  %2217 = vmatpush1.msra.mxu0 %v2150_v17  ;;  %3482 = vrot.lane.b32.xlu1 %v3479_v23, %s6915_s15  ;;  %v3116_v39 = vcombine.low %v3110_v51, %v3114_v7  ;;  %v2648_v49 = vrot.slane %v5987_v16, %v4893_v4  ;;  %v6050_v51 = vld [vmem:[#allocation7 + $0x1] ss:$8 sm:$0xf] }
 0x21f   : > { %v2919_v52 = vcombine.low %v2906_v56, %v2910_v32  ;;  %v2709_v32 = vrot.slane %v6002_v20, %v4891_v3 }
 0x220   : > { %v1138_v58 = vpop.permute.xlu1 %1137  ;;  %3052 = vrot.lane.b32.xlu0 %v3050_v40, %s6917_s25  ;;  %v2657_v56 = vcombine.low %v2644_v15, %v2648_v49 }
 0x221   : > { %v1145_v55 = vsel %vm1143_vm13, %v5875_v63, %v1138_v58  ;;  %v1146_v47 = vsel %vm1143_vm13, %v1138_v58, %v5890_v24  ;;  %v2983_v58 = vrot.slane %v5940_v25, %v4897_v6 }
 0x222   : > { %1153 = vst [vmem:[#allocation3 + $0x1a8] sm:$0xf0] %v1145_v55  ;;  %1154 = vst [vmem:[#allocation3 + $0x1b8] sm:$0xf0] %v1146_v47  ;;  %v935_v33 = vpop.permute.xlu0 %934  ;;  %3286 = vrot.lane.b32.xlu1 %v3283_v12, %s6888_s10  ;;  %s6919_s10 = smov 119   ;;  %v2713_v55 = vrot.slane %v6002_v20, %v4893_v4 }
 0x223   : > { %v2985_v43 = vcombine.low %v2979_v54, %v2983_v58 }
 0x224   : > { %v1142_v29 = vpop.permute.xlu1 %1141  ;;  %3117 = vrot.lane.b32.xlu0 %v3115_v11, %s6918_s20  ;;  %v2722_v26 = vcombine.low %v2709_v32, %v2713_v55  ;;  %v2586_v32 = vrot.slane %v6034_v45, %v4895_v5 }
 0x225   : > { %v1147_v48 = vsel %vm1143_vm13, %v5890_v24, %v1142_v29  ;;  %v2787_v29 = vrot.slane %v5954_v28, %v4897_v6 }
 0x226   : > { %1155 = vst [vmem:[#allocation3 + $0x28] sm:$0xf0] %v1147_v48  ;;  %v5956_v50 = vpop.permute.xlu0 %998  ;;  %3351 = vrot.lane.b32.xlu1 %v3348_v27, %s6914_s7  ;;  %v6020_v27 = vld [vmem:[#allocation7 + $0x2] ss:$8 sm:$0xf] }
 0x227   : > { %v2513_v10 = vrot.slane %v6020_v27, %v4891_v3  ;;  %v2517_v48 = vrot.slane %v6020_v27, %v4893_v4  ;;  %v2789_v28 = vcombine.low %v2783_v13, %v2787_v29 }
 0x228   : > { %v1134_v34 = vpop.permute.xlu1 %1133  ;;  %2921 = vrot.lane.b32.xlu0 %v2919_v52, %s4705_s21 }
 0x229   : > { %v1144_v24 = vsel %vm1143_vm13, %v1134_v34, %v5875_v63  ;;  %v2147_v41 = vld [vmem:[#allocation3 + $0x1a8] sm:$0xff]  ;;  %v2788_v63 = vcombine.low %v2775_v62, %v2779_v18  ;;  %v2148_v23 = vld [vmem:[#allocation3 + $0x1b8] sm:$0xff]  ;;  %v2848_v34 = vrot.slane %v5970_v61, %v4895_v5  ;;  %v2526_v18 = vcombine.low %v2513_v10, %v2517_v48 }
 0x22a   : > { %1152 = vst [vmem:[#allocation3 + $0x80] sm:$0xf0] %v1144_v24  ;;  %v5972_v14 = vpop.permute.xlu0 %1002  ;;  %2218 = vmatprep.subr.mxu0 %v2147_v41  ;;  %3185 = vrot.lane.b32.xlu1 %v3182_v8, %s6916_s17  ;;  %v2578_v24 = vrot.slane %v6034_v45, %v4891_v3  ;;  %v2582_v41 = vrot.slane %v6034_v45, %v4893_v4 }
 0x22c   : > { %v933_v44 = vpop.permute.xlu1 %932  ;;  %2986 = vrot.lane.b32.xlu0 %v2984_v9, %s6919_s10  ;;  %v2852_v9 = vrot.slane %v5970_v61, %v4897_v6  ;;  %v2591_v0 = vcombine.low %v2578_v24, %v2582_v41 }
 0x22d   : > { %v939_v59 = vsel %vm6898_vm0, %v5924_v22, %v933_v44  ;;  %v940_v30 = vsel %vm6898_vm0, %v933_v44, %v935_v33  ;;  %v2149_v46 = vld [vmem:[#allocation3 + $0x28] sm:$0xff]  ;;  %v2652_v44 = vrot.slane %v5987_v16, %v4895_v5 }
 0x22e   : > { %947 = vst [vmem:[#allocation3 + $0x188] sm:$0xf] %v939_v59  ;;  %948 = vst [vmem:[#allocation3 + $0x138] sm:$0xf] %v940_v30  ;;  %v929_v36 = vpop.permute.xlu0 %928  ;;  %2289 = vmatprep.subr.mxu1 %v2149_v46  ;;  %3054 = vrot.lane.b32.xlu1 %v3051_v57, %s6917_s25  ;;  %v2854_v61 = vcombine.low %v2848_v34, %v2852_v9  ;;  %v2451_v59 = vrot.slane %v6050_v51, %v4893_v4 }
 0x22f   : > { %v938_v53 = vsel %vm6898_vm0, %v929_v36, %v5924_v22  ;;  %2290 = vmatpush1.msra.mxu1 %v2148_v23  ;;  %v2920_v22 = vcombine.low %v2914_v19, %v2918_v42  ;;  %v2717_v19 = vrot.slane %v6002_v20, %v4895_v5  ;;  %v2721_v42 = vrot.slane %v6002_v20, %v4897_v6 }
 0x230   : > { %946 = vst [vmem:[#allocation3 + $0xe0] sm:$0xf] %v938_v53  ;;  %v937_v40 = vpop.permute.xlu1 %936  ;;  %2790 = vrot.lane.b32.xlu0 %v2788_v63, %s4706_s24  ;;  %v2656_v63 = vrot.slane %v5987_v16, %v4897_v6  ;;  %v2521_v20 = vrot.slane %v6020_v27, %v4895_v5 }
 0x231   : > { %v941_v17 = vsel %vm6898_vm0, %v935_v33, %v937_v40  ;;  %v2146_v12 = vld [vmem:[#allocation3 + $0x80] sm:$0xff] }
 0x232   : > { %949 = vst [vmem:[#allocation3 + $0x140] sm:$0xf] %v941_v17  ;;  %v6004_v35 = vpop.permute.xlu0 %797  ;;  %2219 = vmatpush1.msra.mxu0 %v2146_v12  ;;  %3119 = vrot.lane.b32.xlu1 %v3116_v39, %s6918_s20  ;;  %v2658_v39 = vcombine.low %v2652_v44, %v2656_v63  ;;  %v2723_v12 = vcombine.low %v2717_v19, %v2721_v42  ;;  %v2129_v44 = vld [vmem:[#allocation3 + $0x18] sm:$0xff]  ;;  %v2125_v63 = vld [vmem:[%s6857_s1] sm:$0xf] }
 0x233   : > { %v3918_v42 = vld [vmem:[#allocation2 + $0x14] sm:$0xf] }
 0x234   : > { %v1001_v11 = vpop.permute.xlu1 %1000  ;;  %2855 = vrot.lane.b32.xlu0 %v2853_v2, %s6893_s14 }
 0x235   : > { %v1008_v47 = vsel %vm6920_vm1, %v5956_v50, %v1001_v11  ;;  %v1009_v33 = vsel %vm6921_vm11, %v1001_v11, %v5972_v14  ;;  %vm6922_vm11 = vmmov %vm6920_vm1 }
 0x236   : > { %1016 = vst [vmem:[#allocation3 + $0x188] sm:$0xf0] %v1008_v47  ;;  %1017 = vst [vmem:[#allocation3 + $0x138] sm:$0xf0] %v1009_v33  ;;  %v802_v25 = vpop.permute.xlu0 %801  ;;  %2923 = vrot.lane.b32.xlu1 %v2920_v22, %s4705_s21 }
 0x238   : > { %v1005_v52 = vpop.permute.xlu1 %1004  ;;  %2659 = vrot.lane.b32.xlu0 %v2657_v56, %s4704_s19 }
 0x239   : > { %v1010_v8 = vsel %vm6920_vm1, %v5972_v14, %v1005_v52  ;;  %vm6923_vm1 = vcmask 457728  }
 0x23a   : > { %1018 = vst [vmem:[#allocation3 + $0x140] sm:$0xf0] %v1010_v8  ;;  %v6036_v31 = vpop.permute.xlu0 %864  ;;  %2988 = vrot.lane.b32.xlu1 %v2985_v43, %s6919_s10  ;;  %vm6925_vm15 = vmmov %vm6923_vm1 }
 0x23c   : > { %v997_v62 = vpop.permute.xlu1 %996  ;;  %2724 = vrot.lane.b32.xlu0 %v2722_v26, %s6895_s16 }
 0x23d   : > { %v1007_v14 = vsel %vm6922_vm11, %v997_v62, %v5956_v50  ;;  %v2143_v57 = vld [vmem:[#allocation3 + $0x188] sm:$0xff]  ;;  %v2447_v50 = vrot.slane %v6050_v51, %v4891_v3  ;;  %v2144_v16 = vld [vmem:[#allocation3 + $0x138] sm:$0xff]  ;;  %vm6924_vm11 = vmmov %vm6923_vm1 }
 0x23e   : > { %1015 = vst [vmem:[#allocation3 + $0xe0] sm:$0xf0] %v1007_v14  ;;  %v869_v7 = vpop.permute.xlu0 %868  ;;  %2220 = vmatprep.subr.mxu0 %v2143_v57  ;;  %2792 = vrot.lane.b32.xlu1 %v2789_v28, %s4706_s24 }
 0x23f   : > { %v2460_v2 = vcombine.low %v2447_v50, %v2451_v59  ;;  %v2130_v50 = vld [vmem:[#allocation3 + $0x50] sm:$0xff] }
 0x240   : > { %v800_v37 = vpop.permute.xlu1 %799  ;;  %2528 = vrot.lane.b32.xlu0 %v2526_v18, %s4702_s23  ;;  %v2127_v59 = vld [vmem:[#allocation3 + $0x1b0] sm:$0xff] }
 0x241   : > { %v806_v30 = vsel %vm510_vm2, %v6004_v35, %v800_v37  ;;  %v807_v46 = vsel %vm510_vm2, %v800_v37, %v802_v25  ;;  %v2145_v36 = vld [vmem:[#allocation3 + $0x140] sm:$0xff]  ;;  %v2131_v37 = vld [vmem:[#allocation3 + $0x168] sm:$0xff] }
 0x242   : > { %814 = vst [vmem:[#allocation3 + $0x150] sm:$0xf] %v806_v30  ;;  %815 = vst [vmem:[#allocation3 + $0x108] sm:$0xf] %v807_v46  ;;  %v796_v23 = vpop.permute.xlu0 %795  ;;  %2291 = vmatprep.subr.mxu1 %v2145_v36  ;;  %2857 = vrot.lane.b32.xlu1 %v2854_v61, %s6893_s14  ;;  %v2126_v30 = vld [vmem:[#allocation3 + $0xb0] sm:$0xff]  ;;  %s6926_s14 = smov 65  }
 0x243   : > { %v805_v53 = vsel %vm510_vm2, %v796_v23, %v6004_v35  ;;  %2292 = vmatpush1.msra.mxu1 %v2144_v16  ;;  %v2525_v35 = vrot.slane %v6020_v27, %v4897_v6  ;;  %v2455_v27 = vrot.slane %v6050_v51, %v4895_v5  ;;  %v4049_v23 = vld [vmem:[#allocation2 + $0x14] sm:$0xf] }
 0x244   : > { %813 = vst [vmem:[#allocation3 + $0x120] sm:$0xf] %v805_v53  ;;  %v804_v40 = vpop.permute.xlu1 %803  ;;  %2593 = vrot.lane.b32.xlu0 %v2591_v0, %s4703_s18  ;;  %v2128_v0 = vld [vmem:[#allocation3 + $0xd8] sm:$0xff] }
 0x245   : > { %v808_v15 = vsel %vm510_vm2, %v802_v25, %v804_v40  ;;  %v2142_v49 = vld [vmem:[#allocation3 + $0xe0] sm:$0xff]  ;;  %v2527_v56 = vcombine.low %v2521_v20, %v2525_v35  ;;  %v2459_v25 = vrot.slane %v6050_v51, %v4897_v6  ;;  %v2133_v51 = vld [vmem:[#allocation3 + $0x48] sm:$0xff] }
 0x246   : > { %816 = vst [vmem:[#allocation3 + $0x60] sm:$0xf] %v808_v15  ;;  %v671_v17 = vpop.permute.xlu0 %670  ;;  %2221 = vmatpush1.msra.mxu0 %v2142_v49  ;;  %2661 = vrot.lane.b32.xlu1 %v2658_v39, %s4704_s19  ;;  %v3983_v15 = vld [vmem:[#allocation2 + $0x14] sm:$0xf] }
 0x247   : > { %v675_v22 = vsel %vm647_vm4, %v5411_v38, %v671_v17  ;;  %v2590_v38 = vrot.slane %v6034_v45, %v4897_v6  ;;  %v2461_v26 = vcombine.low %v2455_v27, %v2459_v25 }
 0x248   : > { %683 = vst [vmem:[#allocation3 + $0x98] sm:$0xf] %v675_v22  ;;  %v867_v54 = vpop.permute.xlu1 %866  ;;  %2462 = vrot.lane.b32.xlu0 %v2460_v2, %s4701_s13 }
 0x249   : > { %v873_v58 = vsel %vm6923_vm1, %v6036_v31, %v867_v54  ;;  %v874_v11 = vsel %vm6924_vm11, %v867_v54, %v869_v7  ;;  %v2592_v33 = vcombine.low %v2586_v32, %v2590_v38  ;;  %v3227_v32 = vld [vmem:[#allocation7 + $0x25] ss:$8 sm:$0xf]  ;;  %vm6927_vm11 = vmmov %vm6923_vm1 }
 0x24a   : > { %881 = vst [vmem:[#allocation3 + $0x150] sm:$0xf0] %v873_v58  ;;  %882 = vst [vmem:[#allocation3 + $0x108] sm:$0xf0] %v874_v11  ;;  %2726 = vrot.lane.b32.xlu1 %v2723_v12, %s6895_s16  ;;  %v734_v52 = vpop.permute.xlu0 %733  ;;  %v3244_v27 = vrot.slane %v3227_v32, %v4897_v6  ;;  %s6928_s16 = smov 72  }
 0x24c   : > { %v871_v55 = vpop.permute.xlu1 %870 }
 0x24d   : > { %v875_v47 = vsel %vm6925_vm15, %v869_v7, %v871_v55  ;;  %v2132_v7 = vld [vmem:[#allocation3 + $0x130] sm:$0xff]  ;;  %vm6897_vm15 = vcmask 883712  }
 0x24e   : > { %883 = vst [vmem:[#allocation3 + $0x60] sm:$0xf0] %v875_v47  ;;  %2530 = vrot.lane.b32.xlu1 %v2527_v56, %s4702_s23  ;;  %v738_v28 = vpop.permute.xlu0 %737 }
 0x250   : > { %v863_v43 = vpop.permute.xlu1 %862 }
 0x251   : > { %v872_v13 = vsel %vm6923_vm1, %v863_v43, %v6036_v31  ;;  %v2139_v29 = vld [vmem:[#allocation3 + $0x150] sm:$0xff]  ;;  %v2140_v45 = vld [vmem:[#allocation3 + $0x108] sm:$0xff] }
 0x252   : > { %880 = vst [vmem:[#allocation3 + $0x120] sm:$0xf0] %v872_v13  ;;  %2222 = vmatprep.subr.mxu0 %v2139_v29  ;;  %2595 = vrot.lane.b32.xlu1 %v2592_v33, %s4703_s18  ;;  %v3240_v33 = vrot.slane %v3227_v32, %v4895_v5 }
 0x254   : > { %v732_v10 = vpop.permute.xlu1 %731 }
 0x255   : > { %v740_v48 = vsel %vm578_vm3, %v732_v10, %v734_v52  ;;  %v2141_v8 = vld [vmem:[#allocation3 + $0x60] sm:$0xff] }
 0x256   : > { %748 = vst [vmem:[#allocation3 + $0x110] sm:$0xf0] %v740_v48  ;;  %2293 = vmatprep.subr.mxu1 %v2141_v8  ;;  %2464 = vrot.lane.b32.xlu1 %v2461_v26, %s4701_s13  ;;  %v3232_v8 = vrot.slane %v3227_v32, %v4891_v3 }
 0x257   : > { %2294 = vmatpush1.msra.mxu1 %v2140_v45  ;;  %v3236_v45 = vrot.slane %v3227_v32, %v4893_v4 }
 0x258   : > { %v736_v34 = vpop.permute.xlu1 %735 }
 0x259   : > { %v741_v31 = vsel %vm578_vm3, %v734_v52, %v736_v34  ;;  %v742_v9 = vsel %vm578_vm3, %v736_v34, %v738_v28  ;;  %v2138_v62 = vld [vmem:[#allocation3 + $0x120] sm:$0xff] }
 0x25a   : > { %749 = vst [vmem:[#allocation3 + $0x118] sm:$0xf0] %v741_v31  ;;  %750 = vst [vmem:[#allocation3 + $0x98] sm:$0xf0] %v742_v9  ;;  %2223 = vmatpush1.msra.mxu0 %v2138_v62  ;;  %v3246_v31 = vcombine.low %v3240_v33, %v3244_v27 }
 0x25b   : > { %v2344_v20 = vpop.permute.xlu0 %2343 }
 0x25c   : > { %v730_v18 = vpop.permute.xlu1 %729 }
 0x25d   : > { %v739_v24 = vsel %vm578_vm3, %v730_v18, %v732_v10  ;;  %v2135_v41 = vld [vmem:[#allocation3 + $0x110] sm:$0xff]  ;;  %v3245_v18 = vcombine.low %v3232_v8, %v3236_v45 }
 0x25e   : > { %747 = vst [vmem:[#allocation3 + $0x180] sm:$0xf0] %v739_v24  ;;  %2224 = vmatprep.subr.mxu0 %v2135_v41 }
 0x25f   : > { %v6129_v35 = vpop.permute.xlu0 %2399 }
 0x261   : > { %v2137_v14 = vld [vmem:[#allocation3 + $0x98] sm:$0xff] }
 0x262   : > { %v2136_v57 = vld [vmem:[#allocation3 + $0x118] sm:$0xff]  ;;  %2295 = vmatprep.subr.mxu1 %v2137_v14 }
 0x263   : > { %2296 = vmatpush1.msra.mxu1 %v2136_v57  ;;  %v6131_v22 = vpop.permute.xlu0 %4070 }
 0x264   : > { %2297 = vmatprep.subr.mxu1 %v2133_v51  ;;  %v4074_v4 = vrot.slane %v6131_v22, 4 }
 0x265   : > { %2298 = vmatpush1.msra.mxu1 %v2132_v7  ;;  %v2134_v61 = vld [vmem:[#allocation3 + $0x180] sm:$0xff] }
 0x266   : > { %2225 = vmatpush1.msra.mxu0 %v2134_v61  ;;  %2299 = vmatprep.subr.mxu1 %v2129_v44  ;;  %v4076_v44 = vsel %vm398_vm6, %v4074_v4, %v6131_v22 }
 0x267   : > { %2226 = vmatprep.subr.mxu0 %v2131_v37  ;;  %2300 = vmatpush1.msra.mxu1 %v2128_v0  ;;  %v6133_v54 = vpop.permute.xlu0 %3939  ;;  %v2402_v37 = vrot.slane %v6129_v35, 4 }
 0x268   : > { %2227 = vmatpush1.msra.mxu0 %v2130_v50  ;;  %4471 = vmatmul.mubr.msk.f32.vlgmr.msra.gmra.mxu1 %vm6897_vm15, %v2125_v63  ;;  %v3943_v14 = vrot.slane %v6133_v54, 4 }
 0x269   : > { %2228 = vmatprep.subr.mxu0 %v2127_v59  ;;  %v2354_v46 = vpop.permute.xlu1 %2353  ;;  %4319 = vmatprep.mubr.f32.mxu1 %v4699_v1 }
 0x26a   : > { %2229 = vmatpush1.msra.mxu0 %v2126_v30  ;;  %v3945_v33 = vsel %vm535_vm7, %v3943_v14, %v6133_v54 }
 0x26b   : > { %4468 = vmatmul.mubr.msk.f32.vlgmr.msra.gmra.mxu0 %vm6897_vm15, %v2125_v63  ;;  %v6135_v58 = vpop.permute.xlu0 %4004 }
 0x26c   : > { %4248 = vmatprep.mubr.f32.mxu0 %v4699_v1 }
 0x26d   : > { %v6111_v36 = vpop.permute.xlu1 %2397 }
 0x26e   : > { %v2401_v50 = vrot.slane %v6111_v36, 4 }
 0x26f   : > { %v6137_v11 = vpop.permute.xlu0 %3808 }
 0x270   : > { %v3812_v45 = vrot.slane %v6137_v11, 4 }
 0x271   : > { %v6113_v16 = vpop.permute.xlu1 %4072 }
 0x272   : > { %v4075_v39 = vrot.slane %v6113_v16, 4 }
 0x273   : > { %v6139_v56 = vpop.permute.xlu0 %3873 }
 0x274   : > { %v4084_v19 = vmul.f32 %v4075_v39, %v4049_v23 }
 0x275   : > { %v6118_v53 = vpop.permute.xlu1 %3941 }
 0x276   : > { %v3944_v40 = vrot.slane %v6118_v53, 4  ;;  %4098 = vrot.lane.b32.xlu1 %v4084_v19, %s4700_s11 }
 0x277   : > { %v6143_v29 = vpop.permute.xlu0 %3677 }
 0x278   : > { %v3953_v2 = vmul.f32 %v3944_v40, %v3918_v42  ;;  %v3946_v0 = vsel %vm374_vm5, %v3943_v14, %v3944_v40  ;;  %v2404_v42 = vsel %vm374_vm5, %v2401_v50, %v2402_v37 }
 0x279   : > { %v6122_v1 = vpop.permute.xlu1 %4006  ;;  %v3947_v19 = vsel %vm535_vm7, %v3946_v0, %v6118_v53 }
 0x27a   : > { %v4009_v49 = vrot.slane %v6122_v1, 4  ;;  %3967 = vrot.lane.b32.xlu0 %v3953_v2, %s4702_s23 }
 0x27b   : > { %v6154_v51 = vpop.permute.xlu0 %3742 }
 0x27c   : > { %v4018_v17 = vmul.f32 %v4009_v49, %v3983_v15  ;;  %v2403_v15 = vsel %vm6898_vm0, %v2401_v50, %v6111_v36  ;;  %v3852_v50 = vld [vmem:[#allocation2 + $0x14] sm:$0xf] }
 0x27d   : > { %v6145_v26 = vpop.permute.xlu1 %3810 }
 0x27e   : > { %v4024_v12 = vcombine.low %v4018_v17, %v4018_v17  ;;  %v2405_v17 = vsel %vm6898_vm0, %v2404_v42, %v6129_v35  ;;  %v3813_v8 = vrot.slane %v6145_v26, 4 }
 0x27f   : > { %v6170_v30 = vpop.permute.xlu0 %3546 }
 0x280   : > { %4033 = vrot.lane.b32.xlu0 %v4024_v12, %s4701_s13  ;;  %v4008_v12 = vrot.slane %v6135_v58, 4 }
 0x281   : > { %v6152_v57 = vpop.permute.xlu1 %3875 }
 0x282   : > { %v4010_v36 = vsel %vm467_vm8, %v4008_v12, %v6135_v58 }
 0x283   : > { %v6191_v22 = vpop.permute.xlu0 %3611 }
 0x285   : > { %v6168_v59 = vpop.permute.xlu1 %3679 }
 0x328   : > { %v2335_v38 = vpop.f32.mrf.mxu1 }
 0x329   : > { %v2348_v55 = vmul.f32 %v2344_v20, %v2335_v38 }
 0x32a   : > { %v2337_v47 = vpop.f32.mrf.mxu1 }
 0x32b   : > { %v2358_v25 = vadd.f32 %v2354_v46, %v2348_v55  ;;  %v2349_v43 = vmul.f32 %v2344_v20, %v2337_v47  ;;  %v2264_v13 = vpop.f32.mrf.mxu0  ;;  %v4077_v55 = vsel %vm374_vm5, %v4074_v4, %v4075_v39 }
 0x32c   : > { %v2346_v52 = vmul.f32 %v2344_v20, %v2264_v13  ;;  %v4078_v27 = vsel %vm398_vm6, %v4077_v55, %v6113_v16  ;;  %v3681_v55 = vrot.slane %v6143_v29, 4 }
 0x32d   : > { %v2359_v10 = vadd.f32 %v2354_v46, %v2349_v43  ;;  %v2266_v48 = vpop.f32.mrf.mxu0  ;;  %v2362_v5 = vmax.f32 %v2358_v25, 0.0  ;;  %v4011_v25 = vsel %vm374_vm5, %v4008_v12, %v4009_v49  ;;  %v6217_v43 = vpop.permute.xlu0 %3415 }
 0x32e   : > { %v2356_v28 = vadd.f32 %v2354_v46, %v2346_v52  ;;  %v2347_v34 = vmul.f32 %v2344_v20, %v2266_v48  ;;  %v6189_v20 = vpop.permute.xlu1 %3744  ;;  %v4012_v54 = vsel %vm467_vm8, %v4011_v25, %v6122_v1 }
 0x32f   : > { %v2363_v9 = vmax.f32 %v2359_v10, 0.0 }
 0x330   : > { %v2357_v6 = vadd.f32 %v2354_v46, %v2347_v34  ;;  %v2360_v24 = vmax.f32 %v2356_v28, 0.0  ;;  %v3815_v28 = vsel %vm374_vm5, %v3812_v45, %v3813_v8  ;;  %v3878_v34 = vrot.slane %v6152_v57, 4 }
 0x331   : > { %v6149_v62 = vcombine.low %v2362_v5, %v2363_v9  ;;  %v6228_v49 = vpop.permute.xlu0 %3480 }
 0x332   : > { %v2361_v41 = vmax.f32 %v2357_v6, 0.0  ;;  %v6215_v58 = vpop.permute.xlu1 %3548 }
 0x333   : > { %2373 = vst [vmem:[#allocation2 + $0xc] sm:$0xff] %v6149_v62  ;;  %v3250_v3 = vmul.f32 %v3246_v31, %v6149_v62  ;;  %v3952_v2 = vmul.f32 %v3947_v19, %v6149_v62  ;;  %v4083_v52 = vmul.f32 %v4078_v27, %v6149_v62  ;;  %v4017_v48 = vmul.f32 %v4012_v54, %v6149_v62 }
 0x334   : > { %v6159_v7 = vcombine.low %v2360_v24, %v2361_v41  ;;  %v3877_v31 = vrot.slane %v6139_v56, 4  ;;  %v3814_v24 = vsel %vm647_vm4, %v3812_v45, %v6137_v11  ;;  %v3816_v41 = vsel %vm647_vm4, %v3815_v28, %v6145_v26  ;;  %v3656_v28 = vld [vmem:[#allocation2 + $0x14] sm:$0xf] }
 0x335   : > { %v3254_v61 = vcombine.low %v3250_v3, %v3250_v3  ;;  %3260 = vst [vmem:[#allocation3 + $0xb8] sm:$0xf0] %v3250_v3  ;;  %v4089_v10 = vcombine.high %v4083_v52, %v4083_v52  ;;  %v4023_v1 = vcombine.low %v4017_v48, %v4017_v48  ;;  %v6240_v9 = vpop.permute.xlu0 %3284  ;;  %v3787_v3 = vld [vmem:[#allocation2 + $0x14] sm:$0xf]  ;;  %v3821_v0 = vmul.f32 %v3816_v41, %v6149_v62 }
 0x336   : > { %2372 = vst [vmem:[#allocation2 + $0x4] sm:$0xff] %v6159_v7  ;;  %v3249_v63 = vmul.f32 %v3245_v18, %v6159_v7  ;;  %v4082_v46 = vmul.f32 %v4076_v44, %v6159_v7  ;;  %v4016_v47 = vmul.f32 %v4010_v36, %v6159_v7  ;;  %v3951_v39 = vmul.f32 %v3945_v33, %v6159_v7  ;;  %v6226_v16 = vpop.permute.xlu1 %3613 }
 0x337   : > { %3259 = vst [vmem:[#allocation3 + $0x190] sm:$0xf0] %v3254_v61  ;;  %v3880_v14 = vsel %vm374_vm5, %v3877_v31, %v3878_v34  ;;  %v3820_v44 = vmul.f32 %v3814_v24, %v6159_v7  ;;  %v3822_v26 = vmul.f32 %v3813_v8, %v3787_v3  ;;  %v3887_v19 = vmul.f32 %v3878_v34, %v3852_v50  ;;  %v3721_v24 = vld [vmem:[#allocation2 + $0x14] sm:$0xf] }
 0x338   : > { %3258 = vst [vmem:[#allocation3 + $0xf8] sm:$0xf0] %v3249_v63  ;;  %v3253_v23 = vcombine.low %v3249_v63, %v3249_v63  ;;  %4090 = vrot.lane.b32.xlu0 %v4082_v46, %s4700_s11  ;;  %v4088_v13 = vcombine.high %v4082_v46, %v4082_v46  ;;  %v3957_v6 = vcombine.high %v3951_v39, %v3951_v39  ;;  %v3682_v36 = vrot.slane %v6168_v59, 4 }
 0x339   : > { %v4022_v18 = vcombine.low %v4016_v47, %v4016_v47  ;;  %v6253_v61 = vpop.permute.xlu0 %3349  ;;  %v3958_v63 = vcombine.high %v3952_v2, %v3952_v2  ;;  %v3881_v11 = vsel %vm604_vm9, %v3880_v14, %v6152_v57  ;;  %v3826_v46 = vcombine.high %v3820_v44, %v3820_v44 }
 0x33a   : > { %3257 = vst [vmem:[#allocation3 + $0xe8] sm:$0xf0] %v3253_v23  ;;  %v6238_v5 = vpop.permute.xlu1 %3417  ;;  %v3886_v23 = vmul.f32 %v3881_v11, %v6149_v62  ;;  %v3893_v12 = vcombine.low %v3887_v19, %v3887_v19  ;;  %v3684_v25 = vsel %vm374_vm5, %v3681_v55, %v3682_v36 }
 0x33b   : > { %v3685_v54 = vsel %vm510_vm2, %v3684_v25, %v6168_v59  ;;  %v3691_v59 = vmul.f32 %v3682_v36, %v3656_v28  ;;  %v3525_v25 = vld [vmem:[#allocation2 + $0x14] sm:$0xf] }
 0x33c   : > { %3963 = vrot.lane.b32.xlu0 %v3952_v2, %s4702_s23  ;;  %v3827_v2 = vcombine.high %v3821_v0, %v3821_v0  ;;  %v3892_v57 = vcombine.low %v3886_v23, %v3886_v23 }
 0x33d   : > { %v6179_v40 = vld [vmem:[#allocation2] sm:$0xff]  ;;  %v6187_v53 = vld [vmem:[#allocation2 + $0x8] sm:$0xff] }
 0x33e   : > { %v6194_v32 = vmul.f32 %v2403_v15, %v6179_v40  ;;  %v6197_v38 = vmul.f32 %v2405_v17, %v6187_v53  ;;  %v6251_v4 = vpop.permute.xlu1 %3482  ;;  %v6264_v15 = vpop.permute.xlu0 %3183  ;;  %v3879_v17 = vsel %vm604_vm9, %v3877_v31, %v6139_v56  ;;  %v3746_v56 = vrot.slane %v6154_v51, 4 }
 0x33f   : > { %v3885_v27 = vmul.f32 %v3879_v17, %v6159_v7 }
 0x340   : > { %2417 = vrot.lane.b32.xlu1 %v6194_v32, %s4705_s21  ;;  %4092 = vrot.lane.b32.xlu0 %v4088_v13, %s4700_s11  ;;  %v3748_v3 = vsel %vm578_vm3, %v3746_v56, %v6154_v51  ;;  %v3615_v51 = vrot.slane %v6191_v22, 4 }
 0x341   : > { %v3891_v13 = vcombine.low %v3885_v27, %v3885_v27  ;;  %v3754_v50 = vmul.f32 %v3748_v3, %v6159_v7 }
 0x342   : > { %v6262_v42 = vpop.permute.xlu1 %3286  ;;  %v6276_v33 = vpop.permute.xlu0 %3052 }
 0x344   : > { %4027 = vrot.lane.b32.xlu1 %v4016_v47, %s4701_s13  ;;  %4096 = vrot.lane.b32.xlu0 %v4089_v10, %s4700_s11 }
 0x346   : > { %v6274_v47 = vpop.permute.xlu1 %3351  ;;  %v6291_v8 = vpop.permute.xlu0 %3117 }
 0x348   : > { %3959 = vrot.lane.b32.xlu1 %v3951_v39, %s4702_s23  ;;  %4029 = vrot.lane.b32.xlu0 %v4023_v1, %s4701_s13  ;;  %v3747_v39 = vrot.slane %v6189_v20, 4  ;;  %v3690_v1 = vmul.f32 %v3685_v54, %v6149_v62  ;;  %v3590_v54 = vld [vmem:[#allocation2 + $0x14] sm:$0xf] }
 0x34a   : > { %v3749_v10 = vsel %vm374_vm5, %v3746_v56, %v3747_v39  ;;  %v6303_v31 = vpop.permute.xlu0 %2921  ;;  %v3756_v41 = vmul.f32 %v3747_v39, %v3721_v24  ;;  %v3696_v14 = vcombine.high %v3690_v1, %v3690_v1 }
 0x34c   : > { %4094 = vrot.lane.b32.xlu1 %v4083_v52, %s4700_s11  ;;  %4025 = vrot.lane.b32.xlu0 %v4022_v18, %s4701_s13  ;;  %v3683_v52 = vsel %vm510_vm2, %v3681_v55, %v6143_v29  ;;  %v3750_v29 = vsel %vm578_vm3, %v3749_v10, %v6189_v20 }
 0x34d   : > { %v3689_v45 = vmul.f32 %v3683_v52, %v6159_v7  ;;  %v3755_v18 = vmul.f32 %v3750_v29, %v6149_v62 }
 0x34e   : > { %v6314_v11 = vpop.permute.xlu0 %2986 }
 0x34f   : > { %v3761_v20 = vcombine.low %v3755_v18, %v3755_v18 }
 0x350   : > { %4031 = vrot.lane.b32.xlu1 %v4017_v48, %s4701_s13  ;;  %3832 = vrot.lane.b32.xlu0 %v3821_v0, %s4704_s19  ;;  %v6289_v48 = vpop.permute.xlu1 %3185 }
 0x354   : > { %3961 = vrot.lane.b32.xlu1 %v3957_v6, %s4702_s23  ;;  %3836 = vrot.lane.b32.xlu0 %v3822_v26, %s4704_s19  ;;  %v6301_v34 = vpop.permute.xlu1 %3054  ;;  %v3695_v6 = vcombine.high %v3689_v45, %v3689_v45  ;;  %v3762_v26 = vcombine.low %v3756_v41, %v3756_v41 }
 0x358   : > { %3965 = vrot.lane.b32.xlu1 %v3958_v63, %s4702_s23  ;;  %3898 = vrot.lane.b32.xlu0 %v3892_v57, %s4703_s18  ;;  %v3550_v63 = vrot.slane %v6170_v30, 4  ;;  %v6312_v0 = vpop.permute.xlu1 %3119  ;;  %v3760_v57 = vcombine.low %v3754_v50, %v3754_v50 }
 0x35a   : > { %v3552_v17 = vsel %vm6898_vm0, %v3550_v63, %v6170_v30 }
 0x35b   : > { %v3558_v55 = vmul.f32 %v3552_v17, %v6159_v7  ;;  %v3394_v17 = vld [vmem:[#allocation2 + $0x14] sm:$0xf] }
 0x35c   : > { %3830 = vrot.lane.b32.xlu1 %v3826_v46, %s4704_s19  ;;  %3902 = vrot.lane.b32.xlu0 %v3893_v12, %s4703_s18  ;;  %v6324_v19 = vpop.permute.xlu1 %2923 }
 0x360   : > { %3834 = vrot.lane.b32.xlu1 %v3827_v2, %s4704_s19  ;;  %3894 = vrot.lane.b32.xlu0 %v3891_v13, %s4703_s18  ;;  %v6326_v2 = vpop.permute.xlu0 %2790  ;;  %v6339_v56 = vpop.permute.xlu1 %2988  ;;  %v3564_v13 = vcombine.high %v3558_v55, %v3558_v55 }
 0x364   : > { %3896 = vrot.lane.b32.xlu1 %v3885_v27, %s4703_s18  ;;  %3701 = vrot.lane.b32.xlu0 %v3690_v1, %s4706_s24  ;;  %v6341_v30 = vpop.permute.xlu0 %2855  ;;  %v6348_v1 = vpop.permute.xlu1 %2792 }
 0x368   : > { %3900 = vrot.lane.b32.xlu1 %v3886_v23, %s4703_s18  ;;  %3705 = vrot.lane.b32.xlu0 %v3691_v59, %s4706_s24  ;;  %v3616_v23 = vrot.slane %v6226_v16, 4  ;;  %v3420_v59 = vrot.slane %v6238_v5, 4  ;;  %v6362_v3 = vpop.permute.xlu1 %2857 }
 0x36a   : > { %v3618_v36 = vsel %vm374_vm5, %v3615_v51, %v3616_v23  ;;  %v3625_v10 = vmul.f32 %v3616_v23, %v3590_v54  ;;  %v3288_v54 = vrot.slane %v6240_v9, 4 }
 0x36b   : > { %v3619_v39 = vsel %vm6927_vm11, %v3618_v36, %v6226_v16  ;;  %v6350_v16 = vpop.permute.xlu0 %2659  ;;  %vm6929_vm11 = vcmask 72704  }
 0x36c   : > { %3828 = vrot.lane.b32.xlu1 %v3820_v44, %s4704_s19  ;;  %v3551_v44 = vrot.slane %v6215_v58, 4  ;;  %3767 = vrot.lane.b32.xlu0 %v3761_v20, %s6926_s14  ;;  %v3624_v52 = vmul.f32 %v3619_v39, %v6149_v62  ;;  %v3484_v20 = vrot.slane %v6228_v49, 4 }
 0x36e   : > { %v3553_v46 = vsel %vm374_vm5, %v3550_v63, %v3551_v44  ;;  %v3630_v29 = vcombine.low %v3624_v52, %v3624_v52 }
 0x36f   : > { %v3554_v12 = vsel %vm6898_vm0, %v3553_v46, %v6215_v58  ;;  %v3560_v58 = vmul.f32 %v3551_v44, %v3525_v25  ;;  %v6375_v46 = vpop.permute.xlu1 %2661 }
 0x370   : > { %3699 = vrot.lane.b32.xlu1 %v3695_v6, %s4706_s24  ;;  %3771 = vrot.lane.b32.xlu0 %v3762_v26, %s6926_s14  ;;  %v3559_v27 = vmul.f32 %v3554_v12, %v6149_v62  ;;  %v3419_v6 = vrot.slane %v6217_v43, 4 }
 0x372   : > { %v3565_v28 = vcombine.high %v3559_v27, %v3559_v27  ;;  %v3422_v41 = vsel %vm374_vm5, %v3419_v6, %v3420_v59  ;;  %v3421_v63 = vsel %vm1074_vm10, %v3419_v6, %v6217_v43  ;;  %v3354_v6 = vrot.slane %v6274_v47, 4 }
 0x373   : > { %v3423_v26 = vsel %vm1074_vm10, %v3422_v41, %v6238_v5  ;;  %v3429_v5 = vmul.f32 %v3420_v59, %v3394_v17  ;;  %v6386_v25 = vpop.permute.xlu1 %2726  ;;  %v3290_v41 = vsel %vm1211_vm12, %v3288_v54, %v6240_v9 }
 0x374   : > { %3703 = vrot.lane.b32.xlu1 %v3696_v14, %s4706_s24  ;;  %3763 = vrot.lane.b32.xlu0 %v3760_v57, %s6926_s14  ;;  %v3485_v14 = vrot.slane %v6251_v4, 4  ;;  %v3428_v57 = vmul.f32 %v3423_v26, %v6149_v62 }
 0x378   : > { %3765 = vrot.lane.b32.xlu1 %v3754_v50, %s6926_s14  ;;  %3570 = vrot.lane.b32.xlu0 %v3559_v27, %s4705_s21  ;;  %v3487_v50 = vsel %vm374_vm5, %v3484_v20, %v3485_v14  ;;  %v3459_v27 = vld [vmem:[#allocation2 + $0x14] sm:$0xf] }
 0x379   : > { %v3488_v43 = vsel %vm6929_vm11, %v3487_v50, %v6251_v4  ;;  %v3263_v50 = vld [vmem:[#allocation2 + $0x14] sm:$0xf] }
 0x37a   : > { %v3493_v36 = vmul.f32 %v3488_v43, %v6149_v62 }
 0x37c   : > { %3769 = vrot.lane.b32.xlu1 %v3755_v18, %s6926_s14  ;;  %3574 = vrot.lane.b32.xlu0 %v3560_v58, %s4705_s21  ;;  %v3631_v18 = vcombine.low %v3625_v10, %v3625_v10  ;;  %v3494_v58 = vmul.f32 %v3485_v14, %v3459_v27  ;;  %v3499_v4 = vcombine.low %v3493_v36, %v3493_v36 }
 0x37e   : > { %v3500_v10 = vcombine.low %v3494_v58, %v3494_v58 }
 0x380   : > { %3697 = vrot.lane.b32.xlu1 %v3689_v45, %s4706_s24  ;;  %v3617_v45 = vsel %vm6923_vm1, %v3615_v51, %v6191_v22  ;;  %3636 = vrot.lane.b32.xlu0 %v3630_v29, %s6928_s16  ;;  %v6364_v22 = vpop.permute.xlu0 %2724  ;;  %v3427_v51 = vmul.f32 %v3421_v63, %v6159_v7  ;;  %vm6930_vm1 = vmmov %vm6929_vm11  ;;  %v3296_v63 = vmul.f32 %v3290_v41, %v6159_v7  ;;  %vm6931_vm11 = vcmask 982016  }
 0x381   : > { %v3623_v24 = vmul.f32 %v3617_v45, %v6159_v7 }
 0x382   : > { %v3433_v12 = vcombine.high %v3427_v51, %v3427_v51  ;;  %v3302_v17 = vcombine.high %v3296_v63, %v3296_v63 }
 0x383   : > { %v3629_v44 = vcombine.low %v3623_v24, %v3623_v24 }
 0x384   : > { %3568 = vrot.lane.b32.xlu1 %v3564_v13, %s4705_s21  ;;  %3640 = vrot.lane.b32.xlu0 %v3631_v18, %s6928_s16  ;;  %v6377_v23 = vpop.permute.xlu0 %2528  ;;  %v3434_v13 = vcombine.high %v3428_v57, %v3428_v57 }
 0x388   : > { %3572 = vrot.lane.b32.xlu1 %v3565_v28, %s4705_s21  ;;  %3632 = vrot.lane.b32.xlu0 %v3629_v44, %s6928_s16  ;;  %v6388_v39 = vpop.permute.xlu0 %2593  ;;  %v6398_v28 = vpop.permute.xlu1 %2530 }
 0x38c   : > { %3634 = vrot.lane.b32.xlu1 %v3623_v24, %s6928_s16  ;;  %3439 = vrot.lane.b32.xlu0 %v3428_v57, %s6917_s25  ;;  %v6401_v45 = vpop.permute.xlu0 %2462  ;;  %v6415_v44 = vpop.permute.xlu1 %2595 }
 0x390   : > { %3638 = vrot.lane.b32.xlu1 %v3624_v52, %s6928_s16  ;;  %3443 = vrot.lane.b32.xlu0 %v3429_v5, %s6917_s25  ;;  %v3289_v52 = vrot.slane %v6262_v42, 4  ;;  %v6408_v24 = vpop.permute.xlu0 %3967  ;;  %v6427_v43 = vpop.permute.xlu1 %2464 }
 0x392   : > { %v3291_v59 = vsel %vm374_vm5, %v3288_v54, %v3289_v52 }
 0x393   : > { %v3292_v14 = vsel %vm1211_vm12, %v3291_v59, %v6262_v42  ;;  %v3298_v42 = vmul.f32 %v3289_v52, %v3263_v50  ;;  %v3162_v50 = vld [vmem:[#allocation2 + $0x10] sm:$0xf] }
 0x394   : > { %3566 = vrot.lane.b32.xlu1 %v3558_v55, %s4705_s21  ;;  %v3486_v55 = vsel %vm6930_vm1, %v3484_v20, %v6228_v49  ;;  %3505 = vrot.lane.b32.xlu0 %v3499_v4, %s6919_s10  ;;  %v3353_v49 = vrot.slane %v6253_v61, 4  ;;  %v3297_v26 = vmul.f32 %v3292_v14, %v6149_v62  ;;  %v6425_v9 = vpop.permute.xlu0 %4033  ;;  %v4099_v27 = vpop.permute.xlu1 %4098  ;;  %v3188_v4 = vrot.slane %v6289_v48, 4  ;;  %vm6933_vm1 = vmmov %vm6931_vm11 }
 0x395   : > { %v3492_v29 = vmul.f32 %v3486_v55, %v6159_v7  ;;  %v3187_v55 = vrot.slane %v6264_v15, 4 }
 0x396   : > { %v3356_v20 = vsel %vm374_vm5, %v3353_v49, %v3354_v6 }
 0x397   : > { %v3498_v18 = vcombine.low %v3492_v29, %v3492_v29  ;;  %v3357_v57 = vsel %vm1143_vm13, %v3356_v20, %v6274_v47  ;;  %v3303_v47 = vcombine.high %v3297_v26, %v3297_v26 }
 0x398   : > { %3437 = vrot.lane.b32.xlu1 %v3433_v12, %s6917_s25  ;;  %3509 = vrot.lane.b32.xlu0 %v3500_v10, %s6919_s10  ;;  %v3362_v5 = vmul.f32 %v3357_v57, %v6149_v62  ;;  %v3328_v12 = vld [vmem:[#allocation2 + $0x14] sm:$0xf]  ;;  %v3190_v10 = vsel %vm374_vm5, %v3187_v55, %v3188_v4 }
 0x39a   : > { %v3368_v58 = vcombine.low %v3362_v5, %v3362_v5 }
 0x39c   : > { %3441 = vrot.lane.b32.xlu1 %v3434_v13, %s6917_s25  ;;  %3501 = vrot.lane.b32.xlu0 %v3498_v18, %s6919_s10  ;;  %v3355_v13 = vsel %vm1143_vm13, %v3353_v49, %v6253_v61  ;;  %v3056_v49 = vrot.slane %v6276_v33, 4  ;;  %v3057_v18 = vrot.slane %v6301_v34, 4 }
 0x39d   : > { %v3361_v52 = vmul.f32 %v3355_v13, %v6159_v7  ;;  %v3191_v7 = vsel %vm1186_vm14, %v3190_v10, %v6289_v48 }
 0x39e   : > { %v3059_v48 = vsel %vm374_vm5, %v3056_v49, %v3057_v18 }
 0x3a0   : > { %3503 = vrot.lane.b32.xlu1 %v3492_v29, %s6919_s10  ;;  %3308 = vrot.lane.b32.xlu0 %v3297_v26, %s6916_s17  ;;  %v3367_v29 = vcombine.low %v3361_v52, %v3361_v52  ;;  %v3196_v26 = vmul.f32 %v3191_v7, %v6187_v53 }
 0x3a4   : > { %3507 = vrot.lane.b32.xlu1 %v3493_v36, %s6919_s10  ;;  %3312 = vrot.lane.b32.xlu0 %v3298_v42, %s6916_s17  ;;  %v3363_v36 = vmul.f32 %v3354_v6, %v3328_v12  ;;  %v3189_v6 = vsel %vm1186_vm14, %v3187_v55, %v6264_v15  ;;  %v3058_v15 = vsel %vm6931_vm11, %v3056_v49, %v6276_v33  ;;  %vm6934_vm11 = vcmask 457728   ;;  %s6937_s10 = smov 8  }
 0x3a5   : > { %v3195_v41 = vmul.f32 %v3189_v6, %v6179_v40  ;;  %v3197_v42 = vmul.f32 %v3188_v4, %v3162_v50  ;;  %v3060_v33 = vsel %vm6933_vm1, %v3059_v48, %v6301_v34  ;;  %v3202_v55 = vcombine.high %v3196_v26, %v3196_v26  ;;  %vm6935_vm1 = vmmov %vm6934_vm11 }
 0x3a6   : > { %v3369_v62 = vcombine.low %v3363_v36, %v3363_v36  ;;  %vm6936_vm15 = vmmov %vm6935_vm1  ;;  %v3122_v6 = vrot.slane %v6312_v0, 4 }
 0x3a8   : > { %3435 = vrot.lane.b32.xlu1 %v3427_v51, %s6917_s25  ;;  %3374 = vrot.lane.b32.xlu0 %v3368_v58, %s6918_s20 }
 0x3aa   : > { %v4091_v51 = vpop.permute.xlu0 %4090 }
 0x3ac   : > { %3306 = vrot.lane.b32.xlu1 %v3302_v17, %s6916_s17  ;;  %3378 = vrot.lane.b32.xlu0 %v3369_v62, %s6918_s20  ;;  %v6465_v17 = vmul.f32 %v3058_v15, %v6179_v40  ;;  %v3065_v62 = vmul.f32 %v3060_v33, %v6187_v53  ;;  %v3031_v33 = vld [vmem:[#allocation2 + $0x10] sm:$0xf] }
 0x3ae   : > { %v6444_v61 = vpop.permute.xlu0 %3963 }
 0x3b0   : > { %3310 = vrot.lane.b32.xlu1 %v3303_v47, %s6916_s17  ;;  %3370 = vrot.lane.b32.xlu0 %v3367_v29, %s6918_s20 }
 0x3b2   : > { %v6439_v54 = vpop.permute.xlu1 %2417  ;;  %v4093_v14 = vpop.permute.xlu0 %4092 }
 0x3b3   : > { %v4100_v57 = vsel %vm6898_vm0, %v4091_v51, %v4093_v14 }
 0x3b4   : > { %3372 = vrot.lane.b32.xlu1 %v3361_v52, %s6918_s20  ;;  %4108 = vst [vmem:[#allocation3 + $0x58] sm:$0xf] %v4100_v57 }
 0x3b6   : > { %v4028_v59 = vpop.permute.xlu1 %4027  ;;  %v4097_v12 = vpop.permute.xlu0 %4096 }
 0x3b7   : > { %v4103_v47 = vsel %vm6898_vm0, %v4097_v12, %v4099_v27  ;;  %v3121_v27 = vrot.slane %v6291_v8, 4 }
 0x3b8   : > { %3376 = vrot.lane.b32.xlu1 %v3362_v5, %s6918_s20  ;;  %s6932_s20 = smov 1   ;;  %v3201_v5 = vcombine.high %v3195_v41, %v3195_v41  ;;  %4111 = vst [vmem:[#allocation3 + $0x198] sm:$0xf] %v4103_v47 }
 0x3b9   : > { %3207 = vrot.lane.b32.xlu0 %v3196_v26, %s6932_s20 }
 0x3ba   : > { %v3960_v20 = vpop.permute.xlu1 %3959  ;;  %v4030_v13 = vpop.permute.xlu0 %4029 }
 0x3bb   : > { %v4036_v52 = vsel %vm6934_vm11, %v4028_v59, %v4030_v13  ;;  %vm6939_vm11 = vmmov %vm6935_vm1 }
 0x3bc   : > { %3304 = vrot.lane.b32.xlu1 %v3296_v63, %s6916_s17  ;;  %v3070_v63 = vcombine.high %v6465_v17, %v6465_v17  ;;  %4044 = vst [vmem:[#allocation3 + $0x38] sm:$0xf0] %v4036_v52 }
 0x3bd   : > { %3211 = vrot.lane.b32.xlu0 %v3197_v42, %s6932_s20 }
 0x3be   : > { %v4095_v36 = vpop.permute.xlu1 %4094  ;;  %v4026_v49 = vpop.permute.xlu0 %4025 }
 0x3bf   : > { %v4101_v58 = vsel %vm6898_vm0, %v4093_v14, %v4095_v36  ;;  %v4102_v51 = vsel %vm6898_vm0, %v4095_v36, %v4097_v12  ;;  %v3071_v14 = vcombine.high %v3065_v62, %v3065_v62  ;;  %vm6938_vm0 = vcmask 990208   ;;  %v4168_v48 = vld [vmem:[#allocation3 + $0x198] sm:$0xf] }
 0x3c0   : > { %4109 = vst [vmem:[#allocation3 + $0xf0] sm:$0xf] %v4101_v58  ;;  %4110 = vst [vmem:[#allocation3 + $0x30] sm:$0xf] %v4102_v51  ;;  %3205 = vrot.lane.b32.xlu1 %v3201_v5, %s6932_s20  ;;  %v3123_v26 = vsel %vm6938_vm0, %v3121_v27, %v6291_v8  ;;  %v4035_v15 = vsel %vm6939_vm11, %v4026_v49, %v4028_v59  ;;  %v3124_v5 = vsel %vm374_vm5, %v3121_v27, %v3122_v6  ;;  %v4165_v8 = vld [vmem:[#allocation3 + $0x58] sm:$0xf] }
 0x3c1   : > { %3074 = vrot.lane.b32.xlu0 %v3070_v63, %s6937_s10  ;;  %4043 = vst [vmem:[#allocation3 + $0x128] sm:$0xf0] %v4035_v15  ;;  %4475 = vmatprep.subr.msk.mxu1 %vm374_vm5, %v4168_v48  ;;  %v6497_v59 = vmul.f32 %v3123_v26, %v6179_v40  ;;  %v2925_v36 = vrot.slane %v6303_v31, 4  ;;  %v3125_v58 = vsel %vm6938_vm0, %v3124_v5, %v6312_v0  ;;  %v2926_v51 = vrot.slane %v6324_v19, 4  ;;  %v3096_v0 = vld [vmem:[#allocation2 + $0x10] sm:$0xf] }
 0x3c2   : > { %v4032_v4 = vpop.permute.xlu1 %4031  ;;  %v3066_v63 = vmul.f32 %v3057_v18, %v3031_v33  ;;  %v3131_v34 = vmul.f32 %v3122_v6, %v3096_v0  ;;  %vm6942_vm11 = vcmask 982016  }
 0x3c3   : > { %v4037_v10 = vsel %vm6935_vm1, %v4030_v13, %v4032_v4  ;;  %v4038_v29 = vsel %vm6936_vm15, %v4032_v4, %v6425_v9  ;;  %v3130_v4 = vmul.f32 %v3125_v58, %v6187_v53  ;;  %vm6940_vm15 = vcmask 973824   ;;  %vm6943_vm0 = vmmov %vm6942_vm11 }
 0x3c4   : > { %4045 = vst [vmem:[#allocation3 + $0x88] sm:$0xf0] %v4037_v10  ;;  %4046 = vst [vmem:[#allocation3 + $0x170] sm:$0xf0] %v4038_v29  ;;  %3209 = vrot.lane.b32.xlu1 %v3202_v55, %s6932_s20  ;;  %v3137_v6 = vcombine.low %v3131_v34, %v3131_v34 }
 0x3c5   : > { %3078 = vrot.lane.b32.xlu0 %v3071_v14, %s6937_s10  ;;  %v3136_v29 = vcombine.low %v3130_v4, %v3130_v4  ;;  %vm6941_vm1 = vmmov %vm6940_vm15 }
 0x3c6   : > { %v3962_v7 = vpop.permute.xlu1 %3961 }
 0x3c7   : > { %v3969_v50 = vsel %vm510_vm2, %v3960_v20, %v3962_v7  ;;  %v3970_v9 = vsel %vm510_vm2, %v3962_v7, %v6444_v61  ;;  %v4166_v57 = vld [vmem:[#allocation3 + $0xf0] sm:$0xf]  ;;  %v3833_v20 = vpop.permute.xlu0 %3832 }
 0x3c8   : > { %v4167_v42 = vld [vmem:[#allocation3 + $0x30] sm:$0xf]  ;;  %3977 = vst [vmem:[#allocation3 + $0x128] sm:$0xf] %v3969_v50  ;;  %3978 = vst [vmem:[#allocation3 + $0x38] sm:$0xf] %v3970_v9  ;;  %3203 = vrot.lane.b32.xlu1 %v3195_v41, %s6932_s20  ;;  %4472 = vmatprep.subr.msk.mxu0 %vm374_vm5, %v4166_v57 }
 0x3c9   : > { %4473 = vmatpush1.msk.msra.mxu0 %vm374_vm5, %v4165_v8  ;;  %4476 = vmatpush1.msk.msra.mxu1 %vm374_vm5, %v4167_v42  ;;  %v2990_v42 = vrot.slane %v6314_v11, 4  ;;  %v2991_v8 = vrot.slane %v6339_v56, 4  ;;  %s4361_s20 = scalar_lea.sflag [#allocation6], %s4871_s22 }
 0x3ca   : > { %v3966_v12 = vpop.permute.xlu1 %3965  ;;  %3140 = vrot.lane.b32.xlu0 %v6497_v59, %s6914_s7 }
 0x3cb   : > { %v3971_v41 = vsel %vm510_vm2, %v6444_v61, %v3966_v12  ;;  %v3972_v47 = vsel %vm510_vm2, %v3966_v12, %v6408_v24  ;;  %v3837_v13 = vpop.permute.xlu0 %3836  ;;  %v2927_v24 = vsel %vm398_vm6, %v2925_v36, %v6303_v31  ;;  %v2992_v33 = vsel %vm6940_vm15, %v2990_v42, %v6314_v11  ;;  %vm6944_vm15 = vmmov %vm6943_vm0 }
 0x3cc   : > { %3979 = vst [vmem:[#allocation3 + $0x88] sm:$0xf] %v3971_v41  ;;  %3980 = vst [vmem:[#allocation3 + $0x170] sm:$0xf] %v3972_v47  ;;  %3076 = vrot.lane.b32.xlu1 %v3065_v62, %s6937_s10  ;;  %v2928_v62 = vsel %vm374_vm5, %v2925_v36, %v2926_v51  ;;  %v6524_v18 = vmul.f32 %v2927_v24, %v6179_v40  ;;  %v2900_v24 = vld [vmem:[#allocation2 + $0x10] sm:$0xf] }
 0x3cd   : > { %v2929_v49 = vsel %vm398_vm6, %v2928_v62, %v6324_v19  ;;  %v2935_v62 = vmul.f32 %v2926_v51, %v2900_v24 }
 0x3ce   : > { %v3831_v61 = vpop.permute.xlu1 %3830  ;;  %3144 = vrot.lane.b32.xlu0 %v3130_v4, %s6914_s7  ;;  %v2939_v50 = vcombine.high %v6524_v18, %v6524_v18  ;;  %v2934_v48 = vmul.f32 %v2929_v49, %v6187_v53  ;;  %v2794_v4 = vrot.slane %v6326_v2, 4 }
 0x3cf   : > { %v3839_v55 = vsel %vm647_vm4, %v3831_v61, %v3833_v20  ;;  %v4162_v27 = vld [vmem:[#allocation3 + $0x38] sm:$0xff]  ;;  %v4161_v52 = vld [vmem:[#allocation3 + $0x128] sm:$0xff]  ;;  %v3899_v31 = vpop.permute.xlu0 %3898 }
 0x3d0   : > { %3847 = vst [vmem:[#allocation3 + $0x78] sm:$0xf] %v3839_v55  ;;  %3080 = vrot.lane.b32.xlu1 %v3066_v63, %s6937_s10  ;;  %4190 = vmatprep.subr.mxu0 %v4162_v27  ;;  %v2940_v36 = vcombine.high %v2934_v48, %v2934_v48  ;;  %v2993_v63 = vsel %vm374_vm5, %v2990_v42, %v2991_v8 }
 0x3d1   : > { %4191 = vmatpush1.msra.mxu0 %v4161_v52  ;;  %v2994_v27 = vsel %vm6941_vm1, %v2993_v63, %v6339_v56  ;;  %v2795_v52 = vrot.slane %v6348_v1, 4  ;;  %v2965_v56 = vld [vmem:[#allocation2 + $0x10] sm:$0xf] }
 0x3d2   : > { %v3835_v10 = vpop.permute.xlu1 %3834  ;;  %3072 = vrot.lane.b32.xlu0 %v6465_v17, %s6937_s10  ;;  %v3135_v17 = vcombine.low %v6497_v59, %v6497_v59  ;;  %v6552_v59 = vmul.f32 %v2992_v33, %v6179_v40  ;;  %v3000_v19 = vmul.f32 %v2991_v8, %v2965_v56 }
 0x3d3   : > { %v3840_v7 = vsel %vm647_vm4, %v3833_v20, %v3835_v10  ;;  %v3841_v14 = vsel %vm647_vm4, %v3835_v10, %v3837_v13  ;;  %v4164_v26 = vld [vmem:[#allocation3 + $0x170] sm:$0xff]  ;;  %v4163_v15 = vld [vmem:[#allocation3 + $0x88] sm:$0xff]  ;;  %v3903_v9 = vpop.permute.xlu0 %3902  ;;  %v2796_v10 = vsel %vm535_vm7, %v2794_v4, %v6326_v2 }
 0x3d4   : > { %3848 = vst [vmem:[#allocation3 + $0xa0] sm:$0xf] %v3840_v7  ;;  %3849 = vst [vmem:[#allocation3 + $0x158] sm:$0xf] %v3841_v14  ;;  %3142 = vrot.lane.b32.xlu1 %v3136_v29, %s6914_s7  ;;  %4261 = vmatprep.subr.mxu1 %v4164_v26  ;;  %v2797_v14 = vsel %vm374_vm5, %v2794_v4, %v2795_v52  ;;  %v6574_v51 = vmul.f32 %v2796_v10, %v6179_v40 }
 0x3d5   : > { %4262 = vmatpush1.msra.mxu1 %v4163_v15 }
 0x3d6   : > { %v3897_v57 = vpop.permute.xlu1 %3896  ;;  %2943 = vrot.lane.b32.xlu0 %v2939_v50, %s4700_s11  ;;  %v2808_v42 = vcombine.high %v6574_v51, %v6574_v51 }
 0x3d7   : > { %v3905_v5 = vsel %vm578_vm3, %v3897_v57, %v3899_v31  ;;  %v3895_v20 = vpop.permute.xlu0 %3894 }
 0x3d8   : > { %3913 = vst [vmem:[#allocation3 + $0x78] sm:$0xf0] %v3905_v5  ;;  %3146 = vrot.lane.b32.xlu1 %v3137_v6, %s6914_s7  ;;  %v3904_v41 = vsel %vm578_vm3, %v3895_v20, %v3897_v57  ;;  %v2798_v6 = vsel %vm535_vm7, %v2797_v14, %v6348_v1  ;;  %v2859_v20 = vrot.slane %v6341_v30, 4 }
 0x3d9   : > { %3912 = vst [vmem:[#allocation3 + $0x70] sm:$0xf0] %v3904_v41 }
 0x3da   : > { %v3901_v12 = vpop.permute.xlu1 %3900  ;;  %2947 = vrot.lane.b32.xlu0 %v2940_v36, %s4700_s11  ;;  %v2860_v36 = vrot.slane %v6362_v3, 4 }
 0x3db   : > { %v3906_v47 = vsel %vm578_vm3, %v3899_v31, %v3901_v12  ;;  %v3907_v58 = vsel %vm578_vm3, %v3901_v12, %v3903_v9  ;;  %v3702_v13 = vpop.permute.xlu0 %3701 }
 0x3dc   : > { %3914 = vst [vmem:[#allocation3 + $0xa0] sm:$0xf0] %v3906_v47  ;;  %3915 = vst [vmem:[#allocation3 + $0x158] sm:$0xf0] %v3907_v58  ;;  %3138 = vrot.lane.b32.xlu1 %v3135_v17, %s6914_s7  ;;  %v2803_v17 = vmul.f32 %v2798_v6, %v6187_v53  ;;  %v2861_v58 = vsel %vm467_vm8, %v2859_v20, %v6341_v30  ;;  %v2862_v4 = vsel %vm374_vm5, %v2859_v20, %v2860_v36 }
 0x3de   : > { %v3829_v11 = vpop.permute.xlu1 %3828  ;;  %3009 = vrot.lane.b32.xlu0 %v6552_v59, %s6915_s15  ;;  %v2809_v47 = vcombine.high %v2803_v17, %v2803_v17 }
 0x3df   : > { %v3838_v0 = vsel %vm647_vm4, %v3829_v11, %v3831_v61  ;;  %v4158_v55 = vld [vmem:[#allocation3 + $0x78] sm:$0xff]  ;;  %v3706_v34 = vpop.permute.xlu0 %3705  ;;  %v2999_v61 = vmul.f32 %v2994_v27, %v6187_v53 }
 0x3e0   : > { %3846 = vst [vmem:[#allocation3 + $0x70] sm:$0xf] %v3838_v0  ;;  %2945 = vrot.lane.b32.xlu1 %v2934_v48, %s4700_s11  ;;  %4192 = vmatprep.subr.mxu0 %v4158_v55  ;;  %v3006_v48 = vcombine.low %v3000_v19, %v3000_v19  ;;  %v2663_v0 = vrot.slane %v6350_v16, 4  ;;  %v2769_v55 = vld [vmem:[#allocation2 + $0x10] sm:$0xf] }
 0x3e1   : > { %v3005_v15 = vcombine.low %v2999_v61, %v2999_v61  ;;  %v2804_v10 = vmul.f32 %v2795_v52, %v2769_v55 }
 0x3e2   : > { %v3700_v31 = vpop.permute.xlu1 %3699  ;;  %3013 = vrot.lane.b32.xlu0 %v2999_v61, %s6915_s15  ;;  %v2664_v61 = vrot.slane %v6375_v46, 4 }
 0x3e3   : > { %v3708_v29 = vsel %vm535_vm7, %v3700_v31, %v3702_v13  ;;  %v4160_v49 = vld [vmem:[#allocation3 + $0x158] sm:$0xff]  ;;  %v4159_v7 = vld [vmem:[#allocation3 + $0xa0] sm:$0xff]  ;;  %v3768_v2 = vpop.permute.xlu0 %3767 }
 0x3e4   : > { %3716 = vst [vmem:[#allocation3 + $0x100] sm:$0xf] %v3708_v29  ;;  %2949 = vrot.lane.b32.xlu1 %v2935_v62, %s4700_s11  ;;  %4263 = vmatprep.subr.mxu1 %v4160_v49  ;;  %v2665_v49 = vsel %vm647_vm4, %v2663_v0, %v6350_v16 }
 0x3e5   : > { %4264 = vmatpush1.msra.mxu1 %v4159_v7  ;;  %v6624_v52 = vmul.f32 %v2665_v49, %v6179_v40 }
 0x3e6   : > { %v3704_v26 = vpop.permute.xlu1 %3703  ;;  %2941 = vrot.lane.b32.xlu0 %v6524_v18, %s4700_s11  ;;  %v3004_v18 = vcombine.low %v6552_v59, %v6552_v59  ;;  %v6602_v59 = vmul.f32 %v2861_v58, %v6179_v40 }
 0x3e7   : > { %v3709_v50 = vsel %vm535_vm7, %v3702_v13, %v3704_v26  ;;  %v3710_v9 = vsel %vm535_vm7, %v3704_v26, %v3706_v34  ;;  %v4157_v57 = vld [vmem:[#allocation3 + $0x70] sm:$0xff]  ;;  %v3772_v5 = vpop.permute.xlu0 %3771  ;;  %v2863_v34 = vsel %vm467_vm8, %v2862_v4, %v6362_v3  ;;  %v2834_v3 = vld [vmem:[#allocation2 + $0x10] sm:$0xf] }
 0x3e8   : > { %3717 = vst [vmem:[#allocation3 + $0x160] sm:$0xf] %v3709_v50  ;;  %3718 = vst [vmem:[#allocation3 + $0x20] sm:$0xf] %v3710_v9  ;;  %3011 = vrot.lane.b32.xlu1 %v3005_v15, %s6915_s15  ;;  %4193 = vmatpush1.msra.mxu0 %v4157_v57  ;;  %v2869_v1 = vmul.f32 %v2860_v36, %v2834_v3 }
 0x3ea   : > { %v3766_v8 = vpop.permute.xlu1 %3765  ;;  %2812 = vrot.lane.b32.xlu0 %v2808_v42, %s4702_s23  ;;  %v2875_v40 = vcombine.low %v2869_v1, %v2869_v1 }
 0x3eb   : > { %v3774_v12 = vsel %vm604_vm9, %v3766_v8, %v3768_v2  ;;  %v3764_v33 = vpop.permute.xlu0 %3763 }
 0x3ec   : > { %3782 = vst [vmem:[#allocation3 + $0x100] sm:$0xf0] %v3774_v12  ;;  %3015 = vrot.lane.b32.xlu1 %v3006_v48, %s6915_s15  ;;  %v3773_v63 = vsel %vm604_vm9, %v3764_v33, %v3766_v8  ;;  %v2677_v48 = vcombine.high %v6624_v52, %v6624_v52  ;;  %v2729_v12 = vrot.slane %v6386_v25, 4 }
 0x3ed   : > { %3781 = vst [vmem:[#allocation3 + $0x10] sm:$0xf0] %v3773_v63 }
 0x3ee   : > { %v3770_v41 = vpop.permute.xlu1 %3769  ;;  %2816 = vrot.lane.b32.xlu0 %v2809_v47, %s4702_s23 }
 0x3ef   : > { %v3775_v13 = vsel %vm604_vm9, %v3768_v2, %v3770_v41  ;;  %v3776_v11 = vsel %vm604_vm9, %v3770_v41, %v3772_v5  ;;  %v3571_v24 = vpop.permute.xlu0 %3570  ;;  %v2666_v2 = vsel %vm374_vm5, %v2663_v0, %v2664_v61 }
 0x3f0   : > { %3783 = vst [vmem:[#allocation3 + $0x160] sm:$0xf0] %v3775_v13  ;;  %3784 = vst [vmem:[#allocation3 + $0x20] sm:$0xf0] %v3776_v11  ;;  %3007 = vrot.lane.b32.xlu1 %v3004_v18, %s6915_s15  ;;  %v2667_v6 = vsel %vm647_vm4, %v2666_v2, %v6375_v46  ;;  %v6651_v13 = vld [vmem:[#allocation2] sm:$0xff]  ;;  %s6967_s15 = sshll.u32 %s4871_s22, 4 }
 0x3f1   : > { %v2672_v8 = vmul.f32 %v2667_v6, %v6187_v53  ;;  %s336_s7 = scalar_lea.vmem [#allocation9], %s6967_s15 }
 0x3f2   : > { %v3698_v30 = vpop.permute.xlu1 %3697  ;;  %2878 = vrot.lane.b32.xlu0 %v6602_v59, %s4701_s13  ;;  %s4375_s17 = sshll.u32 %s336_s7, 4  ;;  %s4376_s17 = int_to_ptr.vmem [resolvable:$true] %s4375_s17 }
 0x3f3   : > { %v3707_v27 = vsel %vm535_vm7, %v3698_v30, %v3700_v31  ;;  %v4154_v62 = vld [vmem:[#allocation3 + $0x100] sm:$0xff]  ;;  %v3575_v56 = vpop.permute.xlu0 %3574  ;;  %v2868_v31 = vmul.f32 %v2863_v34, %v6187_v53  ;;  %v2678_v33 = vcombine.high %v2672_v8, %v2672_v8  ;;  %s4625_s10 = scalar_lea.vmem %s4376_s17, 256 }
 0x3f4   : > { %3715 = vst [vmem:[#allocation3 + $0x10] sm:$0xf] %v3707_v27  ;;  %2814 = vrot.lane.b32.xlu1 %v2803_v17, %s4702_s23  ;;  %4194 = vmatprep.subr.mxu0 %v4154_v62  ;;  %v2728_v17 = vrot.slane %v6364_v22, 4  ;;  %v2533_v27 = vrot.slane %v6398_v28, 4  ;;  %p4626_p8 = scmp.ne.s32.totalorder %s4376_s17, %s4625_s10 }
 0x3f5   : > { %v2874_v15 = vcombine.low %v2868_v31, %v2868_v31 }
 0x3f6   : > { %v3569_v29 = vpop.permute.xlu1 %3568  ;;  %2882 = vrot.lane.b32.xlu0 %v2868_v31, %s4701_s13  ;;  %v2730_v53 = vsel %vm604_vm9, %v2728_v17, %v6364_v22  ;;  %v2731_v63 = vsel %vm374_vm5, %v2728_v17, %v2729_v12  ;;  %v2703_v31 = vld [vmem:[#allocation2 + $0x10] sm:$0xf]  ;;  %p4627_p11 = pnand %p4626_p8, %p6968_p3 }
 0x3f7   : > { %v3577_v7 = vsel %vm398_vm6, %v3569_v29, %v3571_v24  ;;  %v4156_v14 = vld [vmem:[#allocation3 + $0x20] sm:$0xff]  ;;  %v3637_v16 = vpop.permute.xlu0 %3636  ;;  %v6654_v11 = vmul.f32 %v6651_v13, %v2730_v53  ;;  %v2732_v55 = vsel %vm604_vm9, %v2731_v63, %v6386_v25  ;;  %v2738_v46 = vmul.f32 %v2729_v12, %v2703_v31 }
 0x3f8   : > { %v4155_v19 = vld [vmem:[#allocation3 + $0x160] sm:$0xff]  ;;  %3585 = vst [vmem:[#allocation3 + $0xa8] sm:$0xf] %v3577_v7  ;;  %2818 = vrot.lane.b32.xlu1 %v2804_v10, %s4702_s23  ;;  %4265 = vmatprep.subr.mxu1 %v4156_v14  ;;  %p4628_p7 = pneg %p4627_p11 }
 0x3f9   : > { %4266 = vmatpush1.msra.mxu1 %v4155_v19  ;;  %v2744_v6 = vcombine.low %v2738_v46, %v2738_v46  ;;  %v2467_v46 = vrot.slane %v6427_v43, 4 }
 0x3fa   : > { %v3573_v26 = vpop.permute.xlu1 %3572  ;;  %2810 = vrot.lane.b32.xlu0 %v6574_v51, %s4702_s23  ;;  %v2873_v51 = vcombine.low %v6602_v59, %v6602_v59  ;;  %v2638_v59 = vld [vmem:[#allocation2 + $0x10] sm:$0xf] }
 0x3fb   : > { %v3578_v50 = vsel %vm398_vm6, %v3571_v24, %v3573_v26  ;;  %v3579_v9 = vsel %vm398_vm6, %v3573_v26, %v3575_v56  ;;  %v4153_v57 = vld [vmem:[#allocation3 + $0x10] sm:$0xff]  ;;  %v3641_v42 = vpop.permute.xlu0 %3640  ;;  %v2532_v24 = vrot.slane %v6377_v23, 4  ;;  %v2673_v62 = vmul.f32 %v2664_v61, %v2638_v59 }
 0x3fc   : > { %3586 = vst [vmem:[#allocation3 + $0xd0] sm:$0xf] %v3578_v50  ;;  %3587 = vst [vmem:[#allocation3 + $0x1a0] sm:$0xf] %v3579_v9  ;;  %2880 = vrot.lane.b32.xlu1 %v2874_v15, %s4701_s13  ;;  %4195 = vmatpush1.msra.mxu0 %v4153_v57  ;;  %v6666_v56 = vld [vmem:[#allocation2 + $0x8] sm:$0xff] }
 0x3fd   : > { %v2534_v25 = vsel %vm510_vm2, %v2532_v24, %v6377_v23  ;;  %v2535_v14 = vsel %vm374_vm5, %v2532_v24, %v2533_v27 }
 0x3fe   : > { %v3635_v5 = vpop.permute.xlu1 %3634  ;;  %2681 = vrot.lane.b32.xlu0 %v2677_v48, %s4704_s19  ;;  %v6678_v61 = vmul.f32 %v6651_v13, %v2534_v25  ;;  %v2536_v1 = vsel %vm510_vm2, %v2535_v14, %v6398_v28  ;;  %v2597_v48 = vrot.slane %v6388_v39, 4  ;;  %v2415_v25 = vcombine.high %v6194_v32, %v6194_v32 }
 0x3ff   : > { %v3643_v20 = vsel %vm467_vm8, %v3635_v5, %v3637_v16  ;;  %v3633_v36 = vpop.permute.xlu0 %3632 }
 0x400   : > { %3651 = vst [vmem:[#allocation3 + $0xa8] sm:$0xf0] %v3643_v20  ;;  %2884 = vrot.lane.b32.xlu1 %v2875_v40, %s4701_s13  ;;  %v3642_v41 = vsel %vm467_vm8, %v3633_v36, %v3635_v5  ;;  %v2546_v50 = vcombine.high %v6678_v61, %v6678_v61  ;;  %v2541_v40 = vmul.f32 %v6666_v56, %v2536_v1  ;;  %v2598_v5 = vrot.slane %v6415_v44, 4 }
 0x401   : > { %3650 = vst [vmem:[#allocation3 + $0x40] sm:$0xf0] %v3642_v41  ;;  %v2599_v12 = vsel %vm578_vm3, %v2597_v48, %v6388_v39  ;;  %v2507_v39 = vld [vmem:[#allocation2 + $0x10] sm:$0xf] }
 0x402   : > { %v3639_v18 = vpop.permute.xlu1 %3638  ;;  %2685 = vrot.lane.b32.xlu0 %v2678_v33, %s4704_s19  ;;  %v2547_v20 = vcombine.high %v2541_v40, %v2541_v40  ;;  %v2600_v33 = vsel %vm374_vm5, %v2597_v48, %v2598_v5  ;;  %v2605_v53 = vmul.f32 %v6651_v13, %v2599_v12  ;;  %v2440_v48 = vld [vmem:[#allocation2 + $0x8] sm:$0xff] }
 0x403   : > { %v3644_v47 = vsel %vm467_vm8, %v3637_v16, %v3639_v18  ;;  %v3645_v58 = vsel %vm467_vm8, %v3639_v18, %v3641_v42  ;;  %v3440_v22 = vpop.permute.xlu0 %3439 }
 0x404   : > { %3652 = vst [vmem:[#allocation3 + $0xd0] sm:$0xf0] %v3644_v47  ;;  %3653 = vst [vmem:[#allocation3 + $0x1a0] sm:$0xf0] %v3645_v58  ;;  %2876 = vrot.lane.b32.xlu1 %v2873_v51, %s4701_s13 }
 0x406   : > { %v3567_v4 = vpop.permute.xlu1 %3566  ;;  %2747 = vrot.lane.b32.xlu0 %v6654_v11, %s4703_s18 }
 0x407   : > { %v3576_v30 = vsel %vm398_vm6, %v3567_v4, %v3569_v29  ;;  %v4150_v0 = vld [vmem:[#allocation3 + $0xa8] sm:$0xff]  ;;  %v3444_v34 = vpop.permute.xlu0 %3443  ;;  %v2737_v29 = vmul.f32 %v6666_v56, %v2732_v55 }
 0x408   : > { %3584 = vst [vmem:[#allocation3 + $0x40] sm:$0xf] %v3576_v30  ;;  %2683 = vrot.lane.b32.xlu1 %v2672_v8, %s4704_s19  ;;  %4196 = vmatprep.subr.mxu0 %v4150_v0  ;;  %v2572_v30 = vld [vmem:[#allocation2 + $0x10] sm:$0xf] }
 0x409   : > { %v2743_v2 = vcombine.low %v2737_v29, %v2737_v29 }
 0x40a   : > { %v3438_v10 = vpop.permute.xlu1 %3437  ;;  %2751 = vrot.lane.b32.xlu0 %v2737_v29, %s4703_s18 }
 0x40b   : > { %v3446_v49 = vsel %vm6942_vm11, %v3438_v10, %v3440_v22  ;;  %v4152_v3 = vld [vmem:[#allocation3 + $0x1a0] sm:$0xff]  ;;  %v4151_v7 = vld [vmem:[#allocation3 + $0xd0] sm:$0xff]  ;;  %v3506_v23 = vpop.permute.xlu0 %3505  ;;  %vm6945_vm11 = vmmov %vm6941_vm1 }
 0x40c   : > { %3454 = vst [vmem:[#allocation3 + $0x68] sm:$0xf] %v3446_v49  ;;  %2687 = vrot.lane.b32.xlu1 %v2673_v62, %s4704_s19  ;;  %4267 = vmatprep.subr.mxu1 %v4152_v3 }
 0x40d   : > { %4268 = vmatpush1.msra.mxu1 %v4151_v7  ;;  %v2466_v7 = vrot.slane %v6401_v45, 4 }
 0x40e   : > { %v3442_v19 = vpop.permute.xlu1 %3441  ;;  %2679 = vrot.lane.b32.xlu0 %v6624_v52, %s4704_s19  ;;  %v2742_v52 = vcombine.low %v6654_v11, %v6654_v11  ;;  %v2601_v11 = vsel %vm578_vm3, %v2600_v33, %v6415_v44  ;;  %v2607_v44 = vmul.f32 %v2598_v5, %v2572_v30 }
 0x40f   : > { %v3447_v16 = vsel %vm6943_vm0, %v3440_v22, %v3442_v19  ;;  %v3448_v26 = vsel %vm6944_vm15, %v3442_v19, %v3444_v34  ;;  %v4149_v15 = vld [vmem:[#allocation3 + $0x40] sm:$0xff]  ;;  %v3510_v9 = vpop.permute.xlu0 %3509  ;;  %vm6946_vm0 = vmmov %vm6941_vm1  ;;  %v2542_v22 = vmul.f32 %v2533_v27, %v2507_v39  ;;  %v2606_v24 = vmul.f32 %v6666_v56, %v2601_v11 }
 0x410   : > { %3455 = vst [vmem:[#allocation3 + $0x148] sm:$0xf] %v3447_v16  ;;  %3456 = vst [vmem:[#allocation3 + $0x8] sm:$0xf] %v3448_v26  ;;  %2749 = vrot.lane.b32.xlu1 %v2743_v2, %s4703_s18  ;;  %4197 = vmatpush1.msra.mxu0 %v4149_v15  ;;  %v2613_v31 = vcombine.low %v2607_v44, %v2607_v44  ;;  %v2469_v15 = vsel %vm374_vm5, %v2466_v7, %v2467_v46  ;;  %vm6954_vm5 = vcmask 449536  }
 0x411   : > { %vm6947_vm15 = vmmov %vm6946_vm0  ;;  %v2612_v27 = vcombine.low %v2606_v24, %v2606_v24 }
 0x412   : > { %v3504_v57 = vpop.permute.xlu1 %3503  ;;  %2550 = vrot.lane.b32.xlu0 %v2546_v50, %s4706_s24 }
 0x413   : > { %v3512_v42 = vsel %vm6941_vm1, %v3504_v57, %v3506_v23  ;;  %v3502_v8 = vpop.permute.xlu0 %3501  ;;  %vm6948_vm1 = vcmask 982016  }
 0x414   : > { %3520 = vst [vmem:[#allocation3 + $0x68] sm:$0xf0] %v3512_v42  ;;  %2753 = vrot.lane.b32.xlu1 %v2744_v6, %s4703_s18  ;;  %v3511_v51 = vsel %vm6945_vm11, %v3502_v8, %v3504_v57  ;;  %vm6949_vm11 = vcmask 990208  }
 0x415   : > { %3519 = vst [vmem:[#allocation3] sm:$0xf0] %v3511_v51 }
 0x416   : > { %v3508_v17 = vpop.permute.xlu1 %3507  ;;  %2554 = vrot.lane.b32.xlu0 %v2547_v20, %s4706_s24 }
 0x417   : > { %v3513_v36 = vsel %vm6946_vm0, %v3506_v23, %v3508_v17  ;;  %v3514_v18 = vsel %vm6947_vm15, %v3508_v17, %v3510_v9  ;;  %v3309_v41 = vpop.permute.xlu0 %3308  ;;  %v2611_v23 = vcombine.low %v2605_v53, %v2605_v53  ;;  %vm6950_vm0 = vcmask 457728   ;;  %vm6951_vm15 = vmmov %vm6949_vm11  ;;  %v2441_v17 = vld [vmem:[#allocation2 + $0x10] sm:$0xf] }
 0x418   : > { %3521 = vst [vmem:[#allocation3 + $0x148] sm:$0xf0] %v3513_v36  ;;  %3522 = vst [vmem:[#allocation3 + $0x8] sm:$0xf0] %v3514_v18  ;;  %2745 = vrot.lane.b32.xlu1 %v2742_v52, %s4703_s18  ;;  %v2468_v32 = vsel %vm6950_vm0, %v2466_v7, %v6401_v45  ;;  %v2376_v45 = vld [vmem:[#allocation2 + $0x10] sm:$0xf]  ;;  %v2470_v42 = vsel %vm6950_vm0, %v2469_v15, %v6427_v43  ;;  %v2476_v43 = vmul.f32 %v2467_v46, %v2441_v17 }
 0x419   : > { %v2474_v6 = vmul.f32 %v6651_v13, %v2468_v32  ;;  %v2411_v13 = vmul.f32 %v2402_v37, %v2376_v45  ;;  %v2475_v8 = vmul.f32 %v2470_v42, %v2440_v48 }
 0x41a   : > { %v3436_v47 = vpop.permute.xlu1 %3435  ;;  %2616 = vrot.lane.b32.xlu0 %v2605_v53, %s6926_s14 }
 0x41b   : > { %v3445_v58 = vsel %vm6948_vm1, %v3436_v47, %v3438_v10  ;;  %v4146_v63 = vld [vmem:[#allocation3 + $0x68] sm:$0xff]  ;;  %v3313_v4 = vpop.permute.xlu0 %3312  ;;  %vm6952_vm1 = vmmov %vm6949_vm11  ;;  %v2481_v37 = vcombine.low %v2475_v8, %v2475_v8  ;;  %v2482_v47 = vcombine.low %v2476_v43, %v2476_v43 }
 0x41c   : > { %3453 = vst [vmem:[#allocation3] sm:$0xf] %v3445_v58  ;;  %2552 = vrot.lane.b32.xlu1 %v2541_v40, %s4706_s24  ;;  %4198 = vmatprep.subr.mxu0 %v4146_v63 }
 0x41e   : > { %v3307_v59 = vpop.permute.xlu1 %3306  ;;  %2620 = vrot.lane.b32.xlu0 %v2606_v24, %s6926_s14 }
 0x41f   : > { %v3315_v0 = vsel %vm1186_vm14, %v3307_v59, %v3309_v41  ;;  %v4148_v55 = vld [vmem:[#allocation3 + $0x8] sm:$0xff]  ;;  %v3375_v34 = vpop.permute.xlu0 %3374 }
 0x420   : > { %v4147_v62 = vld [vmem:[#allocation3 + $0x148] sm:$0xff]  ;;  %3323 = vst [vmem:[#allocation3 + $0xc0] sm:$0xf] %v3315_v0  ;;  %2556 = vrot.lane.b32.xlu1 %v2542_v22, %s4706_s24  ;;  %4269 = vmatprep.subr.mxu1 %v4148_v55 }
 0x421   : > { %4270 = vmatpush1.msra.mxu1 %v4147_v62  ;;  %v4326_v22 = vld [vmem:[%s6861_s5] sm:$0xf] }
 0x422   : > { %v3311_v28 = vpop.permute.xlu1 %3310  ;;  %2548 = vrot.lane.b32.xlu0 %v6678_v61, %s4706_s24  ;;  %v2416_v61 = vcombine.high %v6197_v38, %v6197_v38  ;;  %s4484_s24 = sshll.u32 %s4785_s9, 8  ;;  %s4718_s9 = smov [#allocation9]  }
 0x423   : > { %v3316_v10 = vsel %vm1186_vm14, %v3309_v41, %v3311_v28  ;;  %v3317_v56 = vsel %vm1186_vm14, %v3311_v28, %v3313_v4  ;;  %v4145_v29 = vld [vmem:[#allocation3] sm:$0xff]  ;;  %v3379_v49 = vpop.permute.xlu0 %3378  ;;  %v4336_v41 = vld [vmem:[%s6862_s6] sm:$0xf]  ;;  %s4629_s11 = sshll.u32 %s4718_s9, 4  ;;  %s4630_s11 = int_to_ptr.vmem [resolvable:$false] %s4629_s11 }
 0x424   : > { %3324 = vst [vmem:[#allocation3 + $0x178] sm:$0xf] %v3316_v10  ;;  %3325 = vst [vmem:[#allocation3 + $0xc8] sm:$0xf] %v3317_v56  ;;  %2618 = vrot.lane.b32.xlu1 %v2612_v27, %s6926_s14  ;;  %4199 = vmatpush1.msra.mxu0 %v4145_v29  ;;  %s4631_s13 = scalar_lea.vmem %s4630_s11, 512  ;;  %p4632_p10 = scmp.lt.s32.totalorder %s4376_s17, %s4630_s11 }
 0x425   : > { %p4633_p2 = scmp.lt.s32.totalorder %s4631_s13, %s4625_s10 }
 0x426   : > { %v3373_v3 = vpop.permute.xlu1 %3372  ;;  %2419 = vrot.lane.b32.xlu0 %v2415_v25, %s4705_s21 }
 0x427   : > { %v3381_v14 = vsel %vm6949_vm11, %v3373_v3, %v3375_v34  ;;  %v3371_v19 = vpop.permute.xlu0 %3370  ;;  %vm6953_vm11 = vmmov %vm6952_vm1  ;;  %p4634_p13 = por %p4633_p2, %p4632_p10 }
 0x428   : > { %3389 = vst [vmem:[#allocation3 + $0xc0] sm:$0xf0] %v3381_v14  ;;  %2622 = vrot.lane.b32.xlu1 %v2613_v31, %s6926_s14  ;;  %v3380_v1 = vsel %vm6951_vm15, %v3371_v19, %v3373_v3 }
 0x429   : > { %3388 = vst [vmem:[#allocation3 + $0x90] sm:$0xf0] %v3380_v1  ;;  %p4635_p0 = pnand %p4634_p13, %p4628_p7 }
 0x42a   : > { %v3377_v2 = vpop.permute.xlu1 %3376  ;;  %2423 = vrot.lane.b32.xlu0 %v2416_v61, %s4705_s21 }
 0x42b   : > { %v3382_v16 = vsel %vm6952_vm1, %v3375_v34, %v3377_v2  ;;  %v3383_v26 = vsel %vm6953_vm11, %v3377_v2, %v3379_v49  ;;  %v3208_v50 = vpop.permute.xlu0 %3207 }
 0x42c   : > { %3390 = vst [vmem:[#allocation3 + $0x178] sm:$0xf0] %v3382_v16  ;;  %3391 = vst [vmem:[#allocation3 + $0xc8] sm:$0xf0] %v3383_v26  ;;  %2614 = vrot.lane.b32.xlu1 %v2611_v23, %s6926_s14 }
 0x42e   : > { %v3305_v9 = vpop.permute.xlu1 %3304  ;;  %2485 = vrot.lane.b32.xlu0 %v2474_v6, %s6928_s16 }
 0x42f   : > { %v3314_v57 = vsel %vm1186_vm14, %v3305_v9, %v3307_v59  ;;  %v4142_v40 = vld [vmem:[#allocation3 + $0xc0] sm:$0xff]  ;;  %v3212_v5 = vpop.permute.xlu0 %3211  ;;  %vm6958_vm14 = vcmask 72704  }
 0x430   : > { %3322 = vst [vmem:[#allocation3 + $0x90] sm:$0xf] %v3314_v57  ;;  %2421 = vrot.lane.b32.xlu1 %v6197_v38, %s4705_s21  ;;  %4200 = vmatprep.subr.mxu0 %v4142_v40  ;;  %v2480_v38 = vcombine.low %v2474_v6, %v2474_v6  ;;  %vm6959_vm15 = vmmov %vm6958_vm14 }
 0x431   : > { %vm6960_vm1 = vmmov %vm6958_vm14 }
 0x432   : > { %v3206_v52 = vpop.permute.xlu1 %3205  ;;  %2489 = vrot.lane.b32.xlu0 %v2475_v8, %s6928_s16  ;;  %vm6961_vm11 = vmmov %vm6960_vm1 }
 0x433   : > { %v3214_v20 = vsel %vm1211_vm12, %v3206_v52, %v3208_v50  ;;  %v4144_v12 = vld [vmem:[#allocation3 + $0xc8] sm:$0xff]  ;;  %v4143_v51 = vld [vmem:[#allocation3 + $0x178] sm:$0xff]  ;;  %v3075_v36 = vpop.permute.xlu0 %3074 }
 0x434   : > { %3222 = vst [vmem:[#allocation3 + $0xf8] sm:$0xf] %v3214_v20  ;;  %2425 = vrot.lane.b32.xlu1 %v2411_v13, %s4705_s21  ;;  %4271 = vmatprep.subr.mxu1 %v4144_v12 }
 0x435   : > { %4272 = vmatpush1.msra.mxu1 %v4143_v51 }
 0x436   : > { %v3210_v35 = vpop.permute.xlu1 %3209  ;;  %2483 = vrot.lane.b32.xlu0 %v2480_v38, %s6928_s16 }
 0x437   : > { %v3215_v18 = vsel %vm1211_vm12, %v3208_v50, %v3210_v35  ;;  %v3216_v33 = vsel %vm1211_vm12, %v3210_v35, %v3212_v5  ;;  %v4141_v53 = vld [vmem:[#allocation3 + $0x90] sm:$0xff]  ;;  %v3079_v39 = vpop.permute.xlu0 %3078 }
 0x438   : > { %3223 = vst [vmem:[#allocation3 + $0x190] sm:$0xf] %v3215_v18  ;;  %3224 = vst [vmem:[#allocation3 + $0xb8] sm:$0xf] %v3216_v33  ;;  %2487 = vrot.lane.b32.xlu1 %v2481_v37, %s6928_s16  ;;  %4201 = vmatpush1.msra.mxu0 %v4141_v53 }
 0x43a   : > { %v3204_v58 = vpop.permute.xlu1 %3203  ;;  %4339 = vperm.xlu0 %4563, %v4336_v41  }
 0x43b   : > { %v3213_v63 = vsel %vm1211_vm12, %v3204_v58, %v3206_v52  ;;  %v4138_v11 = vld [vmem:[#allocation3 + $0xf8] sm:$0xff]  ;;  %vm6956_vm12 = vmmov %vm6954_vm5 }
 0x43c   : > { %3221 = vst [vmem:[#allocation3 + $0xe8] sm:$0xf] %v3213_v63  ;;  %2491 = vrot.lane.b32.xlu1 %v2482_v47, %s6928_s16  ;;  %4202 = vmatprep.subr.mxu0 %v4138_v11  ;;  %v3141_v4 = vpop.permute.xlu0 %3140  ;;  %s4373_s16 = scalar_lea.hbm %s6864_s8, %s4484_s24 }
 0x43e   : > { %v3077_v59 = vpop.permute.xlu1 %3076 }
 0x43f   : > { %v3083_v24 = vsel %vm1074_vm10, %v3075_v36, %v3077_v59  ;;  %v3084_v30 = vsel %vm1074_vm10, %v3077_v59, %v3079_v39  ;;  %v4140_v0 = vld [vmem:[#allocation3 + $0xb8] sm:$0xff]  ;;  %v4139_v55 = vld [vmem:[#allocation3 + $0x190] sm:$0xff] }
 0x440   : > { %3091 = vst [vmem:[#allocation3 + $0x1a8] sm:$0xf] %v3083_v24  ;;  %3092 = vst [vmem:[#allocation3 + $0x1b8] sm:$0xf] %v3084_v30  ;;  %4329 = vperm.xlu1 %4564, %v4326_v22   ;;  %4273 = vmatprep.subr.mxu1 %v4140_v0  ;;  %v3145_v62 = vpop.permute.xlu0 %3144 }
 0x441   : > { %4274 = vmatpush1.msra.mxu1 %v4139_v55 }
 0x442   : > { %v3081_v44 = vpop.permute.xlu1 %3080 }
 0x443   : > { %v3085_v34 = vsel %vm1074_vm10, %v3079_v39, %v3081_v44  ;;  %v4137_v28 = vld [vmem:[#allocation3 + $0xe8] sm:$0xff] }
 0x444   : > { %3093 = vst [vmem:[#allocation3 + $0x28] sm:$0xf] %v3085_v34  ;;  %4203 = vmatpush1.msra.mxu0 %v4137_v28  ;;  %v3073_v27 = vpop.permute.xlu0 %3072 }
 0x445   : > { %v3082_v56 = vsel %vm1074_vm10, %v3073_v27, %v3075_v36  ;;  %vm6955_vm10 = vmmov %vm6954_vm5 }
 0x446   : > { %v3143_v10 = vpop.permute.xlu1 %3142  ;;  %3090 = vst [vmem:[#allocation3 + $0x80] sm:$0xf] %v3082_v56 }
 0x447   : > { %v3149_v29 = vsel %vm1143_vm13, %v3141_v4, %v3143_v10  ;;  %v3150_v31 = vsel %vm1143_vm13, %v3143_v10, %v3145_v62 }
 0x448   : > { %3157 = vst [vmem:[#allocation3 + $0x1a8] sm:$0xf0] %v3149_v29  ;;  %3158 = vst [vmem:[#allocation3 + $0x1b8] sm:$0xf0] %v3150_v31  ;;  %v2944_v25 = vpop.permute.xlu0 %2943 }
 0x44a   : > { %v3147_v49 = vpop.permute.xlu1 %3146 }
 0x44b   : > { %v3151_v3 = vsel %vm1143_vm13, %v3145_v62, %v3147_v49 }
 0x44c   : > { %3159 = vst [vmem:[#allocation3 + $0x28] sm:$0xf0] %v3151_v3  ;;  %v2948_v7 = vpop.permute.xlu0 %2947 }
 0x44e   : > { %v3139_v14 = vpop.permute.xlu1 %3138 }
 0x44f   : > { %v3148_v46 = vsel %vm1143_vm13, %v3139_v14, %v3141_v4  ;;  %v4134_v61 = vld [vmem:[#allocation3 + $0x1a8] sm:$0xff]  ;;  %v4135_v16 = vld [vmem:[#allocation3 + $0x1b8] sm:$0xff]  ;;  %vm6957_vm13 = vmmov %vm6954_vm5 }
 0x450   : > { %3156 = vst [vmem:[#allocation3 + $0x80] sm:$0xf0] %v3148_v46  ;;  %4204 = vmatprep.subr.mxu0 %v4134_v61  ;;  %v3010_v23 = vpop.permute.xlu0 %3009 }
 0x452   : > { %v2946_v19 = vpop.permute.xlu1 %2945 }
 0x453   : > { %v2952_v2 = vsel %vm6954_vm5, %v2944_v25, %v2946_v19  ;;  %v2953_v32 = vsel %vm6955_vm10, %v2946_v19, %v2948_v7  ;;  %v4136_v1 = vld [vmem:[#allocation3 + $0x28] sm:$0xff]  ;;  %vm6962_vm5 = vmmov %vm6950_vm0 }
 0x454   : > { %2960 = vst [vmem:[#allocation3 + $0x188] sm:$0xf] %v2952_v2  ;;  %2961 = vst [vmem:[#allocation3 + $0x138] sm:$0xf] %v2953_v32  ;;  %4275 = vmatprep.subr.mxu1 %v4136_v1  ;;  %v3014_v26 = vpop.permute.xlu0 %3013 }
 0x455   : > { %4276 = vmatpush1.msra.mxu1 %v4135_v16  ;;  %vm6963_vm10 = vmmov %vm6950_vm0 }
 0x456   : > { %v2950_v15 = vpop.permute.xlu1 %2949 }
 0x457   : > { %v2954_v6 = vsel %vm6956_vm12, %v2948_v7, %v2950_v15  ;;  %v4133_v50 = vld [vmem:[#allocation3 + $0x80] sm:$0xff]  ;;  %vm6964_vm12 = vmmov %vm6950_vm0 }
 0x458   : > { %2962 = vst [vmem:[#allocation3 + $0x140] sm:$0xf] %v2954_v6  ;;  %4205 = vmatpush1.msra.mxu0 %v4133_v50  ;;  %v2942_v9 = vpop.permute.xlu0 %2941 }
 0x459   : > { %v2951_v57 = vsel %vm6957_vm13, %v2942_v9, %v2944_v25 }
 0x45a   : > { %v3012_v45 = vpop.permute.xlu1 %3011  ;;  %2959 = vst [vmem:[#allocation3 + $0xe0] sm:$0xf] %v2951_v57 }
 0x45b   : > { %v3018_v40 = vsel %vm6958_vm14, %v3010_v23, %v3012_v45  ;;  %v3019_v48 = vsel %vm6959_vm15, %v3012_v45, %v3014_v26 }
 0x45c   : > { %3026 = vst [vmem:[#allocation3 + $0x188] sm:$0xf0] %v3018_v40  ;;  %3027 = vst [vmem:[#allocation3 + $0x138] sm:$0xf0] %v3019_v48  ;;  %v2813_v42 = vpop.permute.xlu0 %2812 }
 0x45e   : > { %v3016_v13 = vpop.permute.xlu1 %3015 }
 0x45f   : > { %v3020_v5 = vsel %vm6960_vm1, %v3014_v26, %v3016_v13 }
 0x460   : > { %3028 = vst [vmem:[#allocation3 + $0x140] sm:$0xf0] %v3020_v5  ;;  %v2817_v52 = vpop.permute.xlu0 %2816 }
 0x462   : > { %v3008_v8 = vpop.permute.xlu1 %3007 }
 0x463   : > { %v3017_v17 = vsel %vm6961_vm11, %v3008_v8, %v3010_v23  ;;  %v4130_v20 = vld [vmem:[#allocation3 + $0x188] sm:$0xff]  ;;  %v4131_v35 = vld [vmem:[#allocation3 + $0x138] sm:$0xff] }
 0x464   : > { %3025 = vst [vmem:[#allocation3 + $0xe0] sm:$0xf0] %v3017_v17  ;;  %4206 = vmatprep.subr.mxu0 %v4130_v20  ;;  %v2879_v12 = vpop.permute.xlu0 %2878 }
 0x466   : > { %v2815_v51 = vpop.permute.xlu1 %2814 }
 0x467   : > { %v2821_v43 = vsel %vm510_vm2, %v2813_v42, %v2815_v51  ;;  %v2822_v38 = vsel %vm510_vm2, %v2815_v51, %v2817_v52  ;;  %v4132_v36 = vld [vmem:[#allocation3 + $0x140] sm:$0xff] }
 0x468   : > { %2829 = vst [vmem:[#allocation3 + $0x150] sm:$0xf] %v2821_v43  ;;  %2830 = vst [vmem:[#allocation3 + $0x108] sm:$0xf] %v2822_v38  ;;  %4277 = vmatprep.subr.mxu1 %v4132_v36  ;;  %v2883_v37 = vpop.permute.xlu0 %2882 }
 0x469   : > { %4278 = vmatpush1.msra.mxu1 %v4131_v35 }
 0x46a   : > { %v2819_v18 = vpop.permute.xlu1 %2818 }
 0x46b   : > { %v2823_v33 = vsel %vm510_vm2, %v2817_v52, %v2819_v18  ;;  %v4129_v53 = vld [vmem:[#allocation3 + $0xe0] sm:$0xff] }
 0x46c   : > { %2831 = vst [vmem:[#allocation3 + $0x60] sm:$0xf] %v2823_v33  ;;  %4207 = vmatpush1.msra.mxu0 %v4129_v53  ;;  %v2811_v41 = vpop.permute.xlu0 %2810 }
 0x46d   : > { %v2820_v39 = vsel %vm510_vm2, %v2811_v41, %v2813_v42  ;;  %vm6965_vm2 = vcmask 883712  }
 0x46e   : > { %v2881_v47 = vpop.permute.xlu1 %2880  ;;  %2828 = vst [vmem:[#allocation3 + $0x120] sm:$0xf] %v2820_v39 }
 0x46f   : > { %v2887_v58 = vsel %vm6950_vm0, %v2879_v12, %v2881_v47  ;;  %v2888_v63 = vsel %vm6962_vm5, %v2881_v47, %v2883_v37 }
 0x470   : > { %2895 = vst [vmem:[#allocation3 + $0x150] sm:$0xf0] %v2887_v58  ;;  %2896 = vst [vmem:[#allocation3 + $0x108] sm:$0xf0] %v2888_v63  ;;  %v2682_v11 = vpop.permute.xlu0 %2681 }
 0x472   : > { %v2885_v22 = vpop.permute.xlu1 %2884 }
 0x473   : > { %v2889_v4 = vsel %vm6963_vm10, %v2883_v37, %v2885_v22 }
 0x474   : > { %2897 = vst [vmem:[#allocation3 + $0x60] sm:$0xf0] %v2889_v4  ;;  %v2686_v59 = vpop.permute.xlu0 %2685 }
 0x476   : > { %v2877_v24 = vpop.permute.xlu1 %2876 }
 0x477   : > { %v2886_v30 = vsel %vm6964_vm12, %v2877_v24, %v2879_v12  ;;  %v4126_v0 = vld [vmem:[#allocation3 + $0x150] sm:$0xff]  ;;  %v4127_v27 = vld [vmem:[#allocation3 + $0x108] sm:$0xff] }
 0x478   : > { %2894 = vst [vmem:[#allocation3 + $0x120] sm:$0xf0] %v2886_v30  ;;  %4208 = vmatprep.subr.mxu0 %v4126_v0  ;;  %v2748_v55 = vpop.permute.xlu0 %2747 }
 0x47a   : > { %v2684_v62 = vpop.permute.xlu1 %2683 }
 0x47b   : > { %v2690_v44 = vsel %vm647_vm4, %v2682_v11, %v2684_v62  ;;  %v2691_v34 = vsel %vm647_vm4, %v2684_v62, %v2686_v59  ;;  %v4128_v28 = vld [vmem:[#allocation3 + $0x60] sm:$0xff]  ;;  %v4112_v62 = vld [vmem:[%s6858_s2] sm:$0xf] }
 0x47c   : > { %2698 = vst [vmem:[#allocation3 + $0x110] sm:$0xf] %v2690_v44  ;;  %2699 = vst [vmem:[#allocation3 + $0x118] sm:$0xf] %v2691_v34  ;;  %4279 = vmatprep.subr.mxu1 %v4128_v28  ;;  %v2752_v10 = vpop.permute.xlu0 %2751 }
 0x47d   : > { %4280 = vmatpush1.msra.mxu1 %v4127_v27 }
 0x47e   : > { %v2688_v56 = vpop.permute.xlu1 %2687 }
 0x47f   : > { %v2692_v29 = vsel %vm647_vm4, %v2686_v59, %v2688_v56  ;;  %v4125_v31 = vld [vmem:[#allocation3 + $0x120] sm:$0xff] }
 0x480   : > { %2700 = vst [vmem:[#allocation3 + $0x98] sm:$0xf] %v2692_v29  ;;  %4209 = vmatpush1.msra.mxu0 %v4125_v31  ;;  %v2680_v25 = vpop.permute.xlu0 %2679 }
 0x481   : > { %v2689_v3 = vsel %vm647_vm4, %v2680_v25, %v2682_v11 }
 0x482   : > { %v2750_v49 = vpop.permute.xlu1 %2749  ;;  %2697 = vst [vmem:[#allocation3 + $0x180] sm:$0xf] %v2689_v3 }
 0x483   : > { %v2756_v7 = vsel %vm578_vm3, %v2748_v55, %v2750_v49  ;;  %v2757_v14 = vsel %vm578_vm3, %v2750_v49, %v2752_v10 }
 0x484   : > { %2764 = vst [vmem:[#allocation3 + $0x110] sm:$0xf0] %v2756_v7  ;;  %2765 = vst [vmem:[#allocation3 + $0x118] sm:$0xf0] %v2757_v14  ;;  %v2551_v46 = vpop.permute.xlu0 %2550 }
 0x486   : > { %v2754_v61 = vpop.permute.xlu1 %2753 }
 0x487   : > { %v2758_v23 = vsel %vm578_vm3, %v2752_v10, %v2754_v61 }
 0x488   : > { %2766 = vst [vmem:[#allocation3 + $0x98] sm:$0xf0] %v2758_v23  ;;  %v2555_v19 = vpop.permute.xlu0 %2554 }
 0x48a   : > { %v2746_v2 = vpop.permute.xlu1 %2745 }
 0x48b   : > { %v2755_v32 = vsel %vm578_vm3, %v2746_v2, %v2748_v55  ;;  %v4122_v1 = vld [vmem:[#allocation3 + $0x110] sm:$0xff]  ;;  %v4123_v9 = vld [vmem:[#allocation3 + $0x118] sm:$0xff]  ;;  %vm6966_vm3 = vmmov %vm6965_vm2 }
 0x48c   : > { %2763 = vst [vmem:[#allocation3 + $0x180] sm:$0xf0] %v2755_v32  ;;  %4210 = vmatprep.subr.mxu0 %v4122_v1  ;;  %v2617_v16 = vpop.permute.xlu0 %2616 }
 0x48e   : > { %v2553_v26 = vpop.permute.xlu1 %2552 }
 0x48f   : > { %v2559_v15 = vsel %vm535_vm7, %v2551_v46, %v2553_v26  ;;  %v2560_v6 = vsel %vm535_vm7, %v2553_v26, %v2555_v19  ;;  %v4124_v50 = vld [vmem:[#allocation3 + $0x98] sm:$0xff] }
 0x490   : > { %2567 = vst [vmem:[#allocation3 + $0x168] sm:$0xf] %v2559_v15  ;;  %2568 = vst [vmem:[#allocation3 + $0x130] sm:$0xf] %v2560_v6  ;;  %4281 = vmatprep.subr.mxu1 %v4124_v50  ;;  %v2621_v45 = vpop.permute.xlu0 %2620 }
 0x491   : > { %4282 = vmatpush1.msra.mxu1 %v4123_v9 }
 0x492   : > { %v2557_v57 = vpop.permute.xlu1 %2556 }
 0x493   : > { %v2561_v40 = vsel %vm535_vm7, %v2555_v19, %v2557_v57  ;;  %v4121_v48 = vld [vmem:[#allocation3 + $0x180] sm:$0xff] }
 0x494   : > { %2569 = vst [vmem:[#allocation3 + $0x48] sm:$0xf] %v2561_v40  ;;  %4211 = vmatpush1.msra.mxu0 %v4121_v48  ;;  %v2549_v42 = vpop.permute.xlu0 %2548 }
 0x495   : > { %v2558_v5 = vsel %vm535_vm7, %v2549_v42, %v2551_v46 }
 0x496   : > { %v2619_v13 = vpop.permute.xlu1 %2618  ;;  %2566 = vst [vmem:[#allocation3 + $0x50] sm:$0xf] %v2558_v5 }
 0x497   : > { %v2625_v52 = vsel %vm604_vm9, %v2617_v16, %v2619_v13  ;;  %v2626_v8 = vsel %vm604_vm9, %v2619_v13, %v2621_v45 }
 0x498   : > { %2633 = vst [vmem:[#allocation3 + $0x168] sm:$0xf0] %v2625_v52  ;;  %2634 = vst [vmem:[#allocation3 + $0x130] sm:$0xf0] %v2626_v8  ;;  %v2420_v17 = vpop.permute.xlu0 %2419 }
 0x499   : > { %v2427_v12 = vsel %vm398_vm6, %v6439_v54, %v2420_v17 }
 0x49a   : > { %v2623_v20 = vpop.permute.xlu1 %2622  ;;  %2435 = vst [vmem:[#allocation3 + $0xb0] sm:$0xf] %v2427_v12 }
 0x49b   : > { %v2627_v51 = vsel %vm604_vm9, %v2621_v45, %v2623_v20 }
 0x49c   : > { %2635 = vst [vmem:[#allocation3 + $0x48] sm:$0xf0] %v2627_v51  ;;  %v2424_v43 = vpop.permute.xlu0 %2423 }
 0x49e   : > { %v2615_v38 = vpop.permute.xlu1 %2614 }
 0x49f   : > { %v2624_v36 = vsel %vm604_vm9, %v2615_v38, %v2617_v16  ;;  %v4118_v35 = vld [vmem:[#allocation3 + $0x168] sm:$0xff]  ;;  %v4119_v54 = vld [vmem:[#allocation3 + $0x130] sm:$0xff] }
 0x4a0   : > { %2632 = vst [vmem:[#allocation3 + $0x50] sm:$0xf0] %v2624_v36  ;;  %4212 = vmatprep.subr.mxu0 %v4118_v35  ;;  %v2486_v37 = vpop.permute.xlu0 %2485 }
 0x4a2   : > { %v2422_v18 = vpop.permute.xlu1 %2421 }
 0x4a3   : > { %v2428_v33 = vsel %vm398_vm6, %v2420_v17, %v2422_v18  ;;  %v2429_v53 = vsel %vm398_vm6, %v2422_v18, %v2424_v43  ;;  %v4120_v41 = vld [vmem:[#allocation3 + $0x48] sm:$0xff] }
 0x4a4   : > { %2436 = vst [vmem:[#allocation3 + $0x1b0] sm:$0xf] %v2428_v33  ;;  %2437 = vst [vmem:[#allocation3 + $0xd8] sm:$0xf] %v2429_v53  ;;  %4283 = vmatprep.subr.mxu1 %v4120_v41  ;;  %v2490_v47 = vpop.permute.xlu0 %2489 }
 0x4a5   : > { %4284 = vmatpush1.msra.mxu1 %v4119_v54 }
 0x4a6   : > { %v2426_v39 = vpop.permute.xlu1 %2425 }
 0x4a7   : > { %v2430_v58 = vsel %vm398_vm6, %v2424_v43, %v2426_v39  ;;  %v4117_v63 = vld [vmem:[#allocation3 + $0x50] sm:$0xff] }
 0x4a8   : > { %2438 = vst [vmem:[#allocation3 + $0x18] sm:$0xf] %v2430_v58  ;;  %4213 = vmatpush1.msra.mxu0 %v4117_v63  ;;  %v2484_v11 = vpop.permute.xlu0 %2483 }
 0x4a9   : > { %v2493_v4 = vsel %vm467_vm8, %v2484_v11, %v2486_v37 }
 0x4aa   : > { %v2488_v22 = vpop.permute.xlu1 %2487  ;;  %2501 = vst [vmem:[#allocation3 + $0xb0] sm:$0xf0] %v2493_v4 }
 0x4ab   : > { %v2494_v59 = vsel %vm467_vm8, %v2486_v37, %v2488_v22  ;;  %v2495_v24 = vsel %vm467_vm8, %v2488_v22, %v2490_v47 }
 0x4ac   : > { %2502 = vst [vmem:[#allocation3 + $0x1b0] sm:$0xf0] %v2494_v59  ;;  %2503 = vst [vmem:[#allocation3 + $0xd8] sm:$0xf0] %v2495_v24 }
 0x4ae   : > { %v2492_v30 = vpop.permute.xlu1 %2491 }
 0x4af   : > { %v2496_v0 = vsel %vm467_vm8, %v2490_v47, %v2492_v30 }
 0x4b0   : > { %2504 = vst [vmem:[#allocation3 + $0x18] sm:$0xf0] %v2496_v0 }
 0x4b1   : > { %v4113_v44 = vld [vmem:[#allocation3 + $0xb0] sm:$0xff] }
 0x4b3   : > { %v4114_v55 = vld [vmem:[#allocation3 + $0x1b0] sm:$0xff]  ;;  %v4115_v28 = vld [vmem:[#allocation3 + $0xd8] sm:$0xff] }
 0x4b4   : > { %4214 = vmatprep.subr.mxu0 %v4114_v55 }
 0x4b5   : > { %4215 = vmatpush1.msra.mxu0 %v4113_v44  ;;  %v4340_v25 = vpop.permute.xlu0 %4339 }
 0x4b6   : > { %4474 = vmatmul.mubr.msk.f32.vlgmr.msra.gmra.mxu0 %vm6965_vm2, %v4112_v62 }
 0x4b7   : > { %v4116_v34 = vld [vmem:[#allocation3 + $0x18] sm:$0xff] }
 0x4b8   : > { %4285 = vmatprep.subr.mxu1 %v4116_v34 }
 0x4b9   : > { %4286 = vmatpush1.msra.mxu1 %v4115_v28 }
 0x4ba   : > { %4477 = vmatmul.mubr.msk.f32.vlgmr.msra.gmra.mxu1 %vm6966_vm3, %v4112_v62 }
 0x4bb   : > { %v4330_v27 = vpop.permute.xlu1 %4329 }
 0x576   : > { %v4250_v10 = vpop.f32.mrf.mxu0 }
 0x577   : > { %v4332_v56 = vmul.f32 %v4330_v27, %v4250_v10 }
 0x578   : > { %v4252_v29 = vpop.f32.mrf.mxu0 }
 0x579   : > { %v4333_v31 = vmul.f32 %v4330_v27, %v4252_v29  ;;  %v4342_v3 = vadd.f32 %v4340_v25, %v4332_v56 }
 0x57a   : > { %v4321_v49 = vpop.f32.mrf.mxu1 }
 0x57b   : > { %v4343_v7 = vadd.f32 %v4340_v25, %v4333_v31  ;;  %v4334_v14 = vmul.f32 %v4330_v27, %v4321_v49 }
 0x57c   : > { %v4323_v46 = vpop.f32.mrf.mxu1 }
 0x57d   : > { %v4350_v61 = vcombine.low %v4342_v3, %v4343_v7  ;;  %v4335_v23 = vmul.f32 %v4330_v27, %v4323_v46  ;;  %v4344_v2 = vadd.f32 %v4340_v25, %v4334_v14 }
 0x57f   : > { %v4354_v19 = vadd.f32 %v5334_v21, %v4350_v61  ;;  %v4345_v32 = vadd.f32 %v4340_v25, %v4335_v23 }
 0x581   : > { %v4356_v1 = vmax.f32 %v4354_v19, 0.0  ;;  %v4351_v16 = vcombine.low %v4344_v2, %v4345_v32 }
 0x583   : > { %v4355_v26 = vadd.f32 %v5353_v60, %v4351_v16  ;;  %4358 = vst [vmem:[%s336_s7] sm:$0xff] %v4356_v1 }
 0x585   : > { %v4357_v15 = vmax.f32 %v4355_v26, 0.0 }
 0x587   : > { %4359 = vst [vmem:[%s336_s7 + $0x8] sm:$0xff] %v4357_v15 }
 0x588   : > { %4638 = shalt.err (!%p4635_p0)
}
 0x589   : > { %s4639_s23 = scalar_lea.hbm %s4373_s16, 256  ;;  %s4643_s19 = scalar_lea.hbm %s6864_s8, 512 }
 0x58a   : > { %p4640_p5 = scmp.ne.s32.totalorder %s4373_s16, %s4639_s23  ;;  %p4644_p1 = scmp.lt.s32.totalorder %s4373_s16, %s6864_s8 }
 0x58b   : > { %p4645_p4 = scmp.lt.s32.totalorder %s4643_s19, %s4639_s23 }
 0x58c   : > { %p4641_p9 = pnand %p4640_p5, %p6968_p3 }
 0x58d   : > { %p4646_p6 = por %p4645_p4, %p4644_p1 }
 0x58e   : > { %p4642_p12 = pneg %p4641_p9 }
 0x590   : > { %p4647_p8 = pnand %p4646_p6, %p4642_p12 }
 0x592   : > { %4650 = shalt.err (!%p4647_p8)
}
 0x593   : > { %4491 = dma.vmem_to_hbm [thread:$0]  (%p6968_p3), %s4376_s17, 256, %s4373_s16, %s4361_s20  }
 0x594 PF: > { %s4387_s15 = sand.u32 1, %s4681_s27   ;;  %p6969_p11 = scmp.ne.s32.totalorder %s6901_s12, 0 }
 0x595   : > { %p6970_p7 = scmp.ge.s32.totalorder %s4693_s30, 2  ;;  %s4388_s7 = scalar_lea.sflag [#allocation6], %s4387_s15 }
 0x597   : > { %p4502_p10 = pnand %p6970_p7, %p6969_p11 }
 0x599   : > { %p4503_p2 = pneg %p4502_p10 }
 0x59b   : > { %4676 = dma.done.wait (%p4503_p2), %s4388_s7, 256  }
 0x59c   : > { %4678 = vsyncadd (%p4503_p2), %s4388_s7, 4294967040  ;;  %s6971_s30 = sld [smem:[#allocation13_spill]]  ;;  %s6973_s27 = smov %s4685_s28 }
 0x59d   : > { %s6972_s25 = sld [smem:[#allocation14_spill]]  ;;  %s6974_s28 = smov %s4689_s29 }
 0x5a2   : > { %p22_p13 = scmp.ge.s32.totalorder %s6971_s30, 4  }
 0x5a3   : > { %s6975_s29 = smov %s6972_s25 }
 0x5a4   :  { %24 = sbr.rel (!%p22_p13) target bundleno = 8 (0x8), region = 127 }
 0x5a9   :  { %4393 = vsyncpa [#allocation5], 1 }
 0x5aa   :  { %4395 = vsyncpa [#allocation5 + $0x1], 1 }
 0x5ab   :  { %4396 = vsyncpa [#allocation8], 1 }
 0x5ac   :  { %4397 = vsyncpa [#allocation6], 1 }
 0x5ad   :  { %4399 = vsyncpa [#allocation6 + $0x1], 1 }

</bundles_post_ra>
